<compile_context>
chip_gen: v7x
topology: tpu7x:2x2x1
jax: 0.10.0
libtpu: 0.0.40
codegen_flags: <defaults>
</compile_context>

<pallas_src>
import functools

import jax
import jax.numpy as jnp
from jax.experimental import pallas as pl
from jax.experimental.pallas import tpu as pltpu


# ---------------------------------------------------------------------------
# Generation-aware VMEM budgeting / tile selection
# ---------------------------------------------------------------------------
@functools.lru_cache(maxsize=None)
def _vmem_capacity_bytes():
    """Physical VMEM per TensorCore (64 MiB on v7x, 128 MiB on v5e/v6e)."""
    try:
        info = pltpu.get_tpu_info()
        cap = getattr(info, "vmem_capacity_bytes", None)
        if cap:
            return int(cap)
    except Exception:
        pass
    return 64 << 20          # conservative fallback: never over-asks on v7x


def _scoped_vmem_cap():
    """Scoped-VMEM ceiling: physical minus ~16 MiB compiler-internal headroom."""
    phys = _vmem_capacity_bytes()
    return int(min(max(phys - (16 << 20), 32 << 20), 112 << 20))


def _vmem_limit_bytes(*byte_counts, headroom=4 << 20):
    need = int(sum(int(b) for b in byte_counts)) + headroom
    return int(min(max(need, 8 << 20), _scoped_vmem_cap()))


def _default_row_tile():
    # Bigger row tiles on 128 MiB parts cut the ~0.35 us/step grid overhead and
    # lengthen the MXU contraction; 256 fits comfortably on 64 MiB parts.
    return 512 if _vmem_capacity_bytes() >= (100 << 20) else 256


def _square_tile(D, desired=None):
    """Tile edge for (D, D) matrices: full D when small, else 512/256/128."""
    if desired is None:
        desired = 512 if _vmem_capacity_bytes() >= (100 << 20) else 256
    if D <= desired:
        return D
    for t in (desired, 256, 128):
        if t <= D and D % t == 0:
            return t
    return D  # fall back to untiled along that axis


# ---------------------------------------------------------------------------
# Kernel 1: streaming mean + unbiased covariance of an (M, D) feature matrix.
#   c        = mean of the first row tile (shift point: kills cancellation)
#   zs       = sum_i (x_i - c)                      (f32, VMEM scratch)
#   acc      = sum_i (x_i - c)(x_i - c)^T[:, strip] (f32 acc of bf16 products)
#   mu       = c + zs / M
#   sigma    = (acc - M * d d_strip^T) / (M - 1),   d = zs / M
# Grid: (column strips ["parallel"], row tiles ["arbitrary"]).
# Outputs are written once, at the last row tile of each strip pass.
# ---------------------------------------------------------------------------
def _moments_kernel(x_ref, mu_ref, sigma_ref, c_ref, zs_ref, acc_ref, *,
                    n_rows, tm, strip_d, n_strips, needs_mask, compute_dtype):
    s = pl.program_id(0)
    i = pl.program_id(1)

    xb = x_ref[...].astype(jnp.float32)                        # (tm, D)

    @pl.when(i == 0)
    def _():
        # First row tile is always full (tm <= M): its mean is the shift point.
        c_ref[...] = jnp.sum(xb, axis=0, keepdims=True) / jnp.float32(tm)
        zs_ref[...] = jnp.zeros_like(zs_ref)
        acc_ref[...] = jnp.zeros_like(acc_ref)

    z = xb - c_ref[...]
    if needs_mask:
        # Single mask, on z only (masking xb too was redundant VPU work).
        rows = jax.lax.broadcasted_iota(jnp.int32, (tm, 1), 0) + i * tm
        z = jnp.where(rows < n_rows, z, 0.0)

    # Column sums stay in f32 (mu precision).
    zs_ref[...] += jnp.sum(z, axis=0, keepdims=True)            # (1, D)

    # bf16 operands, f32 accumulation: dominant MXU work at 2-3x the f32 rate.
    if n_strips == 1:
        z_strip = z
    else:
        z_strip = jnp.where(s == 0, z[:, :strip_d], z[:, strip_d:])
    # z^T z_strip via MXU transposed-operand path (contract over rows; no
    # explicit .T, no XLU transpose — verified pattern from the f32 version).
    acc_ref[...] += jax.lax.dot_general(
        z.astype(compute_dtype), z_strip.astype(compute_dtype),
        dimension_numbers=(((0,), (0,)), ((), ())),
        preferred_element_type=jnp.float32)                     # (D, strip_d)

    @pl.when(i == pl.num_programs(1) - 1)
    def _():
        # NOTE: M == 1 divides by zero here, matching torch.cov's behavior.
        m = jnp.float32(n_rows)
        d_full = zs_ref[...] / m                                # (1, D)
        c_full = c_ref[...]
        if n_strips == 1:
            d_strip, c_strip = d_full, c_full
        else:
            d_strip = jnp.where(s == 0, d_full[:, :strip_d], d_full[:, strip_d:])
            c_strip = jnp.where(s == 0, c_full[:, :strip_d], c_full[:, strip_d:])
        outer = jax.lax.dot_general(                            # f32 correction
            d_full, d_strip,
            dimension_numbers=(((0,), (0,)), ((), ())),
            preferred_element_type=jnp.float32)                 # (D, strip_d)
        sigma_ref[...] = (acc_ref[...] - m * outer) / (m - 1.0)
        mu_ref[...] = c_strip + d_strip


def mean_and_cov(x, *, tm=None, n_strips=None, use_bf16=True):
    """x: (M, D) -> (mu (D,), sigma (D, D)), both float32.

    use_bf16: run the Z^T Z contraction with bf16 MXU operands / f32
    accumulation (recommended; the mean-shift keeps the error small).
    """
    M, D = x.shape
    cap = _vmem_capacity_bytes()

    if tm is None:
        tm = _default_row_tile()
    tm = min(tm, M)
    if tm < M:
        tm = max(8, (tm // 8) * 8)        # sublane-aligned row tile
    n_row_tiles = pl.cdiv(M, tm)

    if n_strips is None:
        # Dual-TC / 64 MiB generations (v7x): split sigma columns so both cores
        # share the contraction and the resident sigma block halves. On single
        # TC 128 MiB parts this would only re-stream x, so keep one strip.
        n_strips = 2 if (cap <= (64 << 20) and D >= 256 and D % 256 == 0) else 1
    if n_strips != 1:
        assert n_strips == 2 and D % 256 == 0, "n_strips must be 1, or 2 with D % 256 == 0"
    strip_d = D // n_strips

    compute_dtype = jnp.bfloat16 if use_bf16 else jnp.float32
    kernel = functools.partial(
        _moments_kernel, n_rows=M, tm=tm, strip_d=strip_d, n_strips=n_strips,
        needs_mask=(M % tm) != 0, compute_dtype=compute_dtype)

    in_bytes = 2 * tm * D * x.dtype.itemsize              # double-buffered x tile
    out_bytes = 2 * (D * strip_d + strip_d) * 4           # output blocks (safety x2)
    scratch_bytes = (D * strip_d + 16 * max(D, 128)) * 4  # acc + padded c/zs

    mu, sigma = pl.pallas_call(
        kernel,
        out_shape=(
            jax.ShapeDtypeStruct((1, D), jnp.float32),
            jax.ShapeDtypeStruct((D, D), jnp.float32),
        ),
        grid_spec=pltpu.PrefetchScalarGridSpec(
            num_scalar_prefetch=0,
            grid=(n_strips, n_row_tiles),
            # TODO(synk): on v5e (820 GB/s HBM) the bf16 matmul may expose the
            # per-step x DMA; pipeline_mode=pl.Buffered(3) here would deepen it.
            in_specs=[pl.BlockSpec((tm, D), lambda s, i: (i, 0))],
            out_specs=(
                pl.BlockSpec((1, strip_d), lambda s, i: (0, s)),
                pl.BlockSpec((D, strip_d), lambda s, i: (0, s)),
            ),
            scratch_shapes=[
                pltpu.VMEM((1, D), jnp.float32),          # c  (shift point)
                pltpu.VMEM((1, D), jnp.float32),          # zs (column sums)
                pltpu.VMEM((D, strip_d), jnp.float32),    # acc (Z^T Z strip)
            ],
        ),
        compiler_params=pltpu.CompilerParams(
            dimension_semantics=("parallel", "arbitrary"),
            vmem_limit_bytes=_vmem_limit_bytes(in_bytes, out_bytes, scratch_bytes),
        ),
        cost_estimate=pl.CostEstimate(
            flops=2 * M * D * D + 4 * M * D,
            transcendentals=0,
            bytes_accessed=n_strips * M * D * x.dtype.itemsize + (D * D + D) * 4,
        ),
    )(x)
    return mu[0], sigma


# ---------------------------------------------------------------------------
# Kernel 2: fused chain product  A @ B @ A  for square (D, D) matrices.
#   O[:, j] = sum_k  A[:, k_blk] @ ( B[k_blk, :] @ A[:, j_blk] )
# The (t, t) intermediate is a plain SSA value: no scratch, so the scheduler is
# free to overlap the two dependent matmuls across k iterations (no WAR hazard
# on a shared buffer while the MXU result FIFO drains).
# ---------------------------------------------------------------------------
def _aba_kernel(a_j_ref, b_k_ref, a_k_ref, o_ref):
    k = pl.program_id(1)

    @pl.when(k == 0)
    def _():
        o_ref[...] = jnp.zeros_like(o_ref)

    t = jnp.dot(b_k_ref[...], a_j_ref[...],
                preferred_element_type=jnp.float32)              # (t, t)
    o_ref[...] += jnp.dot(a_k_ref[...], t,
                          preferred_element_type=jnp.float32)    # (D, t)


def aba_product(a, b, *, tile=None):
    """Fused a @ b @ a, a/b: (D, D) float32."""
    D = a.shape[0]
    t = _square_tile(D, tile)
    nblk = D // t
    vmem = _vmem_limit_bytes(8 * D * t * 4)
    return pl.pallas_call(
        _aba_kernel,
        out_shape=jax.ShapeDtypeStruct((D, D), jnp.float32),
        grid_spec=pltpu.PrefetchScalarGridSpec(
            num_scalar_prefetch=0,
            grid=(nblk, nblk),
            in_specs=[
                pl.BlockSpec((D, t), lambda j, k: (0, j)),   # A column strip j
                pl.BlockSpec((t, D), lambda j, k: (k, 0)),   # B row strip k
                pl.BlockSpec((D, t), lambda j, k: (0, k)),   # A column strip k
            ],
            out_specs=pl.BlockSpec((D, t), lambda j, k: (0, j)),
        ),
        compiler_params=pltpu.CompilerParams(
            dimension_semantics=("parallel", "arbitrary"),
            vmem_limit_bytes=vmem,
        ),
        cost_estimate=pl.CostEstimate(
            flops=4 * D * D * D,
            transcendentals=0,
            bytes_accessed=(2 * nblk + 2) * D * D * 4,
        ),
    )(a, b, a)


# ---------------------------------------------------------------------------
# Kernel 3: Q @ diag(s) @ Q^T. The scale of the Q row strip i is computed once
# per i (hoisted into VMEM scratch under pl.when(j == 0)); the transpose is a
# dot_general contraction on the last dims (no XLU transpose, no HBM pass).
# Grid: (i "parallel", j "arbitrary") so the scratch refresh stays correct
# under megacore splitting of the outer axis.
# ---------------------------------------------------------------------------
def _q_scale_qt_kernel(q_i_ref, q_j_ref, s_ref, o_ref, qi_sc):
    @pl.when(pl.program_id(1) == 0)
    def _():
        qi_sc[...] = q_i_ref[...].astype(jnp.float32) * s_ref[...]
    o_ref[...] = jax.lax.dot_general(
        qi_sc[...], q_j_ref[...].astype(jnp.float32),
        dimension_numbers=(((1,), (1,)), ((), ())),          # contract last dims
        preferred_element_type=jnp.float32)


def q_scale_qt(q, s, *, tile=None):
    """Returns Q @ diag(s) @ Q^T for Q: (D, D), s: (D,)."""
    # TODO(synk): exploit output symmetry (compute only i <= j blocks via a
    # scalar-prefetched triangular grid) once mirroring can stay in-kernel.
    D = q.shape[0]
    t = _square_tile(D, tile)
    nblk = D // t
    s2 = s.reshape(1, D).astype(jnp.float32)
    vmem = _vmem_limit_bytes(4 * t * D * 4, 3 * t * D * 4, 2 * t * t * 4, D * 4)
    return pl.pallas_call(
        _q_scale_qt_kernel,
        out_shape=jax.ShapeDtypeStruct((D, D), jnp.float32),
        grid_spec=pltpu.PrefetchScalarGridSpec(
            num_scalar_prefetch=0,
            grid=(nblk, nblk),
            in_specs=[
                pl.BlockSpec((t, D), lambda i, j: (i, 0)),   # Q row strip i
                pl.BlockSpec((t, D), lambda i, j: (j, 0)),   # Q row strip j
                pl.BlockSpec((1, D), lambda i, j: (0, 0)),   # sqrt-eigenvalues
            ],
            out_specs=pl.BlockSpec((t, t), lambda i, j: (i, j)),
            scratch_shapes=[pltpu.VMEM((t, D), jnp.float32)],  # scaled strip i
        ),
        compiler_params=pltpu.CompilerParams(
            dimension_semantics=("parallel", "arbitrary"),
            vmem_limit_bytes=vmem,
        ),
        cost_estimate=pl.CostEstimate(
            flops=2 * D * D * D + D * D,
            transcendentals=0,
            bytes_accessed=(2 * nblk + 1) * D * D * 4,
        ),
    )(q, q, s2)


# ---------------------------------------------------------------------------
# sqrtm and Fréchet distance (glue). eigh/eigvalsh stay in plain JAX.
# ---------------------------------------------------------------------------
def sqrtm(sigma):
    """Matrix square root of a PSD matrix: Q sqrt(relu(L)) Q^T."""
    # TODO(synk): symmetric eigendecomposition (torch.linalg.eigh) has no Pallas
    # equivalent; it stays in plain JAX (jnp.linalg.eigh).
    L, Q = jnp.linalg.eigh(sigma)
    s = jnp.sqrt(jnp.maximum(L, 0.0))
    return q_scale_qt(Q, s)


def frechet_distance(mu_x, sigma_x, mu_y, sigma_y):
    sigma_y_12 = sqrtm(sigma_y)
    a = jnp.sum(jnp.square(mu_x - mu_y))
    b = jnp.trace(sigma_x) + jnp.trace(sigma_y)
    # Only the trace of the second sqrtm is needed:
    #   tr(sqrtm(S)) == sum(sqrt(relu(eigvalsh(S)))) -- skip the Q sqrt(L) Q^T rebuild.
    inner = aba_product(sigma_y_12, sigma_x)          # sigma_y^1/2 sigma_x sigma_y^1/2
    # No explicit 0.5*(inner + inner.T): eigvalsh symmetrizes internally,
    # avoiding an extra XLA transpose + two HBM passes over a (D, D) array.
    evals = jnp.linalg.eigvalsh(inner)
    c = jnp.sum(jnp.sqrt(jnp.maximum(evals, 0.0)))
    return a + b - 2.0 * c


def fid_forward(x, y, *, use_bf16=True):
    """FID.forward: x (M, D), y (N, D) -> scalar."""
    mu_x, sigma_x = mean_and_cov(x, use_bf16=use_bf16)
    mu_y, sigma_y = mean_and_cov(y, use_bf16=use_bf16)
    return frechet_distance(mu_x, sigma_x, mu_y, sigma_y)


# ---------------------------------------------------------------------------
if __name__ == "__main__":
    key = jax.random.PRNGKey(0)
    kx, ky, kz = jax.random.split(key, 3)
    M, N, D = 96, 72, 32
    x = jax.random.normal(kx, (M, D), dtype=jnp.float32)
    y = 0.5 * jax.random.normal(ky, (N, D), dtype=jnp.float32) + 1.0

    out = jax.block_until_ready(jax.jit(fid_forward)(x, y))                 # bf16 MXU path
    out_f32 = jax.block_until_ready(
        jax.jit(functools.partial(fid_forward, use_bf16=False))(x, y))      # f32 path

    # --- light correctness checks against plain JAX -------------------------
    mu_ref = jnp.mean(x, axis=0)
    sigma_ref = jnp.cov(x.T)

    # f32 compute path: tight tolerance.
    mu_k, sigma_k = mean_and_cov(x, use_bf16=False)
    assert jnp.allclose(mu_k, mu_ref, atol=1e-4), "mean mismatch (f32)"
    assert jnp.allclose(sigma_k, sigma_ref, atol=1e-3), "cov mismatch (f32)"

    # bf16 MXU path + masked last tile: bf16-product tolerance.
    mu_k2, sigma_k2 = mean_and_cov(x, tm=64)
    assert jnp.allclose(mu_k2, mu_ref, atol=1e-4), "masked-tile mean mismatch"
    assert jnp.allclose(sigma_k2, sigma_ref, atol=3e-2), "masked-tile cov mismatch (bf16)"

    # Column-strip path (v7x dual-TC layout), exercised explicitly.
    x256 = jax.random.normal(kz, (80, 256), dtype=jnp.float32)
    mu_s, sigma_s = mean_and_cov(x256, tm=32, n_strips=2)
    assert jnp.allclose(mu_s, jnp.mean(x256, axis=0), atol=1e-4), "strip mean mismatch"
    assert jnp.allclose(sigma_s, jnp.cov(x256.T), atol=3e-2), "strip cov mismatch (bf16)"

    def _sqrtm_ref(s):
        L, Q = jnp.linalg.eigh(s)
        return Q @ (jnp.sqrt(jnp.maximum(L, 0.0))[:, None] * Q.T)

    def _fid_ref(xr, yr):
        mx, sx = jnp.mean(xr, 0), jnp.cov(xr.T)
        my, sy = jnp.mean(yr, 0), jnp.cov(yr.T)
        sy12 = _sqrtm_ref(sy)
        ar = jnp.sum(jnp.square(mx - my))
        br = jnp.trace(sx) + jnp.trace(sy)
        cr = jnp.trace(_sqrtm_ref(sy12 @ sx @ sy12))
        return ar + br - 2.0 * cr

    ref = _fid_ref(x, y)
    assert jnp.isfinite(out), "FID is not finite"
    assert jnp.isfinite(out_f32), "FID (f32 path) is not finite"
    assert jnp.allclose(out_f32, ref, rtol=2e-2, atol=2e-2), (float(out_f32), float(ref))
    assert jnp.allclose(out, ref, rtol=1e-1, atol=1e-1), (float(out), float(ref))

    print("KERNEL_OK")
</pallas_src>

<mosaic_0001>
module attributes {stable_mosaic.version = 11 : i64} {
  func.func @_moments_kernel(%arg0: i32, %arg1: i32, %arg2: memref<72x32xf32, #tpu.memory_space<vmem>>, %arg3: memref<1x32xf32, #tpu.memory_space<vmem>>, %arg4: memref<32x32xf32, #tpu.memory_space<vmem>>, %arg5: memref<1x32xf32, #tpu.memory_space<vmem>>, %arg6: memref<1x32xf32, #tpu.memory_space<vmem>>, %arg7: memref<32x32xf32, #tpu.memory_space<vmem>>) attributes {dimension_semantics = [#tpu.dimension_semantics<parallel>, #tpu.dimension_semantics<arbitrary>], iteration_bounds = array<i64: 1, 1>, scalar_prefetch = 0 : i64, scratch_operands = 3 : i64, tpu.core_type = #tpu.core_type<tc>, window_params = [{transform_indices = @transform_0, window_bounds = array<i64: 72, 32>}, {transform_indices = @transform_1, window_bounds = array<i64: 1, 32>}, {transform_indices = @transform_2, window_bounds = array<i64: 32, 32>}]} {
    %c0 = arith.constant 0 : index
    %c0_0 = arith.constant 0 : index
    %0 = vector.load %arg2[%c0, %c0_0] : memref<72x32xf32, #tpu.memory_space<vmem>>, vector<72x32xf32>
    %c0_i32 = arith.constant 0 : i32
    %1 = arith.cmpi eq, %arg1, %c0_i32 : i32
    %2 = arith.extui %1 : i1 to i32
    %c0_i32_1 = arith.constant 0 : i32
    %3 = arith.cmpi ne, %2, %c0_i32_1 : i32
    scf.if %3 {
      %cst_15 = arith.constant dense<0.000000e+00> : vector<32xf32>
      %21 = vector.multi_reduction <add>, %0, %cst_15 [0] : vector<72x32xf32> to vector<32xf32>
      %22 = vector.shape_cast %21 : vector<32xf32> to vector<1x32xf32>
      %cst_16 = arith.constant 7.200000e+01 : f32
      %23 = vector.broadcast %cst_16 : f32 to vector<1x32xf32>
      %24 = arith.divf %22, %23 : vector<1x32xf32>
      %c0_17 = arith.constant 0 : index
      %c0_18 = arith.constant 0 : index
      %25 = vector.load %arg5[%c0_17, %c0_18] : memref<1x32xf32, #tpu.memory_space<vmem>>, vector<1x32xf32>
      tpu.vector_store %arg5[%c0_17, %c0_18], %24 {strides = array<i32>} : memref<1x32xf32, #tpu.memory_space<vmem>>, vector<1x32xf32>,
      %cst_19 = arith.constant 0.000000e+00 : f32
      %26 = vector.broadcast %cst_19 : f32 to vector<1x32xf32>
      %c0_20 = arith.constant 0 : index
      %c0_21 = arith.constant 0 : index
      %27 = vector.load %arg6[%c0_20, %c0_21] : memref<1x32xf32, #tpu.memory_space<vmem>>, vector<1x32xf32>
      tpu.vector_store %arg6[%c0_20, %c0_21], %26 {strides = array<i32>} : memref<1x32xf32, #tpu.memory_space<vmem>>, vector<1x32xf32>,
      %cst_22 = arith.constant 0.000000e+00 : f32
      %28 = vector.broadcast %cst_22 : f32 to vector<32x32xf32>
      %c0_23 = arith.constant 0 : index
      %c0_24 = arith.constant 0 : index
      %29 = vector.load %arg7[%c0_23, %c0_24] : memref<32x32xf32, #tpu.memory_space<vmem>>, vector<32x32xf32>
      tpu.vector_store %arg7[%c0_23, %c0_24], %28 {strides = array<i32>} : memref<32x32xf32, #tpu.memory_space<vmem>>, vector<32x32xf32>,
    } else {
    }
    %c0_2 = arith.constant 0 : index
    %c0_3 = arith.constant 0 : index
    %4 = vector.load %arg5[%c0_2, %c0_3] : memref<1x32xf32, #tpu.memory_space<vmem>>, vector<1x32xf32>
    %5 = vector.broadcast %4 : vector<1x32xf32> to vector<72x32xf32>
    %6 = arith.subf %0, %5 : vector<72x32xf32>
    %c0_4 = arith.constant 0 : index
    %c0_5 = arith.constant 0 : index
    %7 = vector.load %arg6[%c0_4, %c0_5] : memref<1x32xf32, #tpu.memory_space<vmem>>, vector<1x32xf32>
    %cst = arith.constant dense<0.000000e+00> : vector<32xf32>
    %8 = vector.multi_reduction <add>, %6, %cst [0] : vector<72x32xf32> to vector<32xf32>
    %9 = vector.shape_cast %8 : vector<32xf32> to vector<1x32xf32>
    %10 = arith.addf %7, %9 : vector<1x32xf32>
    %c0_6 = arith.constant 0 : index
    %c0_7 = arith.constant 0 : index
    %11 = vector.load %arg6[%c0_6, %c0_7] : memref<1x32xf32, #tpu.memory_space<vmem>>, vector<1x32xf32>
    tpu.vector_store %arg6[%c0_6, %c0_7], %10 {strides = array<i32>} : memref<1x32xf32, #tpu.memory_space<vmem>>, vector<1x32xf32>,
    %c0_8 = arith.constant 0 : index
    %c0_9 = arith.constant 0 : index
    %12 = vector.load %arg7[%c0_8, %c0_9] : memref<32x32xf32, #tpu.memory_space<vmem>>, vector<32x32xf32>
    %13 = arith.truncf %6 : vector<72x32xf32> to vector<72x32xbf16>
    %14 = arith.truncf %6 : vector<72x32xf32> to vector<72x32xbf16>
    %cst_10 = arith.constant dense<0.000000e+00> : vector<32x32xf32>
    %15 = tpu.matmul %13, %14, %cst_10 {dimension_numbers = #tpu.dot_dimension_numbers<[0], [0], [1], [1], [0, 1, 1, 1], [], []>} : vector<72x32xbf16>, vector<72x32xbf16>, vector<32x32xf32> -> vector<32x32xf32>
    %16 = arith.addf %12, %15 : vector<32x32xf32>
    %c0_11 = arith.constant 0 : index
    %c0_12 = arith.constant 0 : index
    %17 = vector.load %arg7[%c0_11, %c0_12] : memref<32x32xf32, #tpu.memory_space<vmem>>, vector<32x32xf32>
    tpu.vector_store %arg7[%c0_11, %c0_12], %16 {strides = array<i32>} : memref<32x32xf32, #tpu.memory_space<vmem>>, vector<32x32xf32>,
    %c0_i32_13 = arith.constant 0 : i32
    %18 = arith.cmpi eq, %arg1, %c0_i32_13 : i32
    %19 = arith.extui %18 : i1 to i32
    %c0_i32_14 = arith.constant 0 : i32
    %20 = arith.cmpi ne, %19, %c0_i32_14 : i32
    scf.if %20 {
      %c0_15 = arith.constant 0 : index
      %c0_16 = arith.constant 0 : index
      %21 = vector.load %arg6[%c0_15, %c0_16] : memref<1x32xf32, #tpu.memory_space<vmem>>, vector<1x32xf32>
      %cst_17 = arith.constant 7.200000e+01 : f32
      %22 = vector.broadcast %cst_17 : f32 to vector<1x32xf32>
      %23 = arith.divf %21, %22 : vector<1x32xf32>
      %c0_18 = arith.constant 0 : index
      %c0_19 = arith.constant 0 : index
      %24 = vector.load %arg5[%c0_18, %c0_19] : memref<1x32xf32, #tpu.memory_space<vmem>>, vector<1x32xf32>
      %cst_20 = arith.constant dense<0.000000e+00> : vector<32x32xf32>
      %25 = tpu.matmul %23, %23, %cst_20 {dimension_numbers = #tpu.dot_dimension_numbers<[0], [0], [1], [1], [0, 1, 1, 1], [], []>} : vector<1x32xf32>, vector<1x32xf32>, vector<32x32xf32> -> vector<32x32xf32>
      %c0_21 = arith.constant 0 : index
      %c0_22 = arith.constant 0 : index
      %26 = vector.load %arg7[%c0_21, %c0_22] : memref<32x32xf32, #tpu.memory_space<vmem>>, vector<32x32xf32>
      %cst_23 = arith.constant 7.200000e+01 : f32
      %27 = vector.broadcast %cst_23 : f32 to vector<32x32xf32>
      %28 = arith.mulf %27, %25 : vector<32x32xf32>
      %29 = arith.subf %26, %28 : vector<32x32xf32>
      %cst_24 = arith.constant 7.200000e+01 : f32
      %cst_25 = arith.constant 1.000000e+00 : f32
      %30 = arith.subf %cst_24, %cst_25 : f32
      %31 = vector.broadcast %30 : f32 to vector<32x32xf32>
      %32 = arith.divf %29, %31 : vector<32x32xf32>
      %c0_26 = arith.constant 0 : index
      %c0_27 = arith.constant 0 : index
      %33 = vector.load %arg4[%c0_26, %c0_27] : memref<32x32xf32, #tpu.memory_space<vmem>>, vector<32x32xf32>
      tpu.vector_store %arg4[%c0_26, %c0_27], %32 {strides = array<i32>} : memref<32x32xf32, #tpu.memory_space<vmem>>, vector<32x32xf32>,
      %34 = arith.addf %24, %23 : vector<1x32xf32>
      %c0_28 = arith.constant 0 : index
      %c0_29 = arith.constant 0 : index
      %35 = vector.load %arg3[%c0_28, %c0_29] : memref<1x32xf32, #tpu.memory_space<vmem>>, vector<1x32xf32>
      tpu.vector_store %arg3[%c0_28, %c0_29], %34 {strides = array<i32>} : memref<1x32xf32, #tpu.memory_space<vmem>>, vector<1x32xf32>,
    } else {
    }
    return
  }
  func.func @transform_0(%arg0: i32, %arg1: i32) -> (i32, i32) {
    %c0_i32 = arith.constant 0 : i32
    %c0_i32_0 = arith.constant 0 : i32
    return %arg1, %c0_i32 : i32, i32
  }
  func.func @transform_1(%arg0: i32, %arg1: i32) -> (i32, i32) {
    %c0_i32 = arith.constant 0 : i32
    %c0_i32_0 = arith.constant 0 : i32
    return %c0_i32, %arg0 : i32, i32
  }
  func.func @transform_2(%arg0: i32, %arg1: i32) -> (i32, i32) {
    %c0_i32 = arith.constant 0 : i32
    %c0_i32_0 = arith.constant 0 : i32
    return %c0_i32, %arg0 : i32, i32
  }
}

module attributes {stable_mosaic.version = 11 : i64} {
  func.func @_moments_kernel(%arg0: i32, %arg1: i32, %arg2: memref<96x32xf32, #tpu.memory_space<vmem>>, %arg3: memref<1x32xf32, #tpu.memory_space<vmem>>, %arg4: memref<32x32xf32, #tpu.memory_space<vmem>>, %arg5: memref<1x32xf32, #tpu.memory_space<vmem>>, %arg6: memref<1x32xf32, #tpu.memory_space<vmem>>, %arg7: memref<32x32xf32, #tpu.memory_space<vmem>>) attributes {dimension_semantics = [#tpu.dimension_semantics<parallel>, #tpu.dimension_semantics<arbitrary>], iteration_bounds = array<i64: 1, 1>, scalar_prefetch = 0 : i64, scratch_operands = 3 : i64, tpu.core_type = #tpu.core_type<tc>, window_params = [{transform_indices = @transform_0, window_bounds = array<i64: 96, 32>}, {transform_indices = @transform_1, window_bounds = array<i64: 1, 32>}, {transform_indices = @transform_2, window_bounds = array<i64: 32, 32>}]} {
    %c0 = arith.constant 0 : index
    %c0_0 = arith.constant 0 : index
    %0 = vector.load %arg2[%c0, %c0_0] : memref<96x32xf32, #tpu.memory_space<vmem>>, vector<96x32xf32>
    %c0_i32 = arith.constant 0 : i32
    %1 = arith.cmpi eq, %arg1, %c0_i32 : i32
    %2 = arith.extui %1 : i1 to i32
    %c0_i32_1 = arith.constant 0 : i32
    %3 = arith.cmpi ne, %2, %c0_i32_1 : i32
    scf.if %3 {
      %cst_15 = arith.constant dense<0.000000e+00> : vector<32xf32>
      %21 = vector.multi_reduction <add>, %0, %cst_15 [0] : vector<96x32xf32> to vector<32xf32>
      %22 = vector.shape_cast %21 : vector<32xf32> to vector<1x32xf32>
      %cst_16 = arith.constant 9.600000e+01 : f32
      %23 = vector.broadcast %cst_16 : f32 to vector<1x32xf32>
      %24 = arith.divf %22, %23 : vector<1x32xf32>
      %c0_17 = arith.constant 0 : index
      %c0_18 = arith.constant 0 : index
      %25 = vector.load %arg5[%c0_17, %c0_18] : memref<1x32xf32, #tpu.memory_space<vmem>>, vector<1x32xf32>
      tpu.vector_store %arg5[%c0_17, %c0_18], %24 {strides = array<i32>} : memref<1x32xf32, #tpu.memory_space<vmem>>, vector<1x32xf32>,
      %cst_19 = arith.constant 0.000000e+00 : f32
      %26 = vector.broadcast %cst_19 : f32 to vector<1x32xf32>
      %c0_20 = arith.constant 0 : index
      %c0_21 = arith.constant 0 : index
      %27 = vector.load %arg6[%c0_20, %c0_21] : memref<1x32xf32, #tpu.memory_space<vmem>>, vector<1x32xf32>
      tpu.vector_store %arg6[%c0_20, %c0_21], %26 {strides = array<i32>} : memref<1x32xf32, #tpu.memory_space<vmem>>, vector<1x32xf32>,
      %cst_22 = arith.constant 0.000000e+00 : f32
      %28 = vector.broadcast %cst_22 : f32 to vector<32x32xf32>
      %c0_23 = arith.constant 0 : index
      %c0_24 = arith.constant 0 : index
      %29 = vector.load %arg7[%c0_23, %c0_24] : memref<32x32xf32, #tpu.memory_space<vmem>>, vector<32x32xf32>
      tpu.vector_store %arg7[%c0_23, %c0_24], %28 {strides = array<i32>} : memref<32x32xf32, #tpu.memory_space<vmem>>, vector<32x32xf32>,
    } else {
    }
    %c0_2 = arith.constant 0 : index
    %c0_3 = arith.constant 0 : index
    %4 = vector.load %arg5[%c0_2, %c0_3] : memref<1x32xf32, #tpu.memory_space<vmem>>, vector<1x32xf32>
    %5 = vector.broadcast %4 : vector<1x32xf32> to vector<96x32xf32>
    %6 = arith.subf %0, %5 : vector<96x32xf32>
    %c0_4 = arith.constant 0 : index
    %c0_5 = arith.constant 0 : index
    %7 = vector.load %arg6[%c0_4, %c0_5] : memref<1x32xf32, #tpu.memory_space<vmem>>, vector<1x32xf32>
    %cst = arith.constant dense<0.000000e+00> : vector<32xf32>
    %8 = vector.multi_reduction <add>, %6, %cst [0] : vector<96x32xf32> to vector<32xf32>
    %9 = vector.shape_cast %8 : vector<32xf32> to vector<1x32xf32>
    %10 = arith.addf %7, %9 : vector<1x32xf32>
    %c0_6 = arith.constant 0 : index
    %c0_7 = arith.constant 0 : index
    %11 = vector.load %arg6[%c0_6, %c0_7] : memref<1x32xf32, #tpu.memory_space<vmem>>, vector<1x32xf32>
    tpu.vector_store %arg6[%c0_6, %c0_7], %10 {strides = array<i32>} : memref<1x32xf32, #tpu.memory_space<vmem>>, vector<1x32xf32>,
    %c0_8 = arith.constant 0 : index
    %c0_9 = arith.constant 0 : index
    %12 = vector.load %arg7[%c0_8, %c0_9] : memref<32x32xf32, #tpu.memory_space<vmem>>, vector<32x32xf32>
    %13 = arith.truncf %6 : vector<96x32xf32> to vector<96x32xbf16>
    %14 = arith.truncf %6 : vector<96x32xf32> to vector<96x32xbf16>
    %cst_10 = arith.constant dense<0.000000e+00> : vector<32x32xf32>
    %15 = tpu.matmul %13, %14, %cst_10 {dimension_numbers = #tpu.dot_dimension_numbers<[0], [0], [1], [1], [0, 1, 1, 1], [], []>} : vector<96x32xbf16>, vector<96x32xbf16>, vector<32x32xf32> -> vector<32x32xf32>
    %16 = arith.addf %12, %15 : vector<32x32xf32>
    %c0_11 = arith.constant 0 : index
    %c0_12 = arith.constant 0 : index
    %17 = vector.load %arg7[%c0_11, %c0_12] : memref<32x32xf32, #tpu.memory_space<vmem>>, vector<32x32xf32>
    tpu.vector_store %arg7[%c0_11, %c0_12], %16 {strides = array<i32>} : memref<32x32xf32, #tpu.memory_space<vmem>>, vector<32x32xf32>,
    %c0_i32_13 = arith.constant 0 : i32
    %18 = arith.cmpi eq, %arg1, %c0_i32_13 : i32
    %19 = arith.extui %18 : i1 to i32
    %c0_i32_14 = arith.constant 0 : i32
    %20 = arith.cmpi ne, %19, %c0_i32_14 : i32
    scf.if %20 {
      %c0_15 = arith.constant 0 : index
      %c0_16 = arith.constant 0 : index
      %21 = vector.load %arg6[%c0_15, %c0_16] : memref<1x32xf32, #tpu.memory_space<vmem>>, vector<1x32xf32>
      %cst_17 = arith.constant 9.600000e+01 : f32
      %22 = vector.broadcast %cst_17 : f32 to vector<1x32xf32>
      %23 = arith.divf %21, %22 : vector<1x32xf32>
      %c0_18 = arith.constant 0 : index
      %c0_19 = arith.constant 0 : index
      %24 = vector.load %arg5[%c0_18, %c0_19] : memref<1x32xf32, #tpu.memory_space<vmem>>, vector<1x32xf32>
      %cst_20 = arith.constant dense<0.000000e+00> : vector<32x32xf32>
      %25 = tpu.matmul %23, %23, %cst_20 {dimension_numbers = #tpu.dot_dimension_numbers<[0], [0], [1], [1], [0, 1, 1, 1], [], []>} : vector<1x32xf32>, vector<1x32xf32>, vector<32x32xf32> -> vector<32x32xf32>
      %c0_21 = arith.constant 0 : index
      %c0_22 = arith.constant 0 : index
      %26 = vector.load %arg7[%c0_21, %c0_22] : memref<32x32xf32, #tpu.memory_space<vmem>>, vector<32x32xf32>
      %cst_23 = arith.constant 9.600000e+01 : f32
      %27 = vector.broadcast %cst_23 : f32 to vector<32x32xf32>
      %28 = arith.mulf %27, %25 : vector<32x32xf32>
      %29 = arith.subf %26, %28 : vector<32x32xf32>
      %cst_24 = arith.constant 9.600000e+01 : f32
      %cst_25 = arith.constant 1.000000e+00 : f32
      %30 = arith.subf %cst_24, %cst_25 : f32
      %31 = vector.broadcast %30 : f32 to vector<32x32xf32>
      %32 = arith.divf %29, %31 : vector<32x32xf32>
      %c0_26 = arith.constant 0 : index
      %c0_27 = arith.constant 0 : index
      %33 = vector.load %arg4[%c0_26, %c0_27] : memref<32x32xf32, #tpu.memory_space<vmem>>, vector<32x32xf32>
      tpu.vector_store %arg4[%c0_26, %c0_27], %32 {strides = array<i32>} : memref<32x32xf32, #tpu.memory_space<vmem>>, vector<32x32xf32>,
      %34 = arith.addf %24, %23 : vector<1x32xf32>
      %c0_28 = arith.constant 0 : index
      %c0_29 = arith.constant 0 : index
      %35 = vector.load %arg3[%c0_28, %c0_29] : memref<1x32xf32, #tpu.memory_space<vmem>>, vector<1x32xf32>
      tpu.vector_store %arg3[%c0_28, %c0_29], %34 {strides = array<i32>} : memref<1x32xf32, #tpu.memory_space<vmem>>, vector<1x32xf32>,
    } else {
    }
    return
  }
  func.func @transform_0(%arg0: i32, %arg1: i32) -> (i32, i32) {
    %c0_i32 = arith.constant 0 : i32
    %c0_i32_0 = arith.constant 0 : i32
    return %arg1, %c0_i32 : i32, i32
  }
  func.func @transform_1(%arg0: i32, %arg1: i32) -> (i32, i32) {
    %c0_i32 = arith.constant 0 : i32
    %c0_i32_0 = arith.constant 0 : i32
    return %c0_i32, %arg0 : i32, i32
  }
  func.func @transform_2(%arg0: i32, %arg1: i32) -> (i32, i32) {
    %c0_i32 = arith.constant 0 : i32
    %c0_i32_0 = arith.constant 0 : i32
    return %c0_i32, %arg0 : i32, i32
  }
}

module attributes {stable_mosaic.version = 11 : i64} {
  func.func @_q_scale_qt_kernel(%arg0: i32, %arg1: i32, %arg2: memref<32x32xf32, #tpu.memory_space<vmem>>, %arg3: memref<32x32xf32, #tpu.memory_space<vmem>>, %arg4: memref<1x32xf32, #tpu.memory_space<vmem>>, %arg5: memref<32x32xf32, #tpu.memory_space<vmem>>, %arg6: memref<32x32xf32, #tpu.memory_space<vmem>>) attributes {dimension_semantics = [#tpu.dimension_semantics<parallel>, #tpu.dimension_semantics<arbitrary>], iteration_bounds = array<i64: 1, 1>, scalar_prefetch = 0 : i64, scratch_operands = 1 : i64, tpu.core_type = #tpu.core_type<tc>, window_params = [{transform_indices = @transform_0, window_bounds = array<i64: 32, 32>}, {transform_indices = @transform_1, window_bounds = array<i64: 32, 32>}, {pipeline_mode = #tpu.pipeline_mode<synchronous>, transform_indices = @transform_2, window_bounds = array<i64: 1, 32>}, {transform_indices = @transform_3, window_bounds = array<i64: 32, 32>}]} {
    %c0_i32 = arith.constant 0 : i32
    %0 = arith.cmpi eq, %arg1, %c0_i32 : i32
    %1 = arith.extui %0 : i1 to i32
    %c0_i32_0 = arith.constant 0 : i32
    %2 = arith.cmpi ne, %1, %c0_i32_0 : i32
    scf.if %2 {
      %c0_6 = arith.constant 0 : index
      %c0_7 = arith.constant 0 : index
      %7 = vector.load %arg2[%c0_6, %c0_7] : memref<32x32xf32, #tpu.memory_space<vmem>>, vector<32x32xf32>
      %c0_8 = arith.constant 0 : index
      %c0_9 = arith.constant 0 : index
      %8 = vector.load %arg4[%c0_8, %c0_9] : memref<1x32xf32, #tpu.memory_space<vmem>>, vector<1x32xf32>
      %9 = vector.broadcast %8 : vector<1x32xf32> to vector<32x32xf32>
      %10 = arith.mulf %7, %9 : vector<32x32xf32>
      %c0_10 = arith.constant 0 : index
      %c0_11 = arith.constant 0 : index
      %11 = vector.load %arg6[%c0_10, %c0_11] : memref<32x32xf32, #tpu.memory_space<vmem>>, vector<32x32xf32>
      tpu.vector_store %arg6[%c0_10, %c0_11], %10 {strides = array<i32>} : memref<32x32xf32, #tpu.memory_space<vmem>>, vector<32x32xf32>,
    } else {
    }
    %c0 = arith.constant 0 : index
    %c0_1 = arith.constant 0 : index
    %3 = vector.load %arg6[%c0, %c0_1] : memref<32x32xf32, #tpu.memory_space<vmem>>, vector<32x32xf32>
    %c0_2 = arith.constant 0 : index
    %c0_3 = arith.constant 0 : index
    %4 = vector.load %arg3[%c0_2, %c0_3] : memref<32x32xf32, #tpu.memory_space<vmem>>, vector<32x32xf32>
    %cst = arith.constant dense<0.000000e+00> : vector<32x32xf32>
    %5 = tpu.matmul %3, %4, %cst {dimension_numbers = #tpu.dot_dimension_numbers<[1], [1], [0], [0], [0, 0, 1, 0], [], []>} : vector<32x32xf32>, vector<32x32xf32>, vector<32x32xf32> -> vector<32x32xf32>
    %c0_4 = arith.constant 0 : index
    %c0_5 = arith.constant 0 : index
    %6 = vector.load %arg5[%c0_4, %c0_5] : memref<32x32xf32, #tpu.memory_space<vmem>>, vector<32x32xf32>
    tpu.vector_store %arg5[%c0_4, %c0_5], %5 {strides = array<i32>} : memref<32x32xf32, #tpu.memory_space<vmem>>, vector<32x32xf32>,
    return
  }
  func.func @transform_0(%arg0: i32, %arg1: i32) -> (i32, i32) {
    %c0_i32 = arith.constant 0 : i32
    %c0_i32_0 = arith.constant 0 : i32
    return %arg0, %c0_i32 : i32, i32
  }
  func.func @transform_1(%arg0: i32, %arg1: i32) -> (i32, i32) {
    %c0_i32 = arith.constant 0 : i32
    %c0_i32_0 = arith.constant 0 : i32
    return %arg1, %c0_i32 : i32, i32
  }
  func.func @transform_2(%arg0: i32, %arg1: i32) -> (i32, i32) {
    %c0_i32 = arith.constant 0 : i32
    %c0_i32_0 = arith.constant 0 : i32
    %c0_i32_1 = arith.constant 0 : i32
    return %c0_i32, %c0_i32_0 : i32, i32
  }
  func.func @transform_3(%arg0: i32, %arg1: i32) -> (i32, i32) {
    %c0_i32 = arith.constant 0 : i32
    return %arg0, %arg1 : i32, i32
  }
}

module attributes {stable_mosaic.version = 11 : i64} {
  func.func @_aba_kernel(%arg0: i32, %arg1: i32, %arg2: memref<32x32xf32, #tpu.memory_space<vmem>>, %arg3: memref<32x32xf32, #tpu.memory_space<vmem>>, %arg4: memref<32x32xf32, #tpu.memory_space<vmem>>, %arg5: memref<32x32xf32, #tpu.memory_space<vmem>>) attributes {dimension_semantics = [#tpu.dimension_semantics<parallel>, #tpu.dimension_semantics<arbitrary>], iteration_bounds = array<i64: 1, 1>, scalar_prefetch = 0 : i64, scratch_operands = 0 : i64, tpu.core_type = #tpu.core_type<tc>, window_params = [{transform_indices = @transform_0, window_bounds = array<i64: 32, 32>}, {transform_indices = @transform_1, window_bounds = array<i64: 32, 32>}, {transform_indices = @transform_2, window_bounds = array<i64: 32, 32>}, {transform_indices = @transform_3, window_bounds = array<i64: 32, 32>}]} {
    %c0_i32 = arith.constant 0 : i32
    %0 = arith.cmpi eq, %arg1, %c0_i32 : i32
    %1 = arith.extui %0 : i1 to i32
    %c0_i32_0 = arith.constant 0 : i32
    %2 = arith.cmpi ne, %1, %c0_i32_0 : i32
    scf.if %2 {
      %cst_11 = arith.constant 0.000000e+00 : f32
      %11 = vector.broadcast %cst_11 : f32 to vector<32x32xf32>
      %c0_12 = arith.constant 0 : index
      %c0_13 = arith.constant 0 : index
      %12 = vector.load %arg5[%c0_12, %c0_13] : memref<32x32xf32, #tpu.memory_space<vmem>>, vector<32x32xf32>
      tpu.vector_store %arg5[%c0_12, %c0_13], %11 {strides = array<i32>} : memref<32x32xf32, #tpu.memory_space<vmem>>, vector<32x32xf32>,
    } else {
    }
    %c0 = arith.constant 0 : index
    %c0_1 = arith.constant 0 : index
    %3 = vector.load %arg3[%c0, %c0_1] : memref<32x32xf32, #tpu.memory_space<vmem>>, vector<32x32xf32>
    %c0_2 = arith.constant 0 : index
    %c0_3 = arith.constant 0 : index
    %4 = vector.load %arg2[%c0_2, %c0_3] : memref<32x32xf32, #tpu.memory_space<vmem>>, vector<32x32xf32>
    %cst = arith.constant dense<0.000000e+00> : vector<32x32xf32>
    %5 = tpu.matmul %3, %4, %cst {dimension_numbers = #tpu.dot_dimension_numbers<[1], [0], [0], [1], [0, 0, 1, 1], [], []>} : vector<32x32xf32>, vector<32x32xf32>, vector<32x32xf32> -> vector<32x32xf32>
    %c0_4 = arith.constant 0 : index
    %c0_5 = arith.constant 0 : index
    %6 = vector.load %arg5[%c0_4, %c0_5] : memref<32x32xf32, #tpu.memory_space<vmem>>, vector<32x32xf32>
    %c0_6 = arith.constant 0 : index
    %c0_7 = arith.constant 0 : index
    %7 = vector.load %arg4[%c0_6, %c0_7] : memref<32x32xf32, #tpu.memory_space<vmem>>, vector<32x32xf32>
    %cst_8 = arith.constant dense<0.000000e+00> : vector<32x32xf32>
    %8 = tpu.matmul %7, %5, %cst_8 {dimension_numbers = #tpu.dot_dimension_numbers<[1], [0], [0], [1], [0, 0, 1, 1], [], []>} : vector<32x32xf32>, vector<32x32xf32>, vector<32x32xf32> -> vector<32x32xf32>
    %9 = arith.addf %6, %8 : vector<32x32xf32>
    %c0_9 = arith.constant 0 : index
    %c0_10 = arith.constant 0 : index
    %10 = vector.load %arg5[%c0_9, %c0_10] : memref<32x32xf32, #tpu.memory_space<vmem>>, vector<32x32xf32>
    tpu.vector_store %arg5[%c0_9, %c0_10], %9 {strides = array<i32>} : memref<32x32xf32, #tpu.memory_space<vmem>>, vector<32x32xf32>,
    return
  }
  func.func @transform_0(%arg0: i32, %arg1: i32) -> (i32, i32) {
    %c0_i32 = arith.constant 0 : i32
    %c0_i32_0 = arith.constant 0 : i32
    return %c0_i32, %arg0 : i32, i32
  }
  func.func @transform_1(%arg0: i32, %arg1: i32) -> (i32, i32) {
    %c0_i32 = arith.constant 0 : i32
    %c0_i32_0 = arith.constant 0 : i32
    return %arg1, %c0_i32 : i32, i32
  }
  func.func @transform_2(%arg0: i32, %arg1: i32) -> (i32, i32) {
    %c0_i32 = arith.constant 0 : i32
    %c0_i32_0 = arith.constant 0 : i32
    return %c0_i32, %arg1 : i32, i32
  }
  func.func @transform_3(%arg0: i32, %arg1: i32) -> (i32, i32) {
    %c0_i32 = arith.constant 0 : i32
    %c0_i32_0 = arith.constant 0 : i32
    return %c0_i32, %arg0 : i32, i32
  }
}

</mosaic_0001>

<bundles_post_ra>
// kernel: custom-call.2
= control target key start
LH: loop header
LB: loop body
LE: loop exit
PB: predicated region body
PF: predicated region fallthrough
CT: control target
= control target key end

     0   :  { %s3478_s0 = inlined_call_operand.vmem [shape: f32[16,16], index: 0, kind: input, shape index: {}]   ;;  %s3479_s1 = inlined_call_operand.vmem [shape: f32[16,16], index: 1, kind: input, shape index: {}]   ;;  %s3480_s2 = inlined_call_operand.vmem [shape: f32[16,16], index: 2, kind: input, shape index: {}]   ;;  %s3481_s3 = inlined_call_operand.vmem [shape: f32[16,16], index: 3, kind: input, shape index: {}]   ;;  %s3482_s4 = inlined_call_operand.vmem [shape: f32[16], index: 4, kind: output, shape index: {0}]   ;;  %s3483_s5 = inlined_call_operand.vmem [shape: f32[16], index: 5, kind: output, shape index: {1}]   ;;  %s3484_s6 = inlined_call_operand.vmem [shape: f32[16,16], index: 6, kind: output, shape index: {2}]   ;;  %s3485_s7 = inlined_call_operand.vmem [shape: f32[16,16], index: 7, kind: output, shape index: {3}]   ;;  %s3486_s8 = inlined_call_operand.vmem [shape: f32[16,16], index: 8, kind: output, shape index: {4}]   ;;  %s3487_s9 = inlined_call_operand.vmem [shape: f32[16,16], index: 9, kind: output, shape index: {5}]  }
   0x1   :  { %s24_s11 = scalar_lea.vmem %s3478_s0, 8 }
   0x2   :  { %p1741_p0 = scmp.gt.s32.totalorder %s3478_s0, %s24_s11 }
   0x3   :  { %s2918_s14 = smov (!%p1741_p0), [#allocation0]   ;;  %s2922_s17 = smov (!%p1741_p0), %s3478_s0  }
   0x4   :  { %1742 = sbr.rel (%p1741_p0) target bundleno = 21 (0x15), region = 421 }
   0xb LB: > { %v58_v0 = vld [vmem:[%s2924_s17] sm:$0xff]  ;;  %s60_s17 = scalar_lea.vmem %s2924_s17, 8   ;;  %s2924_s17 = sphi %s2922_s17, %s60_s17   ;;  %s2920_s14 = sphi %s2918_s14, %s61_s14  }
   0xc   : > { %59 = vst [vmem:[%s2920_s14] sm:$0xff] %v58_v0  ;;  %s61_s14 = scalar_lea.vmem %s2920_s14, 8   ;;  %p55_p1 = scmp.gt.s32.totalorder %s60_s17, %s24_s11 }
   0xe   :  { %57 = sbr.rel (!%p55_p1) target bundleno = 11 (0xb), region = 427 }
  0x15 PF:  { %s86_s20 = scalar_lea.vmem %s3479_s1, 8 }
  0x16   :  { %p1761_p2 = scmp.gt.s32.totalorder %s3479_s1, %s86_s20 }
  0x17   :  { %s2926_s0 = smov (!%p1761_p2), [#allocation1]   ;;  %s2930_s25 = smov (!%p1761_p2), %s3479_s1  }
  0x18   :  { %1762 = sbr.rel (%p1761_p2) target bundleno = 41 (0x29), region = 443 }
  0x1f LB: > { %v120_v1 = vld [vmem:[%s2932_s25] sm:$0xff]  ;;  %s122_s25 = scalar_lea.vmem %s2932_s25, 8   ;;  %s2932_s25 = sphi %s2930_s25, %s122_s25   ;;  %s2928_s0 = sphi %s2926_s0, %s123_s0  }
  0x20   : > { %121 = vst [vmem:[%s2928_s0] sm:$0xff] %v120_v1  ;;  %s123_s0 = scalar_lea.vmem %s2928_s0, 8   ;;  %p117_p3 = scmp.gt.s32.totalorder %s122_s25, %s86_s20 }
  0x22   :  { %119 = sbr.rel (!%p117_p3) target bundleno = 31 (0x1f), region = 449 }
  0x29 PF:  { %s148_s28 = scalar_lea.vmem %s3480_s2, 8 }
  0x2a   :  { %p1781_p4 = scmp.gt.s32.totalorder %s3480_s2, %s148_s28 }
  0x2b   :  { %s2934_s1 = smov (!%p1781_p4), [#allocation2]   ;;  %s2938_s12 = smov (!%p1781_p4), %s3480_s2  }
  0x2c   :  { %1782 = sbr.rel (%p1781_p4) target bundleno = 61 (0x3d), region = 465 }
  0x33 LB: > { %v182_v2 = vld [vmem:[%s2940_s12] sm:$0xff]  ;;  %s184_s12 = scalar_lea.vmem %s2940_s12, 8   ;;  %s2940_s12 = sphi %s2938_s12, %s184_s12   ;;  %s2936_s1 = sphi %s2934_s1, %s185_s1  }
  0x34   : > { %183 = vst [vmem:[%s2936_s1] sm:$0xff] %v182_v2  ;;  %s185_s1 = scalar_lea.vmem %s2936_s1, 8   ;;  %p179_p5 = scmp.gt.s32.totalorder %s184_s12, %s148_s28 }
  0x36   :  { %181 = sbr.rel (!%p179_p5) target bundleno = 51 (0x33), region = 471 }
  0x3d PF:  { %s210_s15 = scalar_lea.vmem %s3481_s3, 8 }
  0x3e   :  { %p1801_p6 = scmp.gt.s32.totalorder %s3481_s3, %s210_s15 }
  0x3f   :  { %s2942_s2 = smov (!%p1801_p6), [#allocation3]   ;;  %s2946_s20 = smov (!%p1801_p6), %s3481_s3  }
  0x40   :  { %1802 = sbr.rel (%p1801_p6) target bundleno = 81 (0x51), region = 487 }
  0x47 LB: > { %v244_v3 = vld [vmem:[%s2948_s20] sm:$0xff]  ;;  %s246_s20 = scalar_lea.vmem %s2948_s20, 8   ;;  %s2948_s20 = sphi %s2946_s20, %s246_s20   ;;  %s2944_s2 = sphi %s2942_s2, %s247_s2  }
  0x48   : > { %245 = vst [vmem:[%s2944_s2] sm:$0xff] %v244_v3  ;;  %s247_s2 = scalar_lea.vmem %s2944_s2, 8   ;;  %p241_p7 = scmp.gt.s32.totalorder %s246_s20, %s210_s15 }
  0x4a   :  { %243 = sbr.rel (!%p241_p7) target bundleno = 71 (0x47), region = 493 }
  0x51 PF:  { %s259_s21 = smov [#allocation12]  ;;  %v260_v4 = vld [vmem:[#allocation0] sm:$0xff]  ;;  %v264_v5 = vld [vmem:[#allocation0 + $0x8] sm:$0xff]  ;;  %s266_s22 = smov [#allocation13]  ;;  %v267_v6 = vld [vmem:[#allocation1] sm:$0xff]  ;;  %v300_v7 = vlaneseq  ;;  %v2990_v11 = vmov 0.0  }
  0x52   :  { %261 = vst [vmem:[%s259_s21] sm:$0xff] %v260_v4  ;;  %2066 = vst [vmem:[%s259_s21 + $0x8] sm:$0xff] %v264_v5  ;;  %v271_v8 = vld [vmem:[#allocation1 + $0x8] sm:$0xff]  ;;  %s273_s3 = smov [#allocation14]  ;;  %v274_v9 = vld [vmem:[#allocation2] sm:$0xff]  ;;  %s280_s0 = smov [#allocation15] }
  0x53   :  { %268 = vst [vmem:[%s266_s22] sm:$0xff] %v267_v6  ;;  %v278_v10 = vld [vmem:[#allocation2 + $0x8] sm:$0xff]  ;;  %287 = vst [vmem:[#allocation8] sm:$0xff] %v2990_v11  ;;  %v281_v12 = vld [vmem:[#allocation3] sm:$0xff]  ;;  %v3079_v14 = vand.u32 127, %v300_v7  ;;  %v3081_v15 = vshrl.u32 %v300_v7, 7  ;;  %s299_s23 = smov [#allocation8] }
  0x54   :  { %289 = vst [vmem:[#allocation8 + $0x8] sm:$0xff] %v2990_v11  ;;  %290 = vst [vmem:[#allocation9] sm:$0xff] %v2990_v11  ;;  %v285_v13 = vld [vmem:[#allocation3 + $0x8] sm:$0xff]  ;;  %s319_s24 = smov [#allocation11]  ;;  %s1819_s25 = smov [#allocation12] }
  0x55   :  { %292 = vst [vmem:[#allocation9 + $0x8] sm:$0xff] %v2990_v11  ;;  %293 = vst [vmem:[#allocation10] sm:$0xff] %v2990_v11  ;;  %v302_v14 = vmov %v3079_v14  ;;  %v305_v15 = vmov %v3081_v15  ;;  %vm1823_vm4 = vcmp.lt.s32.totalorder %v3079_v14, 16  ;;  %s1845_s26 = smov [#allocation13]  ;;  %s1868_s27 = smov [#allocation14] }
  0x56   :  { %295 = vst [vmem:[#allocation10 + $0x8] sm:$0xff] %v2990_v11  ;;  %296 = vst [vmem:[#allocation11] sm:$0xff] %v2990_v11  ;;  %v322_v14 = vmov %v3079_v14  ;;  %v325_v15 = vmov %v3081_v15  ;;  %v315_v16 = vadd.s32 8, %v305_v15  ;;  %vm309_vm0 = vcmp.eq.s32.totalorder %v305_v15, %v302_v14  ;;  %s1891_s28 = smov [#allocation15] }
  0x57   :  { %298 = vst [vmem:[#allocation11 + $0x8] sm:$0xff] %v2990_v11  ;;  %2067 = vst [vmem:[%s266_s22 + $0x8] sm:$0xff] %v271_v8  ;;  %v335_v17 = vadd.s32 8, %v325_v15  ;;  %vm329_vm1 = vcmp.eq.s32.totalorder %v325_v15, %v322_v14  ;;  %v1818_v15 = vmov %v3081_v15 }
  0x58   :  { %275 = vst [vmem:[%s273_s3] sm:$0xff] %v274_v9  ;;  %2068 = vst [vmem:[%s273_s3 + $0x8] sm:$0xff] %v278_v10  ;;  %vm316_vm2 = vcmp.eq.s32.totalorder %v315_v16, %v302_v14  ;;  %v1834_v34 = vadd.s32 8, %v1818_v15 }
  0x59   :  { %282 = vst [vmem:[%s280_s0] sm:$0xff] %v281_v12  ;;  %2069 = vst [vmem:[%s280_s0 + $0x8] sm:$0xff] %v285_v13  ;;  %vm336_vm3 = vcmp.eq.s32.totalorder %v335_v17, %v322_v14  ;;  %v1815_v14 = vmov %v3079_v14  ;;  %v1825_v26 = vld [vmem:[%s1819_s25] sm:$0xff]  ;;  %v2074_v27 = vld [vmem:[%s1819_s25 + $0x8] sm:$0xff] }
  0x5a   :  { %vm1828_vm5 = vcmp.eq.s32.totalorder %v1818_v15, %v1815_v14  ;;  %v1841_v14 = vmov %v3079_v14  ;;  %v1826_v29 = vsel %vm1823_vm4, %v1825_v26, 0.0  ;;  %v1832_v30 = vsel %vm1823_vm4, %v2074_v27, 0.0 }
  0x5b   :  { %v306_v18 = vld [vmem:[%s299_s23] sm:$0xff]  ;;  %v2070_v19 = vld [vmem:[%s299_s23 + $0x8] sm:$0xff]  ;;  %v1827_v35 = vmul.f32 %v1826_v29, %v1826_v29  ;;  %v1833_v36 = vmul.f32 %v1832_v30, %v1832_v30  ;;  %vm1835_vm6 = vcmp.eq.s32.totalorder %v1834_v34, %v1815_v14  ;;  %v1890_v15 = vmov %v3081_v15 }
  0x5c   :  { %v310_v21 = vsel %vm309_vm0, 1.0, %v306_v18  ;;  %v317_v22 = vsel %vm316_vm2, 1.0, %v2070_v19  ;;  %v1844_v15 = vmov %v3081_v15  ;;  %v1864_v14 = vmov %v3079_v14 }
  0x5d   :  { %311 = vst [vmem:[%s299_s23] sm:$0xff] %v310_v21  ;;  %2071 = vst [vmem:[%s299_s23 + $0x8] sm:$0xff] %v317_v22  ;;  %v1838_v41 = vadd.f32 %v1833_v36, %v1827_v35  ;;  %v1829_v45 = vsel %vm1828_vm5, 0.0, %v1827_v35  ;;  %v1836_v49 = vsel %vm1835_vm6, 0.0, %v1833_v36  ;;  %v1887_v14 = vmov %v3079_v14 }
  0x5e   :  { %v326_v20 = vld [vmem:[%s319_s24] sm:$0xff]  ;;  %v2072_v24 = vld [vmem:[%s319_s24 + $0x8] sm:$0xff]  ;;  %v1837_v51 = vadd.f32 %v1836_v49, %v1829_v45  ;;  %v1867_v15 = vmov %v3081_v15  ;;  %v1908_v56 = vadd.s32 8, %v1890_v15  ;;  %vm1900_vm7 = vcmp.eq.s32.totalorder %v1890_v15, %v1887_v14 }
  0x5f   :  { %v330_v23 = vsel %vm329_vm1, 1.0, %v326_v20  ;;  %v337_v25 = vsel %vm336_vm3, 1.0, %v2072_v24  ;;  %v1851_v28 = vld [vmem:[%s1845_s26] sm:$0xff]  ;;  %v2075_v32 = vld [vmem:[%s1845_s26 + $0x8] sm:$0xff] }
  0x60   :  { %331 = vst [vmem:[%s319_s24] sm:$0xff] %v330_v23  ;;  %2073 = vst [vmem:[%s319_s24 + $0x8] sm:$0xff] %v337_v25  ;;  %v1852_v31 = vsel %vm1823_vm4, %v1851_v28, 0.0  ;;  %v1874_v33 = vld [vmem:[%s1868_s27] sm:$0xff]  ;;  %v1858_v38 = vsel %vm1823_vm4, %v2075_v32, 0.0  ;;  %v2076_v39 = vld [vmem:[%s1868_s27 + $0x8] sm:$0xff]  ;;  %vm1909_vm8 = vcmp.eq.s32.totalorder %v1908_v56, %v1887_v14 }
  0x61   :  { %v1853_v37 = vmul.f32 %v1852_v31, %v1852_v31  ;;  %v1875_v40 = vsel %vm1823_vm4, %v1874_v33, 0.0  ;;  %v1859_v42 = vmul.f32 %v1858_v38, %v1858_v38  ;;  %v1897_v43 = vld [vmem:[%s1891_s28] sm:$0xff]  ;;  %v1881_v44 = vsel %vm1823_vm4, %v2076_v39, 0.0  ;;  %v2077_v48 = vld [vmem:[%s1891_s28 + $0x8] sm:$0xff] }
  0x62   :  { %v1876_v47 = vmul.f32 %v1875_v40, %v1875_v40  ;;  %v1898_v50 = vsel %vm1823_vm4, %v1897_v43, 0.0  ;;  %v1882_v53 = vmul.f32 %v1881_v44, %v1881_v44  ;;  %v1906_v54 = vsel %vm1823_vm4, %v2077_v48, 0.0 }
  0x63   :  { %v1855_v46 = vadd.f32 %v1853_v37, %v1838_v41  ;;  %v1854_v55 = vadd.f32 %v1853_v37, %v1837_v51  ;;  %v1899_v58 = vmul.f32 %v1898_v50, %v1898_v50  ;;  %v1907_v61 = vmul.f32 %v1906_v54, %v1906_v54 }
  0x65   :  { %v1861_v52 = vadd.f32 %v1859_v42, %v1855_v46  ;;  %v1860_v59 = vadd.f32 %v1859_v42, %v1854_v55  ;;  %v1901_v0 = vsel %vm1900_vm7, 0.0, %v1899_v58  ;;  %v1910_v3 = vsel %vm1909_vm8, 0.0, %v1907_v61 }
  0x67   :  { %v1878_v57 = vadd.f32 %v1876_v47, %v1861_v52  ;;  %v1877_v62 = vadd.f32 %v1876_v47, %v1860_v59 }
  0x69   :  { %v1884_v60 = vadd.f32 %v1882_v53, %v1878_v57  ;;  %v1883_v1 = vadd.f32 %v1882_v53, %v1877_v62 }
  0x6b   :  { %v1903_v63 = vadd.f32 %v1899_v58, %v1884_v60  ;;  %v1902_v4 = vadd.f32 %v1901_v0, %v1883_v1 }
  0x6d   :  { %v1912_v2 = vadd.f32 %v1907_v61, %v1903_v63  ;;  %v1911_v5 = vadd.f32 %v1910_v3, %v1902_v4 }
  0x6f   :  { %1913 = vadd.xlane.f32.xlu0 %v1912_v2 }
  0x73   :  { %1921 = vadd.xlane.f32.xlu0 %v1911_v5 }
  0xfc   :  { %v1914_v6 = vpop.xlane.xlu0 %1913 }
  0xfd   :  { %v1915_v7 = vrot.slane %v1914_v6, 4 }
  0xff   :  { %v1916_v8 = vadd.f32 %v1915_v7, %v1914_v6 }
 0x100   :  { %v1922_v9 = vpop.xlane.xlu0 %1921 }
 0x101   :  { %v1917_v10 = vrot.slane %v1916_v8, 2  ;;  %v1923_v11 = vrot.slane %v1922_v9, 4 }
 0x103   :  { %v1924_v12 = vadd.f32 %v1923_v11, %v1922_v9  ;;  %v1918_v13 = vadd.f32 %v1917_v10, %v1916_v8 }
 0x105   :  { %v1925_v16 = vrot.slane %v1924_v12, 2  ;;  %v1919_v18 = vrot.slane %v1918_v13, 1 }
 0x107   :  { %v1926_v17 = vadd.f32 %v1925_v16, %v1924_v12  ;;  %v1920_v21 = vadd.f32 %v1919_v18, %v1918_v13 }
 0x109   :  { %v1927_v19 = vrot.slane %v1926_v17, 1 }
 0x10b   :  { %v1928_v20 = vadd.f32 %v1927_v19, %v1926_v17 }
 0x10d   :  { %2199 = vpush %v1928_v20 }
 0x10e   :  { %2201 = vpush %v1920_v21 }
 0x13e   :  { %s2200_s29 = spop %2199 }
 0x13f   :  { %s2202_s30 = spop %2201 }
 0x140   :  { %s1931_s1 = smul.f32 1e-10, %s2202_s30 }
 0x142   :  { %p1932_p8 = scmp.le.f32.partialorder %s2200_s29, %s1931_s1 }
 0x143   :  { %s3113_s10 = smov (!%p1932_p8), 0  }
 0x144   :  { %1935 = sbr.rel (%p1932_p8) target bundleno = 1051 (0x41b), region = 509 }
 0x14b LB: > { %s3118_s11 = smov 0   ;;  %s2952_s10 = sphi %s3113_s10, %s3488_s10  }
 0x14c LB: >> { %s475_s12 = smov [#allocation12]  ;;  %v479_v14 = vmov %v3079_v14  ;;  %v482_v15 = vmov %v3081_v15  ;;  %s501_s13 = smov [#allocation13]  ;;  %vm1008_vm8 = vcmp.eq.s32.totalorder %v3081_v15, 0  ;;  %s2956_s11 = sphi %s3118_s11, %s474_s11  }
 0x14d   : >> { %v505_v14 = vmov %v3079_v14  ;;  %v508_v15 = vmov %v3081_v15  ;;  %v483_v22 = vld [vmem:[%s475_s12] sm:$0xff]  ;;  %vm486_vm9 = vcmp.eq.s32.totalorder %v482_v15, %v479_v14  ;;  %v2078_v23 = vld [vmem:[%s475_s12 + $0x8] sm:$0xff]  ;;  %v491_v24 = vadd.s32 8, %v482_v15  ;;  %s527_s14 = smov [#allocation15]  ;;  %s476_s15 = smov [#allocation16] }
 0x14e   : >> { %vm512_vm10 = vcmp.eq.s32.totalorder %v508_v15, %v505_v14  ;;  %v517_v25 = vadd.s32 8, %v508_v15  ;;  %v487_v26 = vsel %vm486_vm9, %v483_v22, 0.0  ;;  %v509_v27 = vld [vmem:[%s501_s13] sm:$0xff]  ;;  %v2079_v28 = vld [vmem:[%s501_s13 + $0x8] sm:$0xff]  ;;  %v531_v14 = vmov %v3079_v14  ;;  %s502_s16 = smov [#allocation17]  ;;  %s528_s17 = smov [#allocation18] }
 0x14f   : >> { %v534_v15 = vmov %v3081_v15  ;;  %vm492_vm11 = vcmp.eq.s32.totalorder %v491_v24, %v479_v14  ;;  %v513_v29 = vsel %vm512_vm10, %v509_v27, 0.0  ;;  %v535_v30 = vld [vmem:[%s527_s14] sm:$0xff]  ;;  %v2080_v34 = vld [vmem:[%s527_s14 + $0x8] sm:$0xff]  ;;  %s557_s2 = smov [#allocation17]  ;;  %s555_s18 = smov [#allocation16]  ;;  %vm1032_vm9 = vcmp.eq.s32.totalorder %v3081_v15, 7 }
 0x150   : >> { %vm518_vm12 = vcmp.eq.s32.totalorder %v517_v25, %v505_v14  ;;  %vm538_vm13 = vcmp.eq.s32.totalorder %v534_v15, %v531_v14  ;;  %v493_v31 = vsel %vm492_vm11, %v2078_v23, %v487_v26  ;;  %v543_v35 = vadd.s32 8, %v534_v15  ;;  %s559_s19 = smov [#allocation18]  ;;  %s594_s20 = smov [#allocation19] }
 0x151   : >> { %v519_v32 = vsel %vm518_vm12, %v2079_v28, %v513_v29  ;;  %v539_v33 = vsel %vm538_vm13, %v535_v30, 0.0  ;;  %v494_v36 = vrot.slane %v493_v31, 4  ;;  %s596_s21 = smov [#allocation20]  ;;  %s553_s22 = smov [#allocation21]  ;;  %v624_v15 = vmov %v3081_v15 }
 0x152   : >> { %v520_v37 = vrot.slane %v519_v32, 4  ;;  %vm544_vm14 = vcmp.eq.s32.totalorder %v543_v35, %v531_v14  ;;  %s554_s3 = smov [#allocation22]  ;;  %s598_s22 = smov %s553_s22  ;;  %v655_v15 = vmov %v3081_v15  ;;  %v625_v24 = vadd.s32 8, %v624_v15 }
 0x153   : >> { %v495_v38 = vadd.f32 %v494_v36, %v493_v31  ;;  %v545_v40 = vsel %vm544_vm14, %v2080_v34, %v539_v33  ;;  %s600_s3 = smov %s554_s3  ;;  %v606_v14 = vmov %v3079_v14  ;;  %v609_v15 = vmov %v3081_v15  ;;  %s602_s0 = smov [#allocation21] }
 0x154   : >> { %v521_v39 = vadd.f32 %v520_v37, %v519_v32  ;;  %v546_v41 = vrot.slane %v545_v40, 4  ;;  %v621_v14 = vmov %v3079_v14  ;;  %v656_v25 = vadd.s32 8, %v655_v15  ;;  %s617_s23 = smov [#allocation21]  ;;  %s633_s24 = smov [#allocation22] }
 0x155   : >> { %v496_v42 = vrot.slane %v495_v38, 2  ;;  %v637_v14 = vmov %v3079_v14  ;;  %v640_v15 = vmov %v3081_v15  ;;  %vm611_vm3 = vcmp.eq.s32.totalorder %v609_v15, %v606_v14  ;;  %s648_s25 = smov [#allocation22]  ;;  %s615_s26 = smov [#allocation23] }
 0x156   : >> { %v522_v43 = vrot.slane %v521_v39, 2  ;;  %v547_v44 = vadd.f32 %v546_v41, %v545_v40  ;;  %v652_v14 = vmov %v3079_v14  ;;  %vm626_vm5 = vcmp.eq.s32.totalorder %v625_v24, %v621_v14  ;;  %s630_s27 = smov [#allocation23]  ;;  %s664_s28 = smov [#allocation23] }
 0x157   : >> { %v497_v45 = vadd.f32 %v496_v42, %v495_v38  ;;  %vm642_vm6 = vcmp.eq.s32.totalorder %v640_v15, %v637_v14  ;;  %vm657_vm7 = vcmp.eq.s32.totalorder %v656_v25, %v652_v14  ;;  %s646_s29 = smov [#allocation24]  ;;  %s3137_s30 = smov [#allocation12]  ;;  %v811_v15 = vmov %v3081_v15 }
 0x158   : >> { %v523_v46 = vadd.f32 %v522_v43, %v521_v39  ;;  %v548_v47 = vrot.slane %v547_v44, 2  ;;  %s661_s1 = smov [#allocation24]  ;;  %s3139_s12 = smov [#allocation13]  ;;  %v672_v38 = vld [vmem:[%s3137_s30] sm:$0xff]  ;;  %v789_v15 = vmov %v3081_v15  ;;  %v808_v14 = vmov %v3079_v14 }
 0x159   : >> { %v498_v48 = vrot.slane %v497_v45, 1  ;;  %s3141_s13 = smov [#allocation14]  ;;  %s3143_s14 = smov [#allocation15]  ;;  %v673_v39 = vld [vmem:[%s3139_s12] sm:$0xff]  ;;  %v831_v15 = vmov %v3081_v15  ;;  %v786_v14 = vmov %v3079_v14  ;;  %vm815_vm10 = vcmp.eq.s32.totalorder %v811_v15, %v808_v14 }
 0x15a   : >> { %v524_v49 = vrot.slane %v523_v46, 1  ;;  %v549_v50 = vadd.f32 %v548_v47, %v547_v44  ;;  %v674_v40 = vld [vmem:[%s3141_s13] sm:$0xff]  ;;  %v852_v15 = vmov %v3081_v15  ;;  %v828_v14 = vmov %v3079_v14  ;;  %s474_s11 = sadd.s32 1, %s2956_s11  }
 0x15b   : >> { %v499_v51 = vadd.f32 %v498_v48, %v497_v45  ;;  %v675_v41 = vld [vmem:[%s3143_s14] sm:$0xff]  ;;  %v849_v14 = vmov %v3079_v14  ;;  %vm794_vm12 = vcmp.eq.s32.totalorder %v789_v15, %v786_v14  ;;  %vm835_vm14 = vcmp.eq.s32.totalorder %v831_v15, %v828_v14  ;;  %p471_p9 = scmp.ge.s32.totalorder %s474_s11, 31  }
 0x15c   : >> { %v525_v52 = vadd.f32 %v524_v49, %v523_v46  ;;  %v550_v53 = vrot.slane %v549_v50, 1  ;;  %s422_s11 = smov (%p471_p9), [#allocation15] }
 0x15d   : >> { %500 = vst [vmem:[%s476_s15] sm:$0x1] %v499_v51  ;;  %s1088_s15 = smov [#allocation23] }
 0x15e   : >> { %526 = vst [vmem:[%s502_s16] sm:$0x1] %v525_v52  ;;  %v551_v54 = vadd.f32 %v550_v53, %v549_v50  ;;  %s3145_s16 = smov [#allocation8] }
 0x15f   : >> { %v1096_v42 = vld [vmem:[%s3145_s16] sm:$0xff] }
 0x160   : >> { %552 = vst [vmem:[%s528_s17] sm:$0x1] %v551_v54  ;;  %s3147_s17 = smov [#allocation9] }
 0x161   : >> { %v1097_v43 = vld [vmem:[%s3147_s17] sm:$0xff] }
 0x164   : >> { %v556_v57 = vld [vmem:[%s555_s18] sm:$0xff]  ;;  %s3152_s18 = smov [#allocation11] }
 0x165   : >> { %v558_v55 = vld [vmem:[%s557_s2] sm:$0xff]  ;;  %v579_v6 = vand.u32 2147483647, %v556_v57  ;;  %s3150_s2 = smov [#allocation10] }
 0x166   : >> { %v562_v56 = vmul.f32 2.0, %v558_v55  ;;  %v580_v11 = vand.u32 2147483647, %v558_v55  ;;  %v1098_v45 = vld [vmem:[%s3150_s2] sm:$0xff] }
 0x167   : >> { %v560_v58 = vld [vmem:[%s559_s19] sm:$0xff]  ;;  %s666_s19 = smov [#allocation24] }
 0x168   : >> { %2678 = vrcp.f32 %v562_v56  ;;  %v561_v59 = vsub.f32 %v560_v58, %v556_v57  ;;  %v581_v7 = vand.u32 2147483647, %v560_v58  ;;  %v1099_v46 = vld [vmem:[%s3152_s18] sm:$0xff] }
 0x16a   : >> { %v582_v10 = vmin.f32 %v579_v6, %v581_v7 }
 0x16c   : >> { %v583_v12 = vmul.f32 1.1920929e-08, %v582_v10 }
 0x16e   : >> { %vm584_vm2 = vcmp.le.f32.partialorder %v580_v11, %v583_v12 }
 0x172   : >> { %v2679_v60 = vpop.eup %2678 }
 0x173   : >> { %v564_v61 = vmul.f32 %v2679_v60, %v561_v59 }
 0x175   : >> { %v566_v62 = vmul.f32 %v564_v61, %v564_v61  ;;  %vm565_vm1 = vcmp.ge.f32.partialorder %v564_v61, 0.0 }
 0x177   : >> { %v567_v63 = vadd.f32 1.0, %v566_v62 }
 0x179   : >> { %2680 = vrsqrt.f32 %v567_v63  ;;  %vm570_vm15 = vcmp.eq.f32.partialorder %v567_v63, inf  ;;  %v573_v1 = vand.u32 2147483648, %v567_v63  ;;  %vm572_vm0 = vcmp.eq.f32.partialorder %v567_v63, 0.0 }
 0x183   : >> { %v2681_v0 = vpop.eup %2680 }
 0x184   : >> { %v569_v2 = vmul.f32 %v2681_v0, %v567_v63 }
 0x186   : >> { %v571_v3 = vsel %vm570_vm15, %v567_v63, %v569_v2 }
 0x187   : >> { %v574_v4 = vsel %vm572_vm0, %v573_v1, %v571_v3  ;;  %vm857_vm0 = vcmp.eq.s32.totalorder %v852_v15, %v849_v14 }
 0x188   : >> { %v575_v5 = vxor.u32 2147483648, %v574_v4 }
 0x18a   : >> { %v576_v8 = vsel %vm565_vm1, %v574_v4, %v575_v5 }
 0x18b   : >> { %v577_v9 = vadd.f32 %v576_v8, %v564_v61 }
 0x18d   : >> { %2682 = vrcp.f32 %v577_v9 }
 0x197   : >> { %v2683_v13 = vpop.eup %2682 }
 0x198   : >> { %v585_v16 = vsel %vm584_vm2, 0.0, %v2683_v13  ;;  %vm879_vm2 = vcmp.eq.s32.totalorder %v3079_v14, 0 }
 0x199   : >> { %v586_v17 = vmul.f32 %v585_v16, %v585_v16  ;;  %v590_v18 = vmul.f32 %v585_v16, %v558_v55 }
 0x19b   : >> { %v587_v19 = vadd.f32 1.0, %v586_v17  ;;  %v591_v20 = vsub.f32 %v556_v57, %v590_v18  ;;  %v593_v21 = vadd.f32 %v590_v18, %v560_v58 }
 0x19d   : >> { %2684 = vrsqrt.f32 %v587_v19  ;;  %595 = vst [vmem:[%s594_s20] sm:$0xff] %v591_v20  ;;  %597 = vst [vmem:[%s596_s21] sm:$0xff] %v593_v21  ;;  %s1090_s20 = smov [#allocation24]  ;;  %s692_s21 = smov [#allocation23] }
 0x1a7   : >> { %v2685_v22 = vpop.eup %2684 }
 0x1a8   : >> { %599 = vst [vmem:[%s598_s22] sm:$0xff] %v2685_v22  ;;  %v589_v23 = vmul.f32 %v2685_v22, %v585_v16  ;;  %s1116_s22 = smov [#allocation23] }
 0x1aa   : >> { %601 = vst [vmem:[%s600_s3] sm:$0xff] %v589_v23  ;;  %s695_s3 = smov [#allocation24] }
 0x1af   : >> { %v603_v26 = vld [vmem:[%s602_s0] ss:$0 sm:$0xff]  ;;  %s3169_s0 = smov [#allocation12] }
 0x1b0   : >> { %v618_v27 = vld [vmem:[%s617_s23] ss:$0 sm:$0xff]  ;;  %v612_v28 = vsel %vm611_vm3, %v603_v26, 0.0  ;;  %s3171_s23 = smov [#allocation14]  ;;  %vm883_vm3 = vcmp.eq.s32.totalorder %v3079_v14, 1 }
 0x1b1   : >> { %v627_v29 = vsel %vm626_vm5, %v618_v27, 0.0  ;;  %613 = vadd.xlane.f32.xlu0 %v612_v28  ;;  %v634_v30 = vld [vmem:[%s633_s24] ss:$0 sm:$0xff]  ;;  %s1119_s24 = smov [#allocation24]  ;;  %vm896_vm5 = vcmp.eq.s32.totalorder %v3079_v14, 15 }
 0x1b2   : >> { %628 = vadd.xlane.f32.xlu1 %v627_v29  ;;  %v649_v31 = vld [vmem:[%s648_s25] ss:$0 sm:$0xff]  ;;  %v643_v32 = vsel %vm642_vm6, %v634_v30, 0.0  ;;  %s3173_s25 = smov [#allocation15] }
 0x1b3   : >> { %v658_v33 = vsel %vm657_vm7, %v649_v31, 0.0 }
 0x1b5   : >> { %644 = vadd.xlane.f32.xlu0 %v643_v32 }
 0x1b6   : >> { %659 = vadd.xlane.f32.xlu1 %v658_v33 }
 0x23e   : >> { %v614_v34 = vpop.xlane.xlu0 %613 }
 0x23f   : >> { %v629_v35 = vpop.xlane.xlu1 %628  ;;  %616 = vst [vmem:[%s615_s26] sm:$0xff] %v614_v34  ;;  %s3175_s26 = smov [#allocation8] }
 0x240   : >> { %2081 = vst [vmem:[%s630_s27 + $0x8] sm:$0xff] %v629_v35  ;;  %s3177_s27 = smov [#allocation9] }
 0x242   : >> { %v645_v36 = vpop.xlane.xlu0 %644 }
 0x243   : >> { %v660_v37 = vpop.xlane.xlu1 %659  ;;  %647 = vst [vmem:[%s646_s29] sm:$0xff] %v645_v36  ;;  %s3181_s29 = smov [#allocation11] }
 0x244   : >> { %2082 = vst [vmem:[%s661_s1 + $0x8] sm:$0xff] %v660_v37  ;;  %s3197_s1 = smov [#allocation8] }
 0x247   : >> { %v665_v44 = vld [vmem:[%s664_s28] sm:$0xff]  ;;  %v2083_v10 = vld [vmem:[%s692_s21 + $0x8] sm:$0xff]  ;;  %s3179_s28 = smov [#allocation10]  ;;  %s756_s21 = smov [#allocation13] }
 0x248   : >> { %v1089_v47 = vld [vmem:[%s1088_s15] sm:$0xff]  ;;  %v676_v48 = vmul.f32 %v672_v38, %v665_v44  ;;  %v679_v49 = vmul.f32 %v673_v39, %v665_v44  ;;  %v683_v50 = vmul.f32 %v674_v40, %v665_v44  ;;  %v686_v51 = vmul.f32 %v675_v41, %v665_v44  ;;  %v2141_v11 = vld [vmem:[%s1116_s22 + $0x8] sm:$0xff]  ;;  %s728_s15 = smov [#allocation22]  ;;  %s758_s22 = smov [#allocation14] }
 0x249   : >> { %v1100_v52 = vmul.f32 %v1096_v42, %v1089_v47  ;;  %v1103_v53 = vmul.f32 %v1097_v43, %v1089_v47  ;;  %v1107_v54 = vmul.f32 %v1098_v45, %v1089_v47  ;;  %v1110_v55 = vmul.f32 %v1099_v46, %v1089_v47 }
 0x24b   : >> { %v667_v56 = vld [vmem:[%s666_s19] sm:$0xff]  ;;  %v2084_v12 = vld [vmem:[%s695_s3 + $0x8] sm:$0xff]  ;;  %s3217_s19 = smov [#allocation15]  ;;  %s760_s3 = smov [#allocation15] }
 0x24c   : >> { %v1091_v57 = vld [vmem:[%s1090_s20] sm:$0xff]  ;;  %v677_v58 = vmul.f32 %v674_v40, %v667_v56  ;;  %v680_v59 = vmul.f32 %v675_v41, %v667_v56  ;;  %v682_v60 = vmul.f32 %v672_v38, %v667_v56  ;;  %v685_v61 = vmul.f32 %v673_v39, %v667_v56  ;;  %v2142_v13 = vld [vmem:[%s1119_s24 + $0x8] sm:$0xff]  ;;  %s754_s20 = smov [#allocation12]  ;;  %s805_s24 = smov [#allocation13] }
 0x24d   : >> { %v1101_v62 = vmul.f32 %v1098_v45, %v1091_v57  ;;  %v1104_v63 = vmul.f32 %v1099_v46, %v1091_v57  ;;  %v1106_v0 = vmul.f32 %v1096_v42, %v1091_v57  ;;  %v1109_v1 = vmul.f32 %v1097_v43, %v1091_v57 }
 0x24e   : >> { %v678_v2 = vsub.f32 %v676_v48, %v677_v58  ;;  %v681_v3 = vsub.f32 %v679_v49, %v680_v59  ;;  %v684_v4 = vadd.f32 %v683_v50, %v682_v60  ;;  %v687_v5 = vadd.f32 %v686_v51, %v685_v61 }
 0x24f   : >> { %v1102_v6 = vsub.f32 %v1100_v52, %v1101_v62  ;;  %v1105_v7 = vsub.f32 %v1103_v53, %v1104_v63  ;;  %v1108_v8 = vadd.f32 %v1107_v54, %v1106_v0  ;;  %v1111_v9 = vadd.f32 %v1110_v55, %v1109_v1  ;;  %v3224_v52 = vld [vmem:[%s728_s15] ss:$0 sm:$0xff]  ;;  %s3325_s15 = smov [#allocation13] }
 0x250   : >> { %688 = vst [vmem:[%s3137_s30] sm:$0xff] %v678_v2  ;;  %690 = vst [vmem:[%s3141_s13] sm:$0xff] %v684_v4  ;;  %s3183_s30 = smov [#allocation13]  ;;  %s3202_s13 = smov [#allocation9] }
 0x251   : >> { %691 = vst [vmem:[%s3143_s14] sm:$0xff] %v687_v5  ;;  %689 = vst [vmem:[%s3139_s12] sm:$0xff] %v681_v3  ;;  %s3199_s12 = smov [#allocation10]  ;;  %s726_s14 = smov [#allocation21] }
 0x252   : >> { %1112 = vst [vmem:[%s3145_s16] sm:$0xff] %v1102_v6  ;;  %1113 = vst [vmem:[%s3147_s17] sm:$0xff] %v1105_v7  ;;  %s3207_s16 = smov [#allocation12]  ;;  %s3210_s17 = smov [#allocation11]  ;;  %v3222_v51 = vld [vmem:[%s726_s14] ss:$0 sm:$0xff] }
 0x253   : >> { %1114 = vst [vmem:[%s3150_s2] sm:$0xff] %v1108_v8  ;;  %1115 = vst [vmem:[%s3152_s18] sm:$0xff] %v1111_v9  ;;  %s3212_s2 = smov [#allocation13]  ;;  %s3215_s18 = smov [#allocation14] }
 0x254   : >> { %s3321_s14 = smov [#allocation15] }
 0x257   : >> { %v2085_v16 = vld [vmem:[%s3169_s0 + $0x8] sm:$0xff] }
 0x258   : >> { %v2087_v17 = vld [vmem:[%s3171_s23 + $0x8] sm:$0xff]  ;;  %v710_v19 = vmul.f32 %v2085_v16, %v2083_v10  ;;  %v716_v22 = vmul.f32 %v2085_v16, %v2084_v12 }
 0x259   : >> { %v2088_v18 = vld [vmem:[%s3173_s25 + $0x8] sm:$0xff]  ;;  %v711_v20 = vmul.f32 %v2087_v17, %v2084_v12  ;;  %v717_v26 = vmul.f32 %v2087_v17, %v2083_v10 }
 0x25a   : >> { %v714_v21 = vmul.f32 %v2088_v18, %v2084_v12  ;;  %v2143_v23 = vld [vmem:[%s3175_s26 + $0x8] sm:$0xff]  ;;  %v720_v27 = vmul.f32 %v2088_v18, %v2083_v10 }
 0x25b   : >> { %v2144_v24 = vld [vmem:[%s3177_s27 + $0x8] sm:$0xff]  ;;  %v1134_v29 = vmul.f32 %v2143_v23, %v2141_v11  ;;  %v712_v32 = vsub.f32 %v710_v19, %v711_v20  ;;  %v1140_v35 = vmul.f32 %v2143_v23, %v2142_v13  ;;  %v718_v36 = vadd.f32 %v717_v26, %v716_v22 }
 0x25c   : >> { %v2145_v25 = vld [vmem:[%s3179_s28 + $0x8] sm:$0xff]  ;;  %v1137_v33 = vmul.f32 %v2144_v24, %v2141_v11  ;;  %v1143_v39 = vmul.f32 %v2144_v24, %v2142_v13 }
 0x25d   : >> { %v2146_v28 = vld [vmem:[%s3181_s29 + $0x8] sm:$0xff]  ;;  %v1135_v30 = vmul.f32 %v2145_v25, %v2142_v13  ;;  %v1141_v38 = vmul.f32 %v2145_v25, %v2141_v11  ;;  %2089 = vst [vmem:[%s3169_s0 + $0x8] sm:$0xff] %v712_v32  ;;  %2091 = vst [vmem:[%s3171_s23 + $0x8] sm:$0xff] %v718_v36  ;;  %s783_s0 = smov [#allocation19]  ;;  %s846_s23 = smov [#allocation20] }
 0x25e   : >> { %v2086_v31 = vld [vmem:[%s3183_s30 + $0x8] sm:$0xff]  ;;  %v1138_v34 = vmul.f32 %v2146_v28, %v2142_v13  ;;  %v1144_v41 = vmul.f32 %v2146_v28, %v2141_v11 }
 0x25f   : >> { %v1136_v37 = vsub.f32 %v1134_v29, %v1135_v30  ;;  %v713_v42 = vmul.f32 %v2086_v31, %v2083_v10  ;;  %v719_v43 = vmul.f32 %v2086_v31, %v2084_v12  ;;  %v1142_v44 = vadd.f32 %v1141_v38, %v1140_v35 }
 0x260   : >> { %v1139_v40 = vsub.f32 %v1137_v33, %v1138_v34  ;;  %v1145_v45 = vadd.f32 %v1144_v41, %v1143_v39 }
 0x261   : >> { %2147 = vst [vmem:[%s3175_s26 + $0x8] sm:$0xff] %v1136_v37  ;;  %v715_v46 = vsub.f32 %v713_v42, %v714_v21  ;;  %v721_v47 = vadd.f32 %v720_v27, %v719_v43  ;;  %2149 = vst [vmem:[%s3179_s28 + $0x8] sm:$0xff] %v1142_v44  ;;  %s825_s26 = smov [#allocation14]  ;;  %s3310_s28 = smov [#allocation13] }
 0x262   : >> { %2148 = vst [vmem:[%s3177_s27 + $0x8] sm:$0xff] %v1139_v40  ;;  %2150 = vst [vmem:[%s3181_s29 + $0x8] sm:$0xff] %v1145_v45  ;;  %s845_s27 = smov [#allocation15]  ;;  %s3312_s29 = smov [#allocation12] }
 0x263   : >> { %2090 = vst [vmem:[%s3183_s30 + $0x8] sm:$0xff] %v715_v46  ;;  %2092 = vst [vmem:[%s3173_s25 + $0x8] sm:$0xff] %v721_v47  ;;  %v821_v46 = vadd.s32 8, %v811_v15  ;;  %v801_v47 = vadd.s32 8, %v789_v15  ;;  %s3298_s25 = smov [#allocation12]  ;;  %s2991_s30 = smov 1  }
 0x264   : >> { %v734_v53 = vld [vmem:[%s3207_s16] sm:$0xff] }
 0x265   : >> { %v738_v11 = vmul.f32 %v734_v53, %v3222_v51  ;;  %v741_v12 = vmul.f32 %v734_v53, %v3224_v52  ;;  %v736_v18 = vld [vmem:[%s3215_s18] sm:$0xff]  ;;  %vm822_vm11 = vcmp.eq.s32.totalorder %v821_v46, %v808_v14  ;;  %vm802_vm13 = vcmp.eq.s32.totalorder %v801_v47, %v786_v14 }
 0x266   : >> { %v744_v22 = vmul.f32 %v736_v18, %v3222_v51  ;;  %v747_v24 = vmul.f32 %v736_v18, %v3224_v52 }
 0x268   : >> { %v1152_v48 = vld [vmem:[%s3197_s1] ss:$0 sm:$0xff]  ;;  %v2152_v50 = vld [vmem:[%s3197_s1 + $0x7] ss:$0 sm:$0xff]  ;;  %v2153_v55 = vld [vmem:[%s3197_s1 + $0x7] sm:$0xfe] }
 0x269   : >> { %v2151_v49 = vld [vmem:[%s3197_s1 - $0x1] sm:$0xfe]  ;;  %v2154_v56 = vld [vmem:[%s3197_s1 + $0xf] ss:$0 sm:$0xff]  ;;  %v1170_v58 = vsel %vm1008_vm8, %v2152_v50, %v2153_v55  ;;  %v2158_v61 = vld [vmem:[%s3199_s12 + $0x8] ss:$0 sm:$0xff] }
 0x26a   : >> { %v1159_v54 = vsel %vm1008_vm8, %v1152_v48, %v2151_v49  ;;  %v1196_v57 = vld [vmem:[%s3202_s13] ss:$0 sm:$0xff]  ;;  %v2157_v60 = vld [vmem:[%s3199_s12 + $0x9] sm:$0x7f]  ;;  %2155 = vst [vmem:[%s3197_s1 + $0x8] sm:$0xff] %v1170_v58  ;;  %v841_v48 = vadd.s32 8, %v831_v15 }
 0x26b   : >> { %1162 = vst [vmem:[%s3197_s1] sm:$0xff] %v1159_v54  ;;  %v1174_v59 = vld [vmem:[%s3199_s12] ss:$0 sm:$0xff]  ;;  %v1183_v62 = vsel %vm1032_vm9, %v2154_v56, %v2157_v60  ;;  %v2160_v63 = vld [vmem:[%s3199_s12 + $0x1] sm:$0x7f]  ;;  %v2163_v4 = vld [vmem:[%s3202_s13 + $0x7] sm:$0xfe] }
 0x26c   : >> { %2156 = vst [vmem:[%s3197_s1 + $0x1] sm:$0x1] %v1174_v59  ;;  %v2161_v0 = vld [vmem:[%s3202_s13 - $0x1] sm:$0xfe]  ;;  %v2162_v1 = vld [vmem:[%s3202_s13 + $0x7] ss:$0 sm:$0xff]  ;;  %v1191_v2 = vsel %vm1032_vm9, %v2158_v61, %v2160_v63  ;;  %vm842_vm15 = vcmp.eq.s32.totalorder %v841_v48, %v828_v14 }
 0x26d   : >> { %2159 = vst [vmem:[%s3199_s12 + $0x8] sm:$0xff] %v1183_v62  ;;  %v1203_v3 = vsel %vm1008_vm8, %v1196_v57, %v2161_v0  ;;  %v2164_v5 = vld [vmem:[%s3202_s13 + $0xf] ss:$0 sm:$0xff]  ;;  %v1218_v6 = vld [vmem:[%s3210_s17] ss:$0 sm:$0xff]  ;;  %1193 = vst [vmem:[%s3199_s12] sm:$0xff] %v1191_v2  ;;  %v1214_v7 = vsel %vm1008_vm8, %v2162_v1, %v2163_v4  ;;  %v864_v49 = vadd.s32 8, %v852_v15  ;;  %v346_v15 = vmov (%p471_p9), %v3081_v15 }
 0x26e   : >> { %1206 = vst [vmem:[%s3202_s13] sm:$0xff] %v1203_v3  ;;  %v2167_v8 = vld [vmem:[%s3210_s17 + $0x9] sm:$0x7f]  ;;  %v2168_v9 = vld [vmem:[%s3210_s17 + $0x8] ss:$0 sm:$0xff]  ;;  %v2170_v10 = vld [vmem:[%s3210_s17 + $0x1] sm:$0x7f] }
 0x26f   : >> { %2165 = vst [vmem:[%s3202_s13 + $0x8] sm:$0xff] %v1214_v7  ;;  %2166 = vst [vmem:[%s3202_s13 + $0x1] sm:$0x1] %v1218_v6  ;;  %v1227_v13 = vsel %vm1032_vm9, %v2164_v5, %v2167_v8  ;;  %v1235_v16 = vsel %vm1032_vm9, %v2168_v9, %v2170_v10  ;;  %v735_v17 = vld [vmem:[%s3212_s2] sm:$0xff]  ;;  %vm865_vm1 = vcmp.eq.s32.totalorder %v864_v49, %v849_v14  ;;  %s3316_s1 = smov [#allocation12]  ;;  %s3319_s12 = smov [#allocation14]  ;;  %v343_v14 = vmov (%p471_p9), %v3079_v14 }
 0x270   : >> { %v737_v19 = vld [vmem:[%s3217_s19] sm:$0xff]  ;;  %2169 = vst [vmem:[%s3210_s17 + $0x8] sm:$0xff] %v1227_v13  ;;  %1237 = vst [vmem:[%s3210_s17] sm:$0xff] %v1235_v16  ;;  %v739_v20 = vmul.f32 %v735_v17, %v3224_v52  ;;  %v742_v21 = vmul.f32 %v735_v17, %v3222_v51  ;;  %s2992_s13 = smov 127   ;;  %s3330_s17 = smov [#allocation15]  ;;  %vm358_vm6 = vcmp.eq.s32.totalorder (%p471_p9), %v346_v15, %v343_v14  ;;  %v372_v14 = vmov (%p471_p9), %v3079_v14 }
 0x271   : >> { %v745_v23 = vmul.f32 %v737_v19, %v3224_v52  ;;  %v748_v25 = vmul.f32 %v737_v19, %v3222_v51  ;;  %v790_v50 = vld [vmem:[%s783_s0] ss:$0 sm:$0xff]  ;;  %s399_s0 = smov (%p471_p9), [#allocation14] }
 0x272   : >> { %v740_v26 = vsub.f32 %v738_v11, %v739_v20  ;;  %v743_v27 = vadd.f32 %v742_v21, %v741_v12 }
 0x273   : >> { %v746_v28 = vsub.f32 %v744_v22, %v745_v23  ;;  %v749_v29 = vadd.f32 %v748_v25, %v747_v24 }
 0x274   : >> { %750 = vst [vmem:[%s3207_s16] sm:$0xff] %v740_v26  ;;  %751 = vst [vmem:[%s3212_s2] sm:$0xff] %v743_v27  ;;  %s3328_s16 = smov [#allocation14]  ;;  %s3368_s2 = smov [#allocation12] }
 0x275   : >> { %752 = vst [vmem:[%s3215_s18] sm:$0xff] %v746_v28  ;;  %753 = vst [vmem:[%s3217_s19] sm:$0xff] %v749_v29  ;;  %s3372_s18 = smov [#allocation13]  ;;  %s3377_s19 = smov [#allocation14] }
 0x27b   : >> { %v2093_v30 = vld [vmem:[%s754_s20 + $0x8] sm:$0xff] }
 0x27c   : >> { %v2094_v31 = vld [vmem:[%s756_s21 + $0x8] sm:$0xff]  ;;  %v769_v34 = vmul.f32 %v2093_v30, %v3224_v52  ;;  %v766_v36 = vmul.f32 %v2093_v30, %v3222_v51 }
 0x27d   : >> { %v2095_v32 = vld [vmem:[%s758_s22 + $0x8] sm:$0xff]  ;;  %v767_v33 = vmul.f32 %v2094_v31, %v3224_v52  ;;  %v770_v35 = vmul.f32 %v2094_v31, %v3222_v51 }
 0x27e   : >> { %v2096_v37 = vld [vmem:[%s760_s3 + $0x8] sm:$0xff]  ;;  %v772_v38 = vmul.f32 %v2095_v32, %v3222_v51  ;;  %v775_v40 = vmul.f32 %v2095_v32, %v3224_v52 }
 0x27f   : >> { %v773_v39 = vmul.f32 %v2096_v37, %v3224_v52  ;;  %v776_v41 = vmul.f32 %v2096_v37, %v3222_v51  ;;  %v771_v42 = vadd.f32 %v770_v35, %v769_v34  ;;  %v768_v43 = vsub.f32 %v766_v36, %v767_v33  ;;  %v853_v51 = vld [vmem:[%s846_s23] ss:$0 sm:$0xff] }
 0x281   : >> { %v774_v44 = vsub.f32 %v772_v38, %v773_v39  ;;  %v777_v45 = vadd.f32 %v776_v41, %v775_v40  ;;  %2098 = vst [vmem:[%s756_s21 + $0x8] sm:$0xff] %v771_v42  ;;  %2097 = vst [vmem:[%s754_s20 + $0x8] sm:$0xff] %v768_v43  ;;  %s1045_s20 = smov [#allocation15]  ;;  %s1238_s21 = sadd.s32 (%p471_p9), 1, %s2952_s10  }
 0x282   : > { %p467_p10 = scmp.ge.s32.totalorder (%p471_p9), %s1238_s21, 15  ;;  %s3488_s10 = smov (%p471_p9), %s1238_s21 }
 0x283   : >> { %2099 = vst [vmem:[%s758_s22 + $0x8] sm:$0xff] %v774_v44  ;;  %2100 = vst [vmem:[%s760_s3 + $0x8] sm:$0xff] %v777_v45  ;;  %s347_s22 = smov (%p471_p9), [#allocation12]  ;;  %s376_s3 = smov (%p471_p9), [#allocation13] }
 0x288   : >> { %v812_v52 = vld [vmem:[%s805_s24] sm:$0xff]  ;;  %v2103_v53 = vld [vmem:[%s805_s24 + $0x8] sm:$0xff] }
 0x289   : >> { %v791_v54 = vld [vmem:[%s3298_s25] sm:$0xff]  ;;  %v816_v55 = vsel %vm815_vm10, 0.0, %v812_v52  ;;  %v823_v56 = vsel %vm822_vm11, 0.0, %v2103_v53  ;;  %v2101_v58 = vld [vmem:[%s3298_s25 + $0x8] sm:$0xff] }
 0x28a   : >> { %v795_v57 = vsel %vm794_vm12, %v790_v50, %v791_v54  ;;  %v832_v59 = vld [vmem:[%s825_s26] sm:$0xff]  ;;  %v2105_v60 = vld [vmem:[%s825_s26 + $0x8] sm:$0xff]  ;;  %817 = vst [vmem:[%s805_s24] sm:$0xff] %v816_v55  ;;  %2104 = vst [vmem:[%s805_s24 + $0x8] sm:$0xff] %v823_v56  ;;  %v803_v61 = vsel %vm802_vm13, %v790_v50, %v2101_v58 }
 0x28b   : >> { %796 = vst [vmem:[%s3298_s25] sm:$0xff] %v795_v57  ;;  %v836_v62 = vsel %vm835_vm14, 0.0, %v832_v59  ;;  %v843_v63 = vsel %vm842_vm15, 0.0, %v2105_v60  ;;  %v854_v0 = vld [vmem:[%s845_s27] sm:$0xff]  ;;  %v2107_v1 = vld [vmem:[%s845_s27 + $0x8] sm:$0xff]  ;;  %2102 = vst [vmem:[%s3298_s25 + $0x8] sm:$0xff] %v803_v61 }
 0x28c   : >> { %837 = vst [vmem:[%s825_s26] sm:$0xff] %v836_v62  ;;  %2106 = vst [vmem:[%s825_s26 + $0x8] sm:$0xff] %v843_v63  ;;  %v858_v2 = vsel %vm857_vm0, %v853_v51, %v854_v0  ;;  %v866_v3 = vsel %vm865_vm1, %v853_v51, %v2107_v1 }
 0x28d   : >> { %859 = vst [vmem:[%s845_s27] sm:$0xff] %v858_v2  ;;  %2108 = vst [vmem:[%s845_s27 + $0x8] sm:$0xff] %v866_v3 }
 0x291   : >> { %v870_v4 = vld [vmem:[%s3310_s28] sm:$0xff]  ;;  %v2109_v9 = vld [vmem:[%s3325_s15 + $0x8] sm:$0xff] }
 0x292   : >> { %871 = vrot.lane.b32.xlu1 %v870_v4, %s2991_s30  ;;  %v874_v5 = vld [vmem:[%s3312_s29] sm:$0xff]  ;;  %v2111_v6 = vld [vmem:[%s3316_s1 + $0x8] sm:$0xff] }
 0x293   : >> { %875 = vrot.lane.b32.xlu0 %v874_v5, %s2991_s30  ;;  %v940_v7 = vld [vmem:[%s3319_s12] sm:$0xff]  ;;  %v2117_v10 = vld [vmem:[%s3328_s16 + $0x8] sm:$0xff] }
 0x294   : >> { %v936_v8 = vld [vmem:[%s3321_s14] sm:$0xff]  ;;  %v2115_v11 = vld [vmem:[%s3330_s17 + $0x8] sm:$0xff] }
 0x296   : >> { %907 = vrot.lane.b32.xlu1 %v2111_v6, %s2991_s30 }
 0x297   : >> { %892 = vrot.lane.b32.xlu0 %v870_v4, %s2992_s13 }
 0x29a   : >> { %941 = vrot.lane.b32.xlu1 %v940_v7, %s2991_s30 }
 0x29b   : >> { %937 = vrot.lane.b32.xlu0 %v936_v8, %s2991_s30 }
 0x29e   : >> { %903 = vrot.lane.b32.xlu1 %v2109_v9, %s2991_s30 }
 0x29f   : >> { %924 = vrot.lane.b32.xlu0 %v2109_v9, %s2992_s13 }
 0x2a2   : >> { %973 = vrot.lane.b32.xlu1 %v2117_v10, %s2991_s30 }
 0x2a3   : >> { %969 = vrot.lane.b32.xlu0 %v2115_v11, %s2991_s30 }
 0x2a6   : >> { %958 = vrot.lane.b32.xlu1 %v936_v8, %s2992_s13 }
 0x2aa   : >> { %990 = vrot.lane.b32.xlu1 %v2115_v11, %s2992_s13 }
 0x304   : >> { %v872_v12 = vpop.permute.xlu1 %871 }
 0x305   : >> { %v876_v13 = vpop.permute.xlu0 %875 }
 0x306   : >> { %v880_v16 = vsel %vm879_vm2, %v874_v5, %v876_v13 }
 0x307   : >> { %v884_v17 = vsel %vm883_vm3, %v872_v12, %v880_v16 }
 0x308   : >> { %v890_v18 = vsel %vm1823_vm4, %v884_v17, 0.0  ;;  %v908_v19 = vpop.permute.xlu1 %907 }
 0x309   : >> { %v893_v20 = vpop.permute.xlu0 %892  ;;  %930 = vst [vmem:[%s3312_s29] sm:$0xff] %v890_v18  ;;  %v912_v27 = vsel %vm879_vm2, %v2111_v6, %v908_v19 }
 0x30a   : >> { %v897_v21 = vsel %vm896_vm5, %v874_v5, %v893_v20 }
 0x30b   : >> { %931 = vst [vmem:[%s3310_s28] sm:$0xff] %v897_v21 }
 0x30c   : >> { %v942_v22 = vpop.permute.xlu1 %941 }
 0x30d   : >> { %v946_v23 = vsel %vm879_vm2, %v940_v7, %v942_v22  ;;  %v938_v24 = vpop.permute.xlu0 %937 }
 0x30e   : >> { %v950_v25 = vsel %vm883_vm3, %v938_v24, %v946_v23 }
 0x30f   : >> { %v956_v26 = vsel %vm1823_vm4, %v950_v25, 0.0 }
 0x310   : >> { %v904_v28 = vpop.permute.xlu1 %903  ;;  %996 = vst [vmem:[%s3319_s12] sm:$0xff] %v956_v26 }
 0x311   : >> { %v916_v29 = vsel %vm883_vm3, %v904_v28, %v912_v27  ;;  %v925_v30 = vpop.permute.xlu0 %924 }
 0x312   : >> { %v922_v31 = vsel %vm1823_vm4, %v916_v29, 0.0  ;;  %v929_v32 = vsel %vm896_vm5, %v2111_v6, %v925_v30 }
 0x313   : >> { %2113 = vst [vmem:[%s3316_s1 + $0x8] sm:$0xff] %v922_v31  ;;  %2114 = vst [vmem:[%s3325_s15 + $0x8] sm:$0xff] %v929_v32 }
 0x314   : >> { %v974_v33 = vpop.permute.xlu1 %973 }
 0x315   : >> { %v978_v34 = vsel %vm879_vm2, %v2117_v10, %v974_v33  ;;  %v970_v35 = vpop.permute.xlu0 %969 }
 0x316   : >> { %v982_v36 = vsel %vm883_vm3, %v970_v35, %v978_v34 }
 0x317   : >> { %v988_v37 = vsel %vm1823_vm4, %v982_v36, 0.0 }
 0x318   : >> { %v959_v38 = vpop.permute.xlu1 %958  ;;  %2119 = vst [vmem:[%s3328_s16 + $0x8] sm:$0xff] %v988_v37 }
 0x319   : >> { %v963_v39 = vsel %vm896_vm5, %v940_v7, %v959_v38  ;;  %v365_v7 = vadd.s32 (%p471_p9), 8, %v346_v15  ;;  %v375_v15 = vmov (%p471_p9), %v3081_v15 }
 0x31a   : >> { %v1002_v40 = vld [vmem:[%s3368_s2] ss:$0 sm:$0xff]  ;;  %v2122_v42 = vld [vmem:[%s3368_s2 + $0x7] ss:$0 sm:$0xff]  ;;  %997 = vst [vmem:[%s3321_s14] sm:$0xff] %v963_v39  ;;  %v2123_v44 = vld [vmem:[%s3368_s2 + $0x7] sm:$0xfe]  ;;  %v421_v15 = vmov (%p471_p9), %v3081_v15 }
 0x31b   : >> { %v2121_v41 = vld [vmem:[%s3368_s2 - $0x1] sm:$0xfe]  ;;  %v1020_v47 = vsel %vm1008_vm8, %v2122_v42, %v2123_v44  ;;  %v2132_v49 = vld [vmem:[%s3372_s18 + $0x7] ss:$0 sm:$0xff]  ;;  %v2133_v50 = vld [vmem:[%s3372_s18 + $0x7] sm:$0xfe]  ;;  %vm366_vm7 = vcmp.eq.s32.totalorder (%p471_p9), %v365_v7, %v343_v14  ;;  %v395_v14 = vmov (%p471_p9), %v3079_v14  ;;  %v398_v15 = vmov (%p471_p9), %v3081_v15 }
 0x31c   : >> { %v1009_v43 = vsel %vm1008_vm8, %v1002_v40, %v2121_v41  ;;  %v1046_v45 = vld [vmem:[%s3372_s18] ss:$0 sm:$0xff]  ;;  %v2134_v51 = vld [vmem:[%s3372_s18 + $0xf] ss:$0 sm:$0xff]  ;;  %v991_v52 = vpop.permute.xlu1 %990  ;;  %v1064_v53 = vsel %vm1008_vm8, %v2132_v49, %v2133_v50  ;;  %v418_v14 = vmov (%p471_p9), %v3079_v14  ;;  %v442_v36 = vadd.s32 (%p471_p9), 8, %v421_v15 }
 0x31d   : >> { %v2131_v46 = vld [vmem:[%s3372_s18 - $0x1] sm:$0xfe]  ;;  %1012 = vst [vmem:[%s3368_s2] sm:$0xff] %v1009_v43  ;;  %v995_v54 = vsel %vm896_vm5, %v2117_v10, %v991_v52  ;;  %v2124_v55 = vld [vmem:[%s3368_s2 + $0xf] ss:$0 sm:$0xff]  ;;  %2135 = vst [vmem:[%s3372_s18 + $0x8] sm:$0xff] %v1064_v53 }
 0x31e   : >> { %v1053_v48 = vsel %vm1008_vm8, %v1046_v45, %v2131_v46  ;;  %2120 = vst [vmem:[%s3330_s17 + $0x8] sm:$0xff] %v995_v54  ;;  %2125 = vst [vmem:[%s3368_s2 + $0x8] sm:$0xff] %v1020_v47  ;;  %vm433_vm8 = vcmp.eq.s32.totalorder (%p471_p9), %v421_v15, %v418_v14 }
 0x31f   : >> { %1056 = vst [vmem:[%s3372_s18] sm:$0xff] %v1053_v48  ;;  %v1024_v56 = vld [vmem:[%s3377_s19] ss:$0 sm:$0xff]  ;;  %v2127_v57 = vld [vmem:[%s3377_s19 + $0x9] sm:$0x7f]  ;;  %v2128_v58 = vld [vmem:[%s3377_s19 + $0x8] ss:$0 sm:$0xff] }
 0x320   : >> { %2126 = vst [vmem:[%s3368_s2 + $0x1] sm:$0x1] %v1024_v56  ;;  %v1033_v59 = vsel %vm1032_vm9, %v2124_v55, %v2127_v57  ;;  %v2130_v60 = vld [vmem:[%s3377_s19 + $0x1] sm:$0x7f] }
 0x321   : >> { %2129 = vst [vmem:[%s3377_s19 + $0x8] sm:$0xff] %v1033_v59  ;;  %v1041_v61 = vsel %vm1032_vm9, %v2128_v58, %v2130_v60 }
 0x322   : >> { %1043 = vst [vmem:[%s3377_s19] sm:$0xff] %v1041_v61 }
 0x324   : > { %473 = sbr.rel (!%p471_p9) target bundleno = 332 (0x14c), region = 504 }
 0x325   : >> { %v1068_v62 = vld [vmem:[%s1045_s20] ss:$0 sm:$0xff]  ;;  %v2137_v63 = vld [vmem:[%s1045_s20 + $0x9] sm:$0x7f]  ;;  %v2138_v0 = vld [vmem:[%s1045_s20 + $0x8] ss:$0 sm:$0xff] }
 0x326   : >> { %2136 = vst [vmem:[%s3372_s18 + $0x1] sm:$0x1] %v1068_v62  ;;  %v1077_v1 = vsel %vm1032_vm9, %v2134_v51, %v2137_v63  ;;  %v2140_v2 = vld [vmem:[%s1045_s20 + $0x1] sm:$0x7f] }
 0x327   : >> { %2139 = vst [vmem:[%s1045_s20 + $0x8] sm:$0xff] %v1077_v1  ;;  %v1085_v3 = vsel %vm1032_vm9, %v2138_v0, %v2140_v2  ;;  %v353_v4 = vld [vmem:[%s347_s22] sm:$0xff] (%p471_p9)  ;;  %v2171_v5 = vld [vmem:[%s347_s22 + $0x8] sm:$0xff] (%p471_p9)  ;;  %vm443_vm9 = vcmp.eq.s32.totalorder (%p471_p9), %v442_v36, %v418_v14 }
 0x328   : >> { %1087 = vst [vmem:[%s1045_s20] sm:$0xff] %v1085_v3  ;;  %v354_v8 = vsel (%p471_p9), %vm1823_vm4, %v353_v4, 0.0  ;;  %v362_v9 = vsel (%p471_p9), %vm1823_vm4, %v2171_v5, 0.0 }
 0x329   : > { %v405_v12 = vld [vmem:[%s399_s0] sm:$0xff] (%p471_p9)  ;;  %v355_v13 = vmul.f32 (%p471_p9), %v354_v8, %v354_v8  ;;  %v363_v16 = vmul.f32 (%p471_p9), %v362_v9, %v362_v9  ;;  %v2173_v19 = vld [vmem:[%s399_s0 + $0x8] sm:$0xff] (%p471_p9) }
 0x32a   : > { %v406_v20 = vsel (%p471_p9), %vm1823_vm4, %v405_v12, 0.0  ;;  %v412_v24 = vsel (%p471_p9), %vm1823_vm4, %v2173_v19, 0.0 }
 0x32b   : > { %v369_v21 = vadd.f32 %v363_v16, %v355_v13  ;;  %v359_v25 = vsel %vm358_vm6, 0.0, %v355_v13  ;;  %v407_v27 = vmul.f32 %v406_v20, %v406_v20  ;;  %v367_v29 = vsel %vm366_vm7, 0.0, %v363_v16 }
 0x32c   : > { %v368_v31 = vadd.f32 %v367_v29, %v359_v25  ;;  %v413_v33 = vmul.f32 %v412_v24, %v412_v24 }
 0x32d   : > { %v382_v6 = vld [vmem:[%s376_s3] sm:$0xff]  ;;  %v2172_v11 = vld [vmem:[%s376_s3 + $0x8] sm:$0xff] }
 0x32e   : > { %v383_v10 = vsel %vm1823_vm4, %v382_v6, 0.0  ;;  %v389_v18 = vsel %vm1823_vm4, %v2172_v11, 0.0 }
 0x32f   : > { %v384_v17 = vmul.f32 %v383_v10, %v383_v10  ;;  %v390_v22 = vmul.f32 %v389_v18, %v389_v18  ;;  %v428_v23 = vld [vmem:[%s422_s11] sm:$0xff]  ;;  %v2174_v28 = vld [vmem:[%s422_s11 + $0x8] sm:$0xff] }
 0x330   : > { %v429_v30 = vsel %vm1823_vm4, %v428_v23, 0.0  ;;  %v439_v34 = vsel %vm1823_vm4, %v2174_v28, 0.0 }
 0x331   : > { %v386_v26 = vadd.f32 %v384_v17, %v369_v21  ;;  %v385_v35 = vadd.f32 %v384_v17, %v368_v31  ;;  %v430_v38 = vmul.f32 %v429_v30, %v429_v30  ;;  %v440_v41 = vmul.f32 %v439_v34, %v439_v34 }
 0x333   : > { %v392_v32 = vadd.f32 %v390_v22, %v386_v26  ;;  %v391_v39 = vadd.f32 %v390_v22, %v385_v35  ;;  %v434_v44 = vsel %vm433_vm8, 0.0, %v430_v38  ;;  %v444_v47 = vsel %vm443_vm9, 0.0, %v440_v41 }
 0x335   : > { %v409_v37 = vadd.f32 %v407_v27, %v392_v32  ;;  %v408_v42 = vadd.f32 %v407_v27, %v391_v39 }
 0x337   : > { %v415_v40 = vadd.f32 %v413_v33, %v409_v37  ;;  %v414_v45 = vadd.f32 %v413_v33, %v408_v42 }
 0x339   : > { %v436_v43 = vadd.f32 %v430_v38, %v415_v40  ;;  %v435_v48 = vadd.f32 %v434_v44, %v414_v45 }
 0x33b   : > { %v446_v46 = vadd.f32 %v440_v41, %v436_v43  ;;  %v445_v49 = vadd.f32 %v444_v47, %v435_v48 }
 0x33d   : > { %447 = vadd.xlane.f32.xlu0 %v446_v46 }
 0x341   : > { %455 = vadd.xlane.f32.xlu0 %v445_v49 }
 0x3ca   : > { %v448_v50 = vpop.xlane.xlu0 %447 }
 0x3cb   : > { %v449_v51 = vrot.slane %v448_v50, 4 }
 0x3cd   : > { %v450_v52 = vadd.f32 %v449_v51, %v448_v50 }
 0x3ce   : > { %v456_v53 = vpop.xlane.xlu0 %455 }
 0x3cf   : > { %v451_v54 = vrot.slane %v450_v52, 2  ;;  %v457_v55 = vrot.slane %v456_v53, 4 }
 0x3d1   : > { %v458_v56 = vadd.f32 %v457_v55, %v456_v53  ;;  %v452_v57 = vadd.f32 %v451_v54, %v450_v52 }
 0x3d3   : > { %v459_v58 = vrot.slane %v458_v56, 2  ;;  %v453_v60 = vrot.slane %v452_v57, 1 }
 0x3d5   : > { %v460_v59 = vadd.f32 %v459_v58, %v458_v56  ;;  %v454_v63 = vadd.f32 %v453_v60, %v452_v57 }
 0x3d7   : > { %v461_v61 = vrot.slane %v460_v59, 1 }
 0x3d9   : > { %v462_v62 = vadd.f32 %v461_v61, %v460_v59 }
 0x3db   : > { %2203 = vpush %v462_v62 }
 0x3dc   : > { %2205 = vpush %v454_v63 }
 0x40c   : > { %s2204_s23 = spop %2203 }
 0x40d   : > { %s2206_s24 = spop %2205 }
 0x40e   : > { %s465_s25 = smul.f32 1e-10, %s2206_s24 }
 0x410   : > { %p466_p11 = scmp.le.f32.partialorder %s2204_s23, %s465_s25 }
 0x412   : > { %p468_p12 = por %p467_p10, %p466_p11 }
 0x414   :  { %1240 = sbr.rel (!%p468_p12) target bundleno = 331 (0x14b), region = 515 }
 0x41b PF:  { %s1241_s26 = smov [#allocation12]  ;;  %v1245_v14 = vmov %v3079_v14  ;;  %v1248_v15 = vmov %v3081_v15  ;;  %s1267_s27 = smov [#allocation15] }
 0x41c   :  { %v1271_v14 = vmov %v3079_v14  ;;  %v1274_v15 = vmov %v3081_v15  ;;  %v1249_v0 = vld [vmem:[%s1241_s26] sm:$0xff]  ;;  %vm1252_vm10 = vcmp.eq.s32.totalorder %v1248_v15, %v1245_v14  ;;  %v2175_v1 = vld [vmem:[%s1241_s26 + $0x8] sm:$0xff]  ;;  %v1257_v2 = vadd.s32 8, %v1248_v15  ;;  %s1242_s10 = smov [#allocation4]  ;;  %s1268_s28 = smov [#allocation6] }
 0x41d   :  { %vm1278_vm11 = vcmp.eq.s32.totalorder %v1274_v15, %v1271_v14  ;;  %v1283_v3 = vadd.s32 8, %v1274_v15  ;;  %v1253_v4 = vsel %vm1252_vm10, %v1249_v0, 0.0  ;;  %v1275_v5 = vld [vmem:[%s1267_s27] sm:$0xff]  ;;  %v2176_v6 = vld [vmem:[%s1267_s27 + $0x8] sm:$0xff]  ;;  %s2958_s15 = smov %s3484_s6   ;;  %s2962_s16 = smov [#allocation8]  }
 0x41e   :  { %vm1258_vm4 = vcmp.eq.s32.totalorder %v1257_v2, %v1245_v14  ;;  %v1279_v7 = vsel %vm1278_vm11, %v1275_v5, 0.0 }
 0x41f   :  { %vm1284_vm12 = vcmp.eq.s32.totalorder %v1283_v3, %v1271_v14  ;;  %v1259_v8 = vsel %vm1258_vm4, %v2175_v1, %v1253_v4 }
 0x420   :  { %v1285_v9 = vsel %vm1284_vm12, %v2176_v6, %v1279_v7  ;;  %v1260_v10 = vrot.slane %v1259_v8, 4 }
 0x421   :  { %v1286_v11 = vrot.slane %v1285_v9, 4 }
 0x422   :  { %v1261_v12 = vadd.f32 %v1260_v10, %v1259_v8 }
 0x423   :  { %v1287_v13 = vadd.f32 %v1286_v11, %v1285_v9 }
 0x424   :  { %v1262_v16 = vrot.slane %v1261_v12, 2 }
 0x425   :  { %v1288_v17 = vrot.slane %v1287_v13, 2 }
 0x426   :  { %v1263_v18 = vadd.f32 %v1262_v16, %v1261_v12 }
 0x427   :  { %v1289_v19 = vadd.f32 %v1288_v17, %v1287_v13 }
 0x428   :  { %v1264_v20 = vrot.slane %v1263_v18, 1 }
 0x429   :  { %v1290_v21 = vrot.slane %v1289_v19, 1 }
 0x42a   :  { %v1265_v15 = vadd.f32 %v1264_v20, %v1263_v18 }
 0x42b   :  { %v1291_v22 = vadd.f32 %v1290_v21, %v1289_v19 }
 0x42c   :  { %1266 = vst [vmem:[%s1242_s10] sm:$0x1] %v1265_v15 }
 0x42d   :  { %1292 = vst [vmem:[%s1268_s28] sm:$0x1] %v1291_v22 }
 0x433   :  { %v1296_v23 = vld [vmem:[#allocation4] sm:$0x1] }
 0x434   :  { %v1302_v14 = vld [vmem:[#allocation6] sm:$0x1]  ;;  %1298 = vst [vmem:[#allocation5] sm:$0x1] %v1296_v23 }
 0x435   :  { %1304 = vst [vmem:[#allocation7] sm:$0x1] %v1302_v14 }
 0x43b   :  { %v1367_v24 = vld [vmem:[#allocation5] sm:$0x1] }
 0x43c   :  { %v1431_v25 = vld [vmem:[#allocation7] sm:$0x1]  ;;  %1368 = vst [vmem:[%s3482_s4] sm:$0x1] %v1367_v24 }
 0x43d   :  { %1432 = vst [vmem:[%s3483_s5] sm:$0x1] %v1431_v25 }
 0x43e LB: > { %v1480_v26 = vld [vmem:[%s2964_s16] sm:$0xff]  ;;  %s1482_s16 = scalar_lea.vmem %s2964_s16, 8   ;;  %s2964_s16 = sphi %s2962_s16, %s1482_s16   ;;  %s2960_s15 = sphi %s2958_s15, %s1483_s15  }
 0x43f   : > { %1481 = vst [vmem:[%s2960_s15] sm:$0xff] %v1480_v26  ;;  %s1483_s15 = scalar_lea.vmem %s2960_s15, 8   ;;  %p1477_p13 = scmp.gt.s32.totalorder %s1482_s16, [#allocation8 + $0x8] }
 0x440   :  { %s2966_s5 = smov (%p1477_p13), %s3485_s7   ;;  %s2970_s2 = smov (%p1477_p13), [#allocation9]  }
 0x441   :  { %1479 = sbr.rel (!%p1477_p13) target bundleno = 1086 (0x43e), region = 581 }
 0x448 LB: > { %v1542_v27 = vld [vmem:[%s2972_s2] sm:$0xff]  ;;  %s1544_s2 = scalar_lea.vmem %s2972_s2, 8   ;;  %s2972_s2 = sphi %s2970_s2, %s1544_s2   ;;  %s2968_s5 = sphi %s2966_s5, %s1545_s5  }
 0x449   : > { %1543 = vst [vmem:[%s2968_s5] sm:$0xff] %v1542_v27  ;;  %s1545_s5 = scalar_lea.vmem %s2968_s5, 8   ;;  %p1539_p0 = scmp.gt.s32.totalorder %s1544_s2, [#allocation9 + $0x8] }
 0x44a   :  { %s2974_s19 = smov (%p1539_p0), %s3486_s8   ;;  %s2978_s20 = smov (%p1539_p0), [#allocation10]  }
 0x44b   :  { %1541 = sbr.rel (!%p1539_p0) target bundleno = 1096 (0x448), region = 603 }
 0x452 LB: > { %v1604_v28 = vld [vmem:[%s2980_s20] sm:$0xff]  ;;  %s1606_s20 = scalar_lea.vmem %s2980_s20, 8   ;;  %s2980_s20 = sphi %s2978_s20, %s1606_s20   ;;  %s2976_s19 = sphi %s2974_s19, %s1607_s19  }
 0x453   : > { %1605 = vst [vmem:[%s2976_s19] sm:$0xff] %v1604_v28  ;;  %s1607_s19 = scalar_lea.vmem %s2976_s19, 8   ;;  %p1601_p1 = scmp.gt.s32.totalorder %s1606_s20, [#allocation10 + $0x8] }
 0x454   :  { %s2982_s22 = smov (%p1601_p1), %s3487_s9   ;;  %s2986_s3 = smov (%p1601_p1), [#allocation11]  }
 0x455   :  { %1603 = sbr.rel (!%p1601_p1) target bundleno = 1106 (0x452), region = 625 }
 0x45c LB: > { %v1666_v29 = vld [vmem:[%s2988_s3] sm:$0xff]  ;;  %s1668_s3 = scalar_lea.vmem %s2988_s3, 8   ;;  %s2988_s3 = sphi %s2986_s3, %s1668_s3   ;;  %s2984_s22 = sphi %s2982_s22, %s1669_s22  }
 0x45d   : > { %1667 = vst [vmem:[%s2984_s22] sm:$0xff] %v1666_v29  ;;  %s1669_s22 = scalar_lea.vmem %s2984_s22, 8   ;;  %p1663_p2 = scmp.gt.s32.totalorder %s1668_s3, [#allocation11 + $0x8] }
 0x45f   :  { %1665 = sbr.rel (!%p1663_p2) target bundleno = 1116 (0x45c), region = 647 }

// kernel: fid_forward.5
= control target key start
LH: loop header
LB: loop body
LE: loop exit
PB: predicated region body
PF: predicated region fallthrough
CT: control target
= control target key end

     0   :  { %vm24_vm0 = vcmask 261120   ;;  %vm50_vm1 = vcmask 253952   ;;  %v411_v3 = vmov 0.0   ;;  %vm133_vm2 = vcmask 1043456   ;;  %s503_s0 = inlined_call_operand.vmem [shape: f32[72,32], index: 0, kind: input, shape index: {}]   ;;  %s504_s1 = inlined_call_operand.vmem [shape: f32[1,32], index: 1, kind: output, shape index: {0}]   ;;  %s505_s2 = inlined_call_operand.vmem [shape: f32[32,32], index: 2, kind: output, shape index: {1}]  }
   0x1   :  { %v11_v0 = vld [vmem:[%s503_s0] sm:$0xff]  ;;  %v12_v1 = vld [vmem:[%s503_s0 + $0x8] sm:$0xff]  ;;  %v13_v2 = vld [vmem:[%s503_s0 + $0x10] sm:$0xff]  ;;  %52 = vst.msk [vmem:[#allocation3] sm:$0x1] %vm50_vm1, %v411_v3  ;;  %vm246_vm3 = vcmask 1040384  }
   0x2   :  { %53 = vst.msk [vmem:[#allocation4] sm:$0xff] %vm24_vm0, %v411_v3  ;;  %54 = vst.msk [vmem:[#allocation4 + $0x8] sm:$0xff] %vm24_vm0, %v411_v3  ;;  %v14_v4 = vld [vmem:[%s503_s0 + $0x18] sm:$0xff]  ;;  %v25_v5 = vsel %vm24_vm0, %v11_v0, 0.0  ;;  %v26_v6 = vsel %vm24_vm0, %v12_v1, 0.0  ;;  %v28_v7 = vsel %vm24_vm0, %v13_v2, 0.0 }
   0x3   :  { %55 = vst.msk [vmem:[#allocation4 + $0x10] sm:$0xff] %vm24_vm0, %v411_v3  ;;  %56 = vst.msk [vmem:[#allocation4 + $0x18] sm:$0xff] %vm24_vm0, %v411_v3  ;;  %v15_v8 = vld [vmem:[%s503_s0 + $0x20] sm:$0xff]  ;;  %v27_v9 = vadd.f32 %v26_v6, %v25_v5  ;;  %v30_v10 = vsel %vm24_vm0, %v14_v4, 0.0  ;;  %v16_v11 = vld [vmem:[%s503_s0 + $0x28] sm:$0xff]  ;;  %vm126_vm4 = vcmask 588800  }
   0x4   :  { %v32_v13 = vsel %vm24_vm0, %v15_v8, 0.0  ;;  %v17_v14 = vld [vmem:[%s503_s0 + $0x30] sm:$0xff]  ;;  %v34_v16 = vsel %vm24_vm0, %v16_v11, 0.0  ;;  %v18_v17 = vld [vmem:[%s503_s0 + $0x38] sm:$0xff]  ;;  %v19_v20 = vld [vmem:[%s503_s0 + $0x40] sm:$0xff]  ;;  %vm233_vm5 = vcmask 7168  }
   0x5   :  { %v29_v12 = vadd.f32 %v28_v7, %v27_v9  ;;  %v36_v19 = vsel %vm24_vm0, %v17_v14, 0.0  ;;  %v38_v22 = vsel %vm24_vm0, %v18_v17, 0.0  ;;  %v40_v24 = vsel %vm24_vm0, %v19_v20, 0.0 }
   0x7   :  { %v31_v15 = vadd.f32 %v30_v10, %v29_v12 }
   0x9   :  { %v33_v18 = vadd.f32 %v32_v13, %v31_v15 }
   0xb   :  { %v35_v21 = vadd.f32 %v34_v16, %v33_v18 }
   0xd   :  { %v37_v23 = vadd.f32 %v36_v19, %v35_v21  ;;  %v103_v21 = vld [vmem:[#allocation4 + $0x10] sm:$0xff] }
   0xf   :  { %v39_v25 = vadd.f32 %v38_v22, %v37_v23  ;;  %v101_v22 = vld [vmem:[#allocation4] sm:$0xff] }
  0x11   :  { %v41_v26 = vadd.f32 %v40_v24, %v39_v25  ;;  %v104_v24 = vld [vmem:[#allocation4 + $0x18] sm:$0xff] }
  0x13   :  { %v42_v27 = vrot.slane %v41_v26, 4 }
  0x15   :  { %v43_v28 = vadd.f32 %v42_v27, %v41_v26  ;;  %v102_v27 = vld [vmem:[#allocation4 + $0x8] sm:$0xff] }
  0x17   :  { %v44_v29 = vrot.slane %v43_v28, 2 }
  0x19   :  { %v45_v30 = vadd.f32 %v44_v29, %v43_v28 }
  0x1b   :  { %v46_v31 = vrot.slane %v45_v30, 1 }
  0x1d   :  { %v47_v32 = vadd.f32 %v46_v31, %v45_v30 }
  0x1f   :  { %v49_v33 = vmul.f32 0.013888889, %v47_v32 }
  0x21   :  { %51 = vst.msk [vmem:[#allocation2] sm:$0x1] %vm50_vm1, %v49_v33 }
  0x28   :  { %v366_v34 = vld [vmem:[#allocation2] ss:$0 sm:$0xff] }
  0x29   :  { %v64_v35 = vsub.f32 %v11_v0, %v366_v34  ;;  %v65_v36 = vsub.f32 %v12_v1, %v366_v34  ;;  %v66_v37 = vsub.f32 %v13_v2, %v366_v34  ;;  %v67_v38 = vsub.f32 %v14_v4, %v366_v34  ;;  %v200_v12 = vld [vmem:[#allocation2] sm:$0x1] }
  0x2a   :  { %v68_v39 = vsub.f32 %v15_v8, %v366_v34  ;;  %v69_v44 = vsub.f32 %v16_v11, %v366_v34  ;;  %v70_v48 = vsub.f32 %v17_v14, %v366_v34  ;;  %v71_v52 = vsub.f32 %v18_v17, %v366_v34  ;;  %v73_v8 = vld [vmem:[#allocation3] sm:$0x1] }
  0x2b   :  { %v75_v40 = vsel %vm24_vm0, %v64_v35, 0.0  ;;  %v76_v41 = vsel %vm24_vm0, %v65_v36, 0.0  ;;  %v78_v42 = vsel %vm24_vm0, %v66_v37, 0.0  ;;  %v80_v45 = vsel %vm24_vm0, %v67_v38, 0.0 }
  0x2c   :  { %v77_v43 = vadd.f32 %v76_v41, %v75_v40  ;;  %v105_v46 = vpack.c.bf16 %v65_v36, %v64_v35  ;;  %v82_v49 = vsel %vm24_vm0, %v68_v39, 0.0  ;;  %v106_v50 = vpack.c.bf16 %v67_v38, %v66_v37 }
  0x2d   :  { %v84_v53 = vsel %vm24_vm0, %v69_v44, 0.0  ;;  %v72_v55 = vsub.f32 %v19_v20, %v366_v34  ;;  %v86_v56 = vsel %vm24_vm0, %v70_v48, 0.0  ;;  %v107_v57 = vpack.c.bf16 %v69_v44, %v68_v39 }
  0x2e   :  { %v79_v47 = vadd.f32 %v78_v42, %v77_v43  ;;  %110 = vxpose.xlu0.c.b16.start [1/5] (short) (narrow) %v105_v46, 32  ;;  %386 = vmatprep.subr.bf16.mxu0 %v105_v46  ;;  %v88_v59 = vsel %vm24_vm0, %v71_v52, 0.0  ;;  %v108_v62 = vpack.c.bf16 %v71_v52, %v70_v48 }
  0x2f   :  { %387 = vmatpush3.bf16.msra.mxu0 %v105_v46  ;;  %v90_v61 = vsel %vm24_vm0, %v72_v55, 0.0  ;;  %v109_v1 = vpack.c.bf16 %v72_v55, %v72_v55 }
  0x30   :  { %v81_v51 = vadd.f32 %v80_v45, %v79_v47  ;;  %388 = vmatprep.subr.bf16.mxu0 %v106_v50 }
  0x31   :  { %v135_v3 = vsel %vm133_vm2, %v109_v1, 0 }
  0x32   :  { %v83_v54 = vadd.f32 %v82_v49, %v81_v51  ;;  %111 = vxpose.xlu0.c.b16.cont [2/5] (short) (narrow) %v106_v50, 32 }
  0x33   :  { %389 = vmatpush3.bf16.msra.mxu0 %v106_v50 }
  0x34   :  { %v85_v58 = vadd.f32 %v84_v53, %v83_v54  ;;  %390 = vmatprep.subr.bf16.mxu0 %v107_v57 }
  0x36   :  { %v87_v60 = vadd.f32 %v86_v56, %v85_v58  ;;  %112 = vxpose.xlu0.c.b16.cont [3/5] (short) (narrow) %v107_v57, 32 }
  0x37   :  { %391 = vmatpush3.bf16.msra.mxu0 %v107_v57 }
  0x38   :  { %v89_v63 = vadd.f32 %v88_v59, %v87_v60  ;;  %392 = vmatprep.subr.bf16.mxu0 %v108_v62 }
  0x3a   :  { %v91_v0 = vadd.f32 %v90_v61, %v89_v63  ;;  %113 = vxpose.xlu0.c.b16.cont [4/5] (short) (narrow) %v108_v62, 32 }
  0x3b   :  { %393 = vmatpush3.bf16.msra.mxu0 %v108_v62 }
  0x3c   :  { %v92_v2 = vrot.slane %v91_v0, 4  ;;  %408 = vmatprep.subr.msk.bf16.mxu0 %vm133_vm2, %v109_v1 }
  0x3e   :  { %v93_v4 = vadd.f32 %v92_v2, %v91_v0  ;;  %114 = vxpose.xlu0.c.b16.end [5/5] (short) (narrow) %v109_v1, 32 }
  0x3f   :  { %395 = vmatpush3.bf16.msra.mxu0 %v135_v3 }
  0x40   :  { %v94_v5 = vrot.slane %v93_v4, 2 }
  0x42   :  { %v95_v6 = vadd.f32 %v94_v5, %v93_v4 }
  0x44   :  { %v96_v7 = vrot.slane %v95_v6, 1 }
  0x46   :  { %v97_v9 = vadd.f32 %v96_v7, %v95_v6 }
  0x48   :  { %v98_v10 = vadd.f32 %v97_v9, %v73_v8 }
  0x4a   :  { %100 = vst.msk [vmem:[#allocation3] sm:$0x1] %vm50_vm1, %v98_v10 }
  0x51   :  { %v197_v11 = vld [vmem:[#allocation3] sm:$0x1] }
  0x52   :  { %v199_v13 = vmul.f32 0.013888889, %v197_v11 }
  0x54   :  { %201 = vxpose.xlu1.b32.start.end [1/1] (short) (narrow) %v199_v13, 32  ;;  %v356_v14 = vadd.f32 %v200_v12, %v199_v13  ;;  %400 = vmatprep.subr.msk.mxu1 %vm246_vm3, %v199_v13 }
  0x55   :  { %401 = vmatpush3.msk.msra.mxu1 %vm246_vm3, %v199_v13 }
  0x56   :  { %357 = vst.msk [vmem:[%s504_s1] sm:$0x1] %vm50_vm1, %v356_v14 }
  0x94   :  { %v118_v15 = vpop.trf.xlu0 }
  0x95   :  { %396 = vmatprep.mubr.msk.bf16.mxu0 %vm126_vm4, %v118_v15 }
  0x98   :  { %v119_v16 = vpop.trf.xlu0 }
  0x99   :  { %397 = vmatmul.mubr.msk.bf16.vlgmr.msra.gmra.mrb[0].mxu0 %vm126_vm4, %v119_v16 }
  0xd4   :  { %v217_v17 = vpop.trf.xlu1 }
  0xd5   :  { %402 = vmatprep.mubr.msk.f32.mxu1 %vm233_vm5, %v217_v17 }
  0xd8   :  { %v218_v18 = vpop.trf.xlu1 }
  0xd9   :  { %403 = vmatmul.mubr.msk.f32.vlgmr.msra.gmra.mrb[0].mxu1 %vm233_vm5, %v218_v18 }
  0xdc   :  { %v219_v19 = vpop.trf.xlu1 }
  0xdd   :  { %405 = vmatprep.mubr.msk.f32.mxu1 %vm233_vm5, %v219_v19 }
  0xe0   :  { %v220_v20 = vpop.trf.xlu1 }
  0xe1   :  { %406 = vmatmul.mubr.msk.f32.gmra.mrb[2].mxu1 %vm233_vm5, %v220_v20 }
 0x16c   :  { %v398_v23 = vpop.f32.mrb[0].mxu0 }
 0x16d   :  { %v188_v25 = vadd.f32 %v398_v23, %v103_v21  ;;  %v171_v26 = vpop.f32.mrb[1].mxu0 }
 0x16e   :  { %v186_v28 = vadd.f32 %v171_v26, %v101_v22  ;;  %v399_v29 = vpop.f32.mrb[2].mxu0 }
 0x16f   :  { %192 = vst.msk [vmem:[#allocation4 + $0x10] sm:$0xff] %vm24_vm0, %v188_v25  ;;  %v189_v30 = vadd.f32 %v399_v29, %v104_v24  ;;  %v174_v31 = vpop.f32.mrb[3].mxu0 }
 0x170   :  { %190 = vst.msk [vmem:[#allocation4] sm:$0xff] %vm24_vm0, %v186_v28  ;;  %v187_v32 = vadd.f32 %v174_v31, %v102_v27 }
 0x171   :  { %193 = vst.msk [vmem:[#allocation4 + $0x18] sm:$0xff] %vm24_vm0, %v189_v30 }
 0x172   :  { %191 = vst.msk [vmem:[#allocation4 + $0x8] sm:$0xff] %vm24_vm0, %v187_v32 }
 0x176   :  { %v337_v49 = vld [vmem:[#allocation4 + $0x10] sm:$0xff] }
 0x177   :  { %v335_v37 = vld [vmem:[#allocation4] sm:$0xff] }
 0x178   :  { %v338_v46 = vld [vmem:[#allocation4 + $0x18] sm:$0xff] }
 0x179   :  { %v336_v34 = vld [vmem:[#allocation4 + $0x8] sm:$0xff] }
 0x1ac   :  { %v404_v33 = vpop.f32.mrb[0].mxu1 }
 0x1ad   :  { %v340_v35 = vmul.f32 72.0, %v404_v33  ;;  %v316_v36 = vpop.f32.mrb[1].mxu1 }
 0x1ae   :  { %v339_v38 = vmul.f32 72.0, %v316_v36 }
 0x1af   :  { %v344_v39 = vsub.f32 %v336_v34, %v340_v35 }
 0x1b0   :  { %v343_v40 = vsub.f32 %v335_v37, %v339_v38 }
 0x1b1   :  { %v349_v41 = vmul.f32 0.014084507, %v344_v39 }
 0x1b2   :  { %v348_v42 = vmul.f32 0.014084507, %v343_v40 }
 0x1b3   :  { %353 = vst.msk [vmem:[%s505_s2 + $0x8] sm:$0xff] %vm24_vm0, %v349_v41 }
 0x1b4   :  { %352 = vst.msk [vmem:[%s505_s2] sm:$0xff] %vm24_vm0, %v348_v42  ;;  %v407_v43 = vpop.f32.mrb[2].mxu1 }
 0x1b5   :  { %v342_v44 = vmul.f32 72.0, %v407_v43  ;;  %v326_v45 = vpop.f32.mrb[3].mxu1 }
 0x1b6   :  { %v341_v47 = vmul.f32 72.0, %v326_v45 }
 0x1b7   :  { %v346_v48 = vsub.f32 %v338_v46, %v342_v44 }
 0x1b8   :  { %v345_v50 = vsub.f32 %v337_v49, %v341_v47 }
 0x1b9   :  { %v351_v51 = vmul.f32 0.014084507, %v346_v48 }
 0x1ba   :  { %v350_v52 = vmul.f32 0.014084507, %v345_v50 }
 0x1bb   :  { %355 = vst.msk [vmem:[%s505_s2 + $0x18] sm:$0xff] %vm24_vm0, %v351_v51 }
 0x1bc   :  { %354 = vst.msk [vmem:[%s505_s2 + $0x10] sm:$0xff] %vm24_vm0, %v350_v52 }

// kernel: fid_forward.4
= control target key start
LH: loop header
LB: loop body
LE: loop exit
PB: predicated region body
PF: predicated region fallthrough
CT: control target
= control target key end

     0   :  { %vm27_vm0 = vcmask 261120   ;;  %vm59_vm1 = vcmask 253952   ;;  %v428_v3 = vmov 0.0   ;;  %vm261_vm2 = vcmask 1040384   ;;  %s535_s0 = inlined_call_operand.vmem [shape: f32[96,32], index: 0, kind: input, shape index: {}]   ;;  %s536_s1 = inlined_call_operand.vmem [shape: f32[1,32], index: 1, kind: output, shape index: {0}]   ;;  %s537_s2 = inlined_call_operand.vmem [shape: f32[32,32], index: 2, kind: output, shape index: {1}]  }
   0x1   :  { %v11_v0 = vld [vmem:[%s535_s0] sm:$0xff]  ;;  %v12_v1 = vld [vmem:[%s535_s0 + $0x8] sm:$0xff]  ;;  %v13_v2 = vld [vmem:[%s535_s0 + $0x10] sm:$0xff]  ;;  %61 = vst.msk [vmem:[#allocation3] sm:$0x1] %vm59_vm1, %v428_v3  ;;  %vm145_vm3 = vcmask 785408  }
   0x2   :  { %62 = vst.msk [vmem:[#allocation4] sm:$0xff] %vm27_vm0, %v428_v3  ;;  %63 = vst.msk [vmem:[#allocation4 + $0x8] sm:$0xff] %vm27_vm0, %v428_v3  ;;  %v14_v4 = vld [vmem:[%s535_s0 + $0x18] sm:$0xff]  ;;  %v28_v5 = vsel %vm27_vm0, %v11_v0, 0.0  ;;  %v29_v6 = vsel %vm27_vm0, %v12_v1, 0.0  ;;  %v31_v7 = vsel %vm27_vm0, %v13_v2, 0.0 }
   0x3   :  { %64 = vst.msk [vmem:[#allocation4 + $0x10] sm:$0xff] %vm27_vm0, %v428_v3  ;;  %65 = vst.msk [vmem:[#allocation4 + $0x18] sm:$0xff] %vm27_vm0, %v428_v3  ;;  %v15_v8 = vld [vmem:[%s535_s0 + $0x20] sm:$0xff]  ;;  %v30_v9 = vadd.f32 %v29_v6, %v28_v5  ;;  %v33_v10 = vsel %vm27_vm0, %v14_v4, 0.0  ;;  %v16_v11 = vld [vmem:[%s535_s0 + $0x28] sm:$0xff]  ;;  %vm248_vm4 = vcmask 7168  }
   0x4   :  { %v35_v13 = vsel %vm27_vm0, %v15_v8, 0.0  ;;  %v17_v14 = vld [vmem:[%s535_s0 + $0x30] sm:$0xff]  ;;  %v37_v16 = vsel %vm27_vm0, %v16_v11, 0.0  ;;  %v18_v17 = vld [vmem:[%s535_s0 + $0x38] sm:$0xff]  ;;  %v19_v20 = vld [vmem:[%s535_s0 + $0x40] sm:$0xff] }
   0x5   :  { %v32_v12 = vadd.f32 %v31_v7, %v30_v9  ;;  %v39_v19 = vsel %vm27_vm0, %v17_v14, 0.0  ;;  %v41_v22 = vsel %vm27_vm0, %v18_v17, 0.0  ;;  %v20_v23 = vld [vmem:[%s535_s0 + $0x48] sm:$0xff]  ;;  %v43_v25 = vsel %vm27_vm0, %v19_v20, 0.0  ;;  %v21_v26 = vld [vmem:[%s535_s0 + $0x50] sm:$0xff]  ;;  %v22_v29 = vld [vmem:[%s535_s0 + $0x58] sm:$0xff] }
   0x6   :  { %v45_v28 = vsel %vm27_vm0, %v20_v23, 0.0  ;;  %v47_v31 = vsel %vm27_vm0, %v21_v26, 0.0  ;;  %v49_v33 = vsel %vm27_vm0, %v22_v29, 0.0 }
   0x7   :  { %v34_v15 = vadd.f32 %v33_v10, %v32_v12 }
   0x9   :  { %v36_v18 = vadd.f32 %v35_v13, %v34_v15 }
   0xb   :  { %v38_v21 = vadd.f32 %v37_v16, %v36_v18 }
   0xd   :  { %v40_v24 = vadd.f32 %v39_v19, %v38_v21 }
   0xf   :  { %v42_v27 = vadd.f32 %v41_v22, %v40_v24 }
  0x11   :  { %v44_v30 = vadd.f32 %v43_v25, %v42_v27 }
  0x13   :  { %v46_v32 = vadd.f32 %v45_v28, %v44_v30 }
  0x15   :  { %v48_v34 = vadd.f32 %v47_v31, %v46_v32 }
  0x17   :  { %v50_v35 = vadd.f32 %v49_v33, %v48_v34 }
  0x19   :  { %v51_v36 = vrot.slane %v50_v35, 4 }
  0x1b   :  { %v52_v37 = vadd.f32 %v51_v36, %v50_v35 }
  0x1d   :  { %v53_v38 = vrot.slane %v52_v37, 2 }
  0x1f   :  { %v54_v39 = vadd.f32 %v53_v38, %v52_v37 }
  0x21   :  { %v55_v40 = vrot.slane %v54_v39, 1 }
  0x23   :  { %v56_v41 = vadd.f32 %v55_v40, %v54_v39  ;;  %v121_v39 = vld [vmem:[#allocation4 + $0x10] sm:$0xff]  ;;  %v119_v40 = vld [vmem:[#allocation4] sm:$0xff] }
  0x25   :  { %v58_v42 = vmul.f32 0.010416667, %v56_v41 }
  0x27   :  { %60 = vst.msk [vmem:[#allocation2] sm:$0x1] %vm59_vm1, %v58_v42  ;;  %v122_v42 = vld [vmem:[#allocation4 + $0x18] sm:$0xff] }
  0x2e   :  { %v381_v43 = vld [vmem:[#allocation2] ss:$0 sm:$0xff] }
  0x2f   :  { %v73_v44 = vsub.f32 %v11_v0, %v381_v43  ;;  %v74_v45 = vsub.f32 %v12_v1, %v381_v43  ;;  %v75_v46 = vsub.f32 %v13_v2, %v381_v43  ;;  %v76_v47 = vsub.f32 %v14_v4, %v381_v43  ;;  %v215_v30 = vld [vmem:[#allocation2] sm:$0x1] }
  0x30   :  { %v77_v48 = vsub.f32 %v15_v8, %v381_v43  ;;  %v78_v53 = vsub.f32 %v16_v11, %v381_v43  ;;  %v79_v57 = vsub.f32 %v17_v14, %v381_v43  ;;  %v80_v61 = vsub.f32 %v18_v17, %v381_v43 }
  0x31   :  { %v87_v49 = vsel %vm27_vm0, %v73_v44, 0.0  ;;  %v88_v50 = vsel %vm27_vm0, %v74_v45, 0.0  ;;  %v90_v51 = vsel %vm27_vm0, %v75_v46, 0.0  ;;  %v92_v54 = vsel %vm27_vm0, %v76_v47, 0.0 }
  0x32   :  { %v89_v52 = vadd.f32 %v88_v50, %v87_v49  ;;  %v123_v56 = vpack.c.bf16 %v74_v45, %v73_v44  ;;  %v94_v58 = vsel %vm27_vm0, %v77_v48, 0.0  ;;  %v124_v60 = vpack.c.bf16 %v76_v47, %v75_v46  ;;  %v120_v45 = vld [vmem:[#allocation4 + $0x8] sm:$0xff] }
  0x33   :  { %v96_v62 = vsel %vm27_vm0, %v78_v53, 0.0  ;;  %v81_v0 = vsub.f32 %v19_v20, %v381_v43  ;;  %v98_v1 = vsel %vm27_vm0, %v79_v57, 0.0  ;;  %v125_v3 = vpack.c.bf16 %v78_v53, %v77_v48 }
  0x34   :  { %v91_v55 = vadd.f32 %v90_v51, %v89_v52  ;;  %129 = vxpose.xlu0.c.b16.start [1/6] (short) (narrow) %v123_v56, 32  ;;  %402 = vmatprep.subr.bf16.mxu0 %v123_v56  ;;  %v82_v4 = vsub.f32 %v20_v23, %v381_v43  ;;  %v100_v5 = vsel %vm27_vm0, %v80_v61, 0.0  ;;  %v83_v7 = vsub.f32 %v21_v26, %v381_v43  ;;  %v85_v26 = vld [vmem:[#allocation3] sm:$0x1] }
  0x35   :  { %403 = vmatpush3.bf16.msra.mxu0 %v123_v56  ;;  %v102_v8 = vsel %vm27_vm0, %v81_v0, 0.0  ;;  %v126_v10 = vpack.c.bf16 %v80_v61, %v79_v57  ;;  %v84_v11 = vsub.f32 %v22_v29, %v381_v43 }
  0x36   :  { %v93_v59 = vadd.f32 %v92_v54, %v91_v55  ;;  %404 = vmatprep.subr.bf16.mxu0 %v124_v60  ;;  %v104_v12 = vsel %vm27_vm0, %v82_v4, 0.0  ;;  %v106_v14 = vsel %vm27_vm0, %v83_v7, 0.0  ;;  %v127_v16 = vpack.c.bf16 %v82_v4, %v81_v0 }
  0x37   :  { %v108_v17 = vsel %vm27_vm0, %v84_v11, 0.0  ;;  %v128_v20 = vpack.c.bf16 %v84_v11, %v83_v7 }
  0x38   :  { %v95_v63 = vadd.f32 %v94_v58, %v93_v59  ;;  %130 = vxpose.xlu0.c.b16.cont [2/6] (short) (narrow) %v124_v60, 32 }
  0x39   :  { %405 = vmatpush3.bf16.msra.mxu0 %v124_v60 }
  0x3a   :  { %v97_v2 = vadd.f32 %v96_v62, %v95_v63  ;;  %406 = vmatprep.subr.bf16.mxu0 %v125_v3 }
  0x3c   :  { %v99_v6 = vadd.f32 %v98_v1, %v97_v2  ;;  %131 = vxpose.xlu0.c.b16.cont [3/6] (short) (narrow) %v125_v3, 32 }
  0x3d   :  { %407 = vmatpush3.bf16.msra.mxu0 %v125_v3 }
  0x3e   :  { %v101_v9 = vadd.f32 %v100_v5, %v99_v6  ;;  %408 = vmatprep.subr.bf16.mxu0 %v126_v10 }
  0x40   :  { %v103_v13 = vadd.f32 %v102_v8, %v101_v9  ;;  %132 = vxpose.xlu0.c.b16.cont [4/6] (short) (narrow) %v126_v10, 32 }
  0x41   :  { %409 = vmatpush3.bf16.msra.mxu0 %v126_v10 }
  0x42   :  { %v105_v15 = vadd.f32 %v104_v12, %v103_v13  ;;  %410 = vmatprep.subr.bf16.mxu0 %v127_v16 }
  0x44   :  { %v107_v18 = vadd.f32 %v106_v14, %v105_v15  ;;  %133 = vxpose.xlu0.c.b16.cont [5/6] (short) (narrow) %v127_v16, 32 }
  0x45   :  { %411 = vmatpush3.bf16.msra.mxu0 %v127_v16 }
  0x46   :  { %v109_v19 = vadd.f32 %v108_v17, %v107_v18  ;;  %412 = vmatprep.subr.bf16.mxu0 %v128_v20 }
  0x48   :  { %v110_v21 = vrot.slane %v109_v19, 4  ;;  %134 = vxpose.xlu0.c.b16.end [6/6] (short) (narrow) %v128_v20, 32 }
  0x49   :  { %413 = vmatpush3.bf16.msra.mxu0 %v128_v20 }
  0x4a   :  { %v111_v22 = vadd.f32 %v110_v21, %v109_v19 }
  0x4c   :  { %v112_v23 = vrot.slane %v111_v22, 2 }
  0x4e   :  { %v113_v24 = vadd.f32 %v112_v23, %v111_v22 }
  0x50   :  { %v114_v25 = vrot.slane %v113_v24, 1 }
  0x52   :  { %v115_v27 = vadd.f32 %v114_v25, %v113_v24 }
  0x54   :  { %v116_v28 = vadd.f32 %v115_v27, %v85_v26 }
  0x56   :  { %118 = vst.msk [vmem:[#allocation3] sm:$0x1] %vm59_vm1, %v116_v28 }
  0x5d   :  { %v212_v29 = vld [vmem:[#allocation3] sm:$0x1] }
  0x5e   :  { %v214_v31 = vmul.f32 0.010416667, %v212_v29 }
  0x60   :  { %216 = vxpose.xlu1.b32.start.end [1/1] (short) (narrow) %v214_v31, 32  ;;  %v371_v32 = vadd.f32 %v215_v30, %v214_v31  ;;  %418 = vmatprep.subr.msk.mxu1 %vm261_vm2, %v214_v31 }
  0x61   :  { %419 = vmatpush3.msk.msra.mxu1 %vm261_vm2, %v214_v31 }
  0x62   :  { %372 = vst.msk [vmem:[%s536_s1] sm:$0x1] %vm59_vm1, %v371_v32 }
  0x9a   :  { %v137_v33 = vpop.trf.xlu0 }
  0x9b   :  { %414 = vmatprep.mubr.msk.bf16.mxu0 %vm145_vm3, %v137_v33 }
  0x9e   :  { %v138_v34 = vpop.trf.xlu0 }
  0x9f   :  { %415 = vmatmul.mubr.msk.bf16.vlgmr.msra.gmra.mrb[0].mxu0 %vm145_vm3, %v138_v34 }
  0xe0   :  { %v232_v35 = vpop.trf.xlu1 }
  0xe1   :  { %420 = vmatprep.mubr.msk.f32.mxu1 %vm248_vm4, %v232_v35 }
  0xe4   :  { %v233_v36 = vpop.trf.xlu1 }
  0xe5   :  { %421 = vmatmul.mubr.msk.f32.vlgmr.msra.gmra.mrb[0].mxu1 %vm248_vm4, %v233_v36 }
  0xe8   :  { %v234_v37 = vpop.trf.xlu1 }
  0xe9   :  { %423 = vmatprep.mubr.msk.f32.mxu1 %vm248_vm4, %v234_v37 }
  0xec   :  { %v235_v38 = vpop.trf.xlu1 }
  0xed   :  { %424 = vmatmul.mubr.msk.f32.gmra.mrb[2].mxu1 %vm248_vm4, %v235_v38 }
 0x172   :  { %v416_v41 = vpop.f32.mrb[0].mxu0 }
 0x173   :  { %v203_v43 = vadd.f32 %v416_v41, %v121_v39  ;;  %v186_v44 = vpop.f32.mrb[1].mxu0 }
 0x174   :  { %v201_v46 = vadd.f32 %v186_v44, %v119_v40  ;;  %v417_v47 = vpop.f32.mrb[2].mxu0 }
 0x175   :  { %207 = vst.msk [vmem:[#allocation4 + $0x10] sm:$0xff] %vm27_vm0, %v203_v43  ;;  %v204_v48 = vadd.f32 %v417_v47, %v122_v42  ;;  %v189_v49 = vpop.f32.mrb[3].mxu0 }
 0x176   :  { %205 = vst.msk [vmem:[#allocation4] sm:$0xff] %vm27_vm0, %v201_v46  ;;  %v202_v50 = vadd.f32 %v189_v49, %v120_v45 }
 0x177   :  { %208 = vst.msk [vmem:[#allocation4 + $0x18] sm:$0xff] %vm27_vm0, %v204_v48 }
 0x178   :  { %206 = vst.msk [vmem:[#allocation4 + $0x8] sm:$0xff] %vm27_vm0, %v202_v50 }
 0x17c   :  { %v352_v3 = vld [vmem:[#allocation4 + $0x10] sm:$0xff] }
 0x17d   :  { %v350_v55 = vld [vmem:[#allocation4] sm:$0xff] }
 0x17e   :  { %v353_v0 = vld [vmem:[#allocation4 + $0x18] sm:$0xff] }
 0x17f   :  { %v351_v52 = vld [vmem:[#allocation4 + $0x8] sm:$0xff] }
 0x1b8   :  { %v422_v51 = vpop.f32.mrb[0].mxu1 }
 0x1b9   :  { %v355_v53 = vmul.f32 96.0, %v422_v51  ;;  %v331_v54 = vpop.f32.mrb[1].mxu1 }
 0x1ba   :  { %v354_v56 = vmul.f32 96.0, %v331_v54 }
 0x1bb   :  { %v359_v57 = vsub.f32 %v351_v52, %v355_v53 }
 0x1bc   :  { %v358_v58 = vsub.f32 %v350_v55, %v354_v56 }
 0x1bd   :  { %v364_v59 = vmul.f32 0.010526316, %v359_v57 }
 0x1be   :  { %v363_v60 = vmul.f32 0.010526316, %v358_v58 }
 0x1bf   :  { %368 = vst.msk [vmem:[%s537_s2 + $0x8] sm:$0xff] %vm27_vm0, %v364_v59 }
 0x1c0   :  { %367 = vst.msk [vmem:[%s537_s2] sm:$0xff] %vm27_vm0, %v363_v60  ;;  %v425_v61 = vpop.f32.mrb[2].mxu1 }
 0x1c1   :  { %v357_v62 = vmul.f32 96.0, %v425_v61  ;;  %v341_v63 = vpop.f32.mrb[3].mxu1 }
 0x1c2   :  { %v356_v1 = vmul.f32 96.0, %v341_v63 }
 0x1c3   :  { %v361_v2 = vsub.f32 %v353_v0, %v357_v62 }
 0x1c4   :  { %v360_v4 = vsub.f32 %v352_v3, %v356_v1 }
 0x1c5   :  { %v366_v5 = vmul.f32 0.010526316, %v361_v2 }
 0x1c6   :  { %v365_v6 = vmul.f32 0.010526316, %v360_v4 }
 0x1c7   :  { %370 = vst.msk [vmem:[%s537_s2 + $0x18] sm:$0xff] %vm27_vm0, %v366_v5 }
 0x1c8   :  { %369 = vst.msk [vmem:[%s537_s2 + $0x10] sm:$0xff] %vm27_vm0, %v365_v6 }

// kernel: custom-call.3
= control target key start
LH: loop header
LB: loop body
LE: loop exit
PB: predicated region body
PF: predicated region fallthrough
CT: control target
= control target key end

     0   :  { %11 = vsyncpa [#allocation9], 0  ;;  %s2927_s0 = inlined_call_operand.vmem [shape: f32[16,16], index: 0, kind: input, shape index: {}]   ;;  %s2928_s1 = inlined_call_operand.vmem [shape: f32[16,16], index: 1, kind: input, shape index: {}]   ;;  %s2929_s2 = inlined_call_operand.vmem [shape: f32[16,16], index: 2, kind: input, shape index: {}]   ;;  %s2930_s3 = inlined_call_operand.vmem [shape: f32[16,16], index: 3, kind: input, shape index: {}]   ;;  %s2931_s4 = inlined_call_operand.vmem [shape: f32[16], index: 4, kind: output, shape index: {0}]   ;;  %s2932_s5 = inlined_call_operand.vmem [shape: f32[16], index: 5, kind: output, shape index: {1}]   ;;  %s2933_s6 = inlined_call_operand.hbm [shape: f32[16,16], index: 6, kind: output, shape index: {2}]   ;;  %s2934_s7 = inlined_call_operand.hbm [shape: f32[16,16], index: 7, kind: output, shape index: {3}]   ;;  %s2935_s8 = inlined_call_operand.hbm [shape: f32[16,16], index: 8, kind: output, shape index: {4}]   ;;  %s2936_s9 = inlined_call_operand.hbm [shape: f32[16,16], index: 9, kind: output, shape index: {5}]  }
   0x1   :  { %12 = vsyncpa [#allocation11], 0 }
   0x2   :  { %13 = vsyncpa [#allocation14], 0  ;;  %s27_s11 = scalar_lea.vmem %s2927_s0, 8 }
   0x3   :  { %p1519_p0 = scmp.gt.s32.totalorder %s2927_s0, %s27_s11 }
   0x4   :  { %s2358_s14 = smov (!%p1519_p0), [#allocation0]   ;;  %s2362_s17 = smov (!%p1519_p0), %s2927_s0  }
   0x5   :  { %1520 = sbr.rel (%p1519_p0) target bundleno = 22 (0x16), region = 305 }
   0xc LB: > { %v61_v0 = vld [vmem:[%s2364_s17] sm:$0xff]  ;;  %s63_s17 = scalar_lea.vmem %s2364_s17, 8   ;;  %s2364_s17 = sphi %s2362_s17, %s63_s17   ;;  %s2360_s14 = sphi %s2358_s14, %s64_s14  }
   0xd   : > { %62 = vst [vmem:[%s2360_s14] sm:$0xff] %v61_v0  ;;  %s64_s14 = scalar_lea.vmem %s2360_s14, 8   ;;  %p58_p1 = scmp.gt.s32.totalorder %s63_s17, %s27_s11 }
   0xf   :  { %60 = sbr.rel (!%p58_p1) target bundleno = 12 (0xc), region = 311 }
  0x16 PF:  { %s89_s20 = scalar_lea.vmem %s2928_s1, 8 }
  0x17   :  { %p1539_p2 = scmp.gt.s32.totalorder %s2928_s1, %s89_s20 }
  0x18   :  { %s2366_s0 = smov (!%p1539_p2), [#allocation1]   ;;  %s2370_s25 = smov (!%p1539_p2), %s2928_s1  }
  0x19   :  { %1540 = sbr.rel (%p1539_p2) target bundleno = 42 (0x2a), region = 327 }
  0x20 LB: > { %v123_v1 = vld [vmem:[%s2372_s25] sm:$0xff]  ;;  %s125_s25 = scalar_lea.vmem %s2372_s25, 8   ;;  %s2372_s25 = sphi %s2370_s25, %s125_s25   ;;  %s2368_s0 = sphi %s2366_s0, %s126_s0  }
  0x21   : > { %124 = vst [vmem:[%s2368_s0] sm:$0xff] %v123_v1  ;;  %s126_s0 = scalar_lea.vmem %s2368_s0, 8   ;;  %p120_p3 = scmp.gt.s32.totalorder %s125_s25, %s89_s20 }
  0x23   :  { %122 = sbr.rel (!%p120_p3) target bundleno = 32 (0x20), region = 333 }
  0x2a PF:  { %s151_s28 = scalar_lea.vmem %s2929_s2, 8 }
  0x2b   :  { %p1559_p4 = scmp.gt.s32.totalorder %s2929_s2, %s151_s28 }
  0x2c   :  { %s2374_s1 = smov (!%p1559_p4), [#allocation2]   ;;  %s2378_s12 = smov (!%p1559_p4), %s2929_s2  }
  0x2d   :  { %1560 = sbr.rel (%p1559_p4) target bundleno = 62 (0x3e), region = 349 }
  0x34 LB: > { %v185_v2 = vld [vmem:[%s2380_s12] sm:$0xff]  ;;  %s187_s12 = scalar_lea.vmem %s2380_s12, 8   ;;  %s2380_s12 = sphi %s2378_s12, %s187_s12   ;;  %s2376_s1 = sphi %s2374_s1, %s188_s1  }
  0x35   : > { %186 = vst [vmem:[%s2376_s1] sm:$0xff] %v185_v2  ;;  %s188_s1 = scalar_lea.vmem %s2376_s1, 8   ;;  %p182_p5 = scmp.gt.s32.totalorder %s187_s12, %s151_s28 }
  0x37   :  { %184 = sbr.rel (!%p182_p5) target bundleno = 52 (0x34), region = 355 }
  0x3e PF:  { %s213_s15 = scalar_lea.vmem %s2930_s3, 8 }
  0x3f   :  { %p1579_p6 = scmp.gt.s32.totalorder %s2930_s3, %s213_s15 }
  0x40   :  { %s2382_s2 = smov (!%p1579_p6), [#allocation3]   ;;  %s2386_s20 = smov (!%p1579_p6), %s2930_s3  }
  0x41   :  { %1580 = sbr.rel (%p1579_p6) target bundleno = 82 (0x52), region = 371 }
  0x48 LB: > { %v247_v3 = vld [vmem:[%s2388_s20] sm:$0xff]  ;;  %s249_s20 = scalar_lea.vmem %s2388_s20, 8   ;;  %s2388_s20 = sphi %s2386_s20, %s249_s20   ;;  %s2384_s2 = sphi %s2382_s2, %s250_s2  }
  0x49   : > { %248 = vst [vmem:[%s2384_s2] sm:$0xff] %v247_v3  ;;  %s250_s2 = scalar_lea.vmem %s2384_s2, 8   ;;  %p244_p7 = scmp.gt.s32.totalorder %s249_s20, %s213_s15 }
  0x4b   :  { %246 = sbr.rel (!%p244_p7) target bundleno = 72 (0x48), region = 377 }
  0x52 PF:  { %s262_s21 = smov [#allocation15]  ;;  %v263_v4 = vld [vmem:[#allocation0] sm:$0xff]  ;;  %v267_v5 = vld [vmem:[#allocation0 + $0x8] sm:$0xff]  ;;  %s269_s22 = smov [#allocation16]  ;;  %v270_v6 = vld [vmem:[#allocation1] sm:$0xff]  ;;  %v303_v7 = vlaneseq  ;;  %v2398_v11 = vmov 0.0  }
  0x53   :  { %264 = vst [vmem:[%s262_s21] sm:$0xff] %v263_v4  ;;  %1764 = vst [vmem:[%s262_s21 + $0x8] sm:$0xff] %v267_v5  ;;  %v274_v8 = vld [vmem:[#allocation1 + $0x8] sm:$0xff]  ;;  %s276_s3 = smov [#allocation17]  ;;  %v277_v9 = vld [vmem:[#allocation2] sm:$0xff]  ;;  %s283_s0 = smov [#allocation18] }
  0x54   :  { %271 = vst [vmem:[%s269_s22] sm:$0xff] %v270_v6  ;;  %v281_v10 = vld [vmem:[#allocation2 + $0x8] sm:$0xff]  ;;  %290 = vst [vmem:[#allocation8] sm:$0xff] %v2398_v11  ;;  %v284_v12 = vld [vmem:[#allocation3] sm:$0xff]  ;;  %v2491_v14 = vand.u32 127, %v303_v7  ;;  %v2493_v15 = vshrl.u32 %v303_v7, 7  ;;  %s302_s23 = smov [#allocation8] }
  0x55   :  { %292 = vst [vmem:[#allocation8 + $0x8] sm:$0xff] %v2398_v11  ;;  %293 = vst [vmem:[#allocation10] sm:$0xff] %v2398_v11  ;;  %v288_v13 = vld [vmem:[#allocation3 + $0x8] sm:$0xff]  ;;  %s322_s24 = smov [#allocation13]  ;;  %s1597_s25 = smov [#allocation15] }
  0x56   :  { %295 = vst [vmem:[#allocation10 + $0x8] sm:$0xff] %v2398_v11  ;;  %296 = vst [vmem:[#allocation12] sm:$0xff] %v2398_v11  ;;  %v305_v14 = vmov %v2491_v14  ;;  %v308_v15 = vmov %v2493_v15  ;;  %vm1601_vm4 = vcmp.lt.s32.totalorder %v2491_v14, 16  ;;  %s1623_s26 = smov [#allocation16]  ;;  %s1646_s27 = smov [#allocation17] }
  0x57   :  { %298 = vst [vmem:[#allocation12 + $0x8] sm:$0xff] %v2398_v11  ;;  %299 = vst [vmem:[#allocation13] sm:$0xff] %v2398_v11  ;;  %v325_v14 = vmov %v2491_v14  ;;  %v328_v15 = vmov %v2493_v15  ;;  %v318_v16 = vadd.s32 8, %v308_v15  ;;  %vm312_vm0 = vcmp.eq.s32.totalorder %v308_v15, %v305_v14  ;;  %s1669_s28 = smov [#allocation18] }
  0x58   :  { %301 = vst [vmem:[#allocation13 + $0x8] sm:$0xff] %v2398_v11  ;;  %1765 = vst [vmem:[%s269_s22 + $0x8] sm:$0xff] %v274_v8  ;;  %v338_v17 = vadd.s32 8, %v328_v15  ;;  %vm332_vm1 = vcmp.eq.s32.totalorder %v328_v15, %v325_v14  ;;  %v1596_v15 = vmov %v2493_v15 }
  0x59   :  { %278 = vst [vmem:[%s276_s3] sm:$0xff] %v277_v9  ;;  %1766 = vst [vmem:[%s276_s3 + $0x8] sm:$0xff] %v281_v10  ;;  %vm319_vm2 = vcmp.eq.s32.totalorder %v318_v16, %v305_v14  ;;  %v1612_v34 = vadd.s32 8, %v1596_v15 }
  0x5a   :  { %285 = vst [vmem:[%s283_s0] sm:$0xff] %v284_v12  ;;  %1767 = vst [vmem:[%s283_s0 + $0x8] sm:$0xff] %v288_v13  ;;  %vm339_vm3 = vcmp.eq.s32.totalorder %v338_v17, %v325_v14  ;;  %v1593_v14 = vmov %v2491_v14  ;;  %v1603_v26 = vld [vmem:[%s1597_s25] sm:$0xff]  ;;  %v1772_v27 = vld [vmem:[%s1597_s25 + $0x8] sm:$0xff] }
  0x5b   :  { %vm1606_vm5 = vcmp.eq.s32.totalorder %v1596_v15, %v1593_v14  ;;  %v1619_v14 = vmov %v2491_v14  ;;  %v1604_v29 = vsel %vm1601_vm4, %v1603_v26, 0.0  ;;  %v1610_v30 = vsel %vm1601_vm4, %v1772_v27, 0.0 }
  0x5c   :  { %v309_v18 = vld [vmem:[%s302_s23] sm:$0xff]  ;;  %v1768_v19 = vld [vmem:[%s302_s23 + $0x8] sm:$0xff]  ;;  %v1605_v35 = vmul.f32 %v1604_v29, %v1604_v29  ;;  %v1611_v36 = vmul.f32 %v1610_v30, %v1610_v30  ;;  %vm1613_vm6 = vcmp.eq.s32.totalorder %v1612_v34, %v1593_v14  ;;  %v1668_v15 = vmov %v2493_v15 }
  0x5d   :  { %v313_v21 = vsel %vm312_vm0, 1.0, %v309_v18  ;;  %v320_v22 = vsel %vm319_vm2, 1.0, %v1768_v19  ;;  %v1622_v15 = vmov %v2493_v15  ;;  %v1642_v14 = vmov %v2491_v14 }
  0x5e   :  { %314 = vst [vmem:[%s302_s23] sm:$0xff] %v313_v21  ;;  %1769 = vst [vmem:[%s302_s23 + $0x8] sm:$0xff] %v320_v22  ;;  %v1616_v41 = vadd.f32 %v1611_v36, %v1605_v35  ;;  %v1607_v45 = vsel %vm1606_vm5, 0.0, %v1605_v35  ;;  %v1614_v49 = vsel %vm1613_vm6, 0.0, %v1611_v36  ;;  %v1665_v14 = vmov %v2491_v14 }
  0x5f   :  { %v329_v20 = vld [vmem:[%s322_s24] sm:$0xff]  ;;  %v1770_v24 = vld [vmem:[%s322_s24 + $0x8] sm:$0xff]  ;;  %v1615_v51 = vadd.f32 %v1614_v49, %v1607_v45  ;;  %v1645_v15 = vmov %v2493_v15  ;;  %v1686_v56 = vadd.s32 8, %v1668_v15  ;;  %vm1678_vm7 = vcmp.eq.s32.totalorder %v1668_v15, %v1665_v14 }
  0x60   :  { %v333_v23 = vsel %vm332_vm1, 1.0, %v329_v20  ;;  %v340_v25 = vsel %vm339_vm3, 1.0, %v1770_v24  ;;  %v1629_v28 = vld [vmem:[%s1623_s26] sm:$0xff]  ;;  %v1773_v32 = vld [vmem:[%s1623_s26 + $0x8] sm:$0xff] }
  0x61   :  { %334 = vst [vmem:[%s322_s24] sm:$0xff] %v333_v23  ;;  %1771 = vst [vmem:[%s322_s24 + $0x8] sm:$0xff] %v340_v25  ;;  %v1630_v31 = vsel %vm1601_vm4, %v1629_v28, 0.0  ;;  %v1652_v33 = vld [vmem:[%s1646_s27] sm:$0xff]  ;;  %v1636_v38 = vsel %vm1601_vm4, %v1773_v32, 0.0  ;;  %v1774_v39 = vld [vmem:[%s1646_s27 + $0x8] sm:$0xff]  ;;  %vm1687_vm8 = vcmp.eq.s32.totalorder %v1686_v56, %v1665_v14 }
  0x62   :  { %v1631_v37 = vmul.f32 %v1630_v31, %v1630_v31  ;;  %v1653_v40 = vsel %vm1601_vm4, %v1652_v33, 0.0  ;;  %v1637_v42 = vmul.f32 %v1636_v38, %v1636_v38  ;;  %v1675_v43 = vld [vmem:[%s1669_s28] sm:$0xff]  ;;  %v1659_v44 = vsel %vm1601_vm4, %v1774_v39, 0.0  ;;  %v1775_v48 = vld [vmem:[%s1669_s28 + $0x8] sm:$0xff] }
  0x63   :  { %v1654_v47 = vmul.f32 %v1653_v40, %v1653_v40  ;;  %v1676_v50 = vsel %vm1601_vm4, %v1675_v43, 0.0  ;;  %v1660_v53 = vmul.f32 %v1659_v44, %v1659_v44  ;;  %v1684_v54 = vsel %vm1601_vm4, %v1775_v48, 0.0 }
  0x64   :  { %v1633_v46 = vadd.f32 %v1631_v37, %v1616_v41  ;;  %v1632_v55 = vadd.f32 %v1631_v37, %v1615_v51  ;;  %v1677_v58 = vmul.f32 %v1676_v50, %v1676_v50  ;;  %v1685_v61 = vmul.f32 %v1684_v54, %v1684_v54 }
  0x66   :  { %v1639_v52 = vadd.f32 %v1637_v42, %v1633_v46  ;;  %v1638_v59 = vadd.f32 %v1637_v42, %v1632_v55  ;;  %v1679_v0 = vsel %vm1678_vm7, 0.0, %v1677_v58  ;;  %v1688_v3 = vsel %vm1687_vm8, 0.0, %v1685_v61 }
  0x68   :  { %v1656_v57 = vadd.f32 %v1654_v47, %v1639_v52  ;;  %v1655_v62 = vadd.f32 %v1654_v47, %v1638_v59 }
  0x6a   :  { %v1662_v60 = vadd.f32 %v1660_v53, %v1656_v57  ;;  %v1661_v1 = vadd.f32 %v1660_v53, %v1655_v62 }
  0x6c   :  { %v1681_v63 = vadd.f32 %v1677_v58, %v1662_v60  ;;  %v1680_v4 = vadd.f32 %v1679_v0, %v1661_v1 }
  0x6e   :  { %v1690_v2 = vadd.f32 %v1685_v61, %v1681_v63  ;;  %v1689_v5 = vadd.f32 %v1688_v3, %v1680_v4 }
  0x70   :  { %1691 = vadd.xlane.f32.xlu0 %v1690_v2 }
  0x74   :  { %1699 = vadd.xlane.f32.xlu0 %v1689_v5 }
  0xfd   :  { %v1692_v6 = vpop.xlane.xlu0 %1691 }
  0xfe   :  { %v1693_v7 = vrot.slane %v1692_v6, 4 }
 0x100   :  { %v1694_v8 = vadd.f32 %v1693_v7, %v1692_v6 }
 0x101   :  { %v1700_v9 = vpop.xlane.xlu0 %1699 }
 0x102   :  { %v1695_v10 = vrot.slane %v1694_v8, 2  ;;  %v1701_v11 = vrot.slane %v1700_v9, 4 }
 0x104   :  { %v1702_v12 = vadd.f32 %v1701_v11, %v1700_v9  ;;  %v1696_v13 = vadd.f32 %v1695_v10, %v1694_v8 }
 0x106   :  { %v1703_v16 = vrot.slane %v1702_v12, 2  ;;  %v1697_v18 = vrot.slane %v1696_v13, 1 }
 0x108   :  { %v1704_v17 = vadd.f32 %v1703_v16, %v1702_v12  ;;  %v1698_v21 = vadd.f32 %v1697_v18, %v1696_v13 }
 0x10a   :  { %v1705_v19 = vrot.slane %v1704_v17, 1 }
 0x10c   :  { %v1706_v20 = vadd.f32 %v1705_v19, %v1704_v17 }
 0x10e   :  { %1881 = vpush %v1706_v20 }
 0x10f   :  { %1883 = vpush %v1698_v21 }
 0x13f   :  { %s1882_s29 = spop %1881 }
 0x140   :  { %s1884_s30 = spop %1883 }
 0x141   :  { %s1709_s1 = smul.f32 1e-10, %s1884_s30 }
 0x143   :  { %p1710_p8 = scmp.le.f32.partialorder %s1882_s29, %s1709_s1 }
 0x144   :  { %s2525_s10 = smov (!%p1710_p8), 0  }
 0x145   :  { %1713 = sbr.rel (%p1710_p8) target bundleno = 1052 (0x41c), region = 393 }
 0x14c LB: > { %s2530_s11 = smov 0   ;;  %s2392_s10 = sphi %s2525_s10, %s2937_s10  }
 0x14d LB: >> { %s478_s12 = smov [#allocation15]  ;;  %v482_v14 = vmov %v2491_v14  ;;  %v485_v15 = vmov %v2493_v15  ;;  %s504_s13 = smov [#allocation16]  ;;  %vm1011_vm8 = vcmp.eq.s32.totalorder %v2493_v15, 0  ;;  %s2396_s11 = sphi %s2530_s11, %s477_s11  }
 0x14e   : >> { %v508_v14 = vmov %v2491_v14  ;;  %v511_v15 = vmov %v2493_v15  ;;  %v486_v22 = vld [vmem:[%s478_s12] sm:$0xff]  ;;  %vm489_vm9 = vcmp.eq.s32.totalorder %v485_v15, %v482_v14  ;;  %v1776_v23 = vld [vmem:[%s478_s12 + $0x8] sm:$0xff]  ;;  %v494_v24 = vadd.s32 8, %v485_v15  ;;  %s530_s14 = smov [#allocation18]  ;;  %s479_s15 = smov [#allocation19] }
 0x14f   : >> { %vm515_vm10 = vcmp.eq.s32.totalorder %v511_v15, %v508_v14  ;;  %v520_v25 = vadd.s32 8, %v511_v15  ;;  %v490_v26 = vsel %vm489_vm9, %v486_v22, 0.0  ;;  %v512_v27 = vld [vmem:[%s504_s13] sm:$0xff]  ;;  %v1777_v28 = vld [vmem:[%s504_s13 + $0x8] sm:$0xff]  ;;  %v534_v14 = vmov %v2491_v14  ;;  %s505_s16 = smov [#allocation20]  ;;  %s531_s17 = smov [#allocation21] }
 0x150   : >> { %v537_v15 = vmov %v2493_v15  ;;  %vm495_vm11 = vcmp.eq.s32.totalorder %v494_v24, %v482_v14  ;;  %v516_v29 = vsel %vm515_vm10, %v512_v27, 0.0  ;;  %v538_v30 = vld [vmem:[%s530_s14] sm:$0xff]  ;;  %v1778_v34 = vld [vmem:[%s530_s14 + $0x8] sm:$0xff]  ;;  %s560_s2 = smov [#allocation20]  ;;  %s558_s18 = smov [#allocation19]  ;;  %vm1035_vm9 = vcmp.eq.s32.totalorder %v2493_v15, 7 }
 0x151   : >> { %vm521_vm12 = vcmp.eq.s32.totalorder %v520_v25, %v508_v14  ;;  %vm541_vm13 = vcmp.eq.s32.totalorder %v537_v15, %v534_v14  ;;  %v496_v31 = vsel %vm495_vm11, %v1776_v23, %v490_v26  ;;  %v546_v35 = vadd.s32 8, %v537_v15  ;;  %s562_s19 = smov [#allocation21]  ;;  %s597_s20 = smov [#allocation22] }
 0x152   : >> { %v522_v32 = vsel %vm521_vm12, %v1777_v28, %v516_v29  ;;  %v542_v33 = vsel %vm541_vm13, %v538_v30, 0.0  ;;  %v497_v36 = vrot.slane %v496_v31, 4  ;;  %s599_s21 = smov [#allocation23]  ;;  %s556_s22 = smov [#allocation24]  ;;  %v627_v15 = vmov %v2493_v15 }
 0x153   : >> { %v523_v37 = vrot.slane %v522_v32, 4  ;;  %vm547_vm14 = vcmp.eq.s32.totalorder %v546_v35, %v534_v14  ;;  %s557_s3 = smov [#allocation25]  ;;  %s601_s22 = smov %s556_s22  ;;  %v658_v15 = vmov %v2493_v15  ;;  %v628_v24 = vadd.s32 8, %v627_v15 }
 0x154   : >> { %v498_v38 = vadd.f32 %v497_v36, %v496_v31  ;;  %v548_v40 = vsel %vm547_vm14, %v1778_v34, %v542_v33  ;;  %s603_s3 = smov %s557_s3  ;;  %v609_v14 = vmov %v2491_v14  ;;  %v612_v15 = vmov %v2493_v15  ;;  %s605_s0 = smov [#allocation24] }
 0x155   : >> { %v524_v39 = vadd.f32 %v523_v37, %v522_v32  ;;  %v549_v41 = vrot.slane %v548_v40, 4  ;;  %v624_v14 = vmov %v2491_v14  ;;  %v659_v25 = vadd.s32 8, %v658_v15  ;;  %s620_s23 = smov [#allocation24]  ;;  %s636_s24 = smov [#allocation25] }
 0x156   : >> { %v499_v42 = vrot.slane %v498_v38, 2  ;;  %v640_v14 = vmov %v2491_v14  ;;  %v643_v15 = vmov %v2493_v15  ;;  %vm614_vm3 = vcmp.eq.s32.totalorder %v612_v15, %v609_v14  ;;  %s651_s25 = smov [#allocation25]  ;;  %s618_s26 = smov [#allocation26] }
 0x157   : >> { %v525_v43 = vrot.slane %v524_v39, 2  ;;  %v550_v44 = vadd.f32 %v549_v41, %v548_v40  ;;  %v655_v14 = vmov %v2491_v14  ;;  %vm629_vm5 = vcmp.eq.s32.totalorder %v628_v24, %v624_v14  ;;  %s633_s27 = smov [#allocation26]  ;;  %s667_s28 = smov [#allocation26] }
 0x158   : >> { %v500_v45 = vadd.f32 %v499_v42, %v498_v38  ;;  %vm645_vm6 = vcmp.eq.s32.totalorder %v643_v15, %v640_v14  ;;  %vm660_vm7 = vcmp.eq.s32.totalorder %v659_v25, %v655_v14  ;;  %s649_s29 = smov [#allocation27]  ;;  %s2549_s30 = smov [#allocation15]  ;;  %v814_v15 = vmov %v2493_v15 }
 0x159   : >> { %v526_v46 = vadd.f32 %v525_v43, %v524_v39  ;;  %v551_v47 = vrot.slane %v550_v44, 2  ;;  %s664_s1 = smov [#allocation27]  ;;  %s2551_s12 = smov [#allocation16]  ;;  %v675_v38 = vld [vmem:[%s2549_s30] sm:$0xff]  ;;  %v792_v15 = vmov %v2493_v15  ;;  %v811_v14 = vmov %v2491_v14 }
 0x15a   : >> { %v501_v48 = vrot.slane %v500_v45, 1  ;;  %s2553_s13 = smov [#allocation17]  ;;  %s2555_s14 = smov [#allocation18]  ;;  %v676_v39 = vld [vmem:[%s2551_s12] sm:$0xff]  ;;  %v834_v15 = vmov %v2493_v15  ;;  %v789_v14 = vmov %v2491_v14  ;;  %vm818_vm10 = vcmp.eq.s32.totalorder %v814_v15, %v811_v14 }
 0x15b   : >> { %v527_v49 = vrot.slane %v526_v46, 1  ;;  %v552_v50 = vadd.f32 %v551_v47, %v550_v44  ;;  %v677_v40 = vld [vmem:[%s2553_s13] sm:$0xff]  ;;  %v855_v15 = vmov %v2493_v15  ;;  %v831_v14 = vmov %v2491_v14  ;;  %s477_s11 = sadd.s32 1, %s2396_s11  }
 0x15c   : >> { %v502_v51 = vadd.f32 %v501_v48, %v500_v45  ;;  %v678_v41 = vld [vmem:[%s2555_s14] sm:$0xff]  ;;  %v852_v14 = vmov %v2491_v14  ;;  %vm797_vm12 = vcmp.eq.s32.totalorder %v792_v15, %v789_v14  ;;  %vm838_vm14 = vcmp.eq.s32.totalorder %v834_v15, %v831_v14  ;;  %p474_p9 = scmp.ge.s32.totalorder %s477_s11, 31  }
 0x15d   : >> { %v528_v52 = vadd.f32 %v527_v49, %v526_v46  ;;  %v553_v53 = vrot.slane %v552_v50, 1  ;;  %s425_s11 = smov (%p474_p9), [#allocation18] }
 0x15e   : >> { %503 = vst [vmem:[%s479_s15] sm:$0x1] %v502_v51  ;;  %s1091_s15 = smov [#allocation26] }
 0x15f   : >> { %529 = vst [vmem:[%s505_s16] sm:$0x1] %v528_v52  ;;  %v554_v54 = vadd.f32 %v553_v53, %v552_v50  ;;  %s2557_s16 = smov [#allocation8] }
 0x160   : >> { %v1099_v42 = vld [vmem:[%s2557_s16] sm:$0xff] }
 0x161   : >> { %555 = vst [vmem:[%s531_s17] sm:$0x1] %v554_v54  ;;  %s2559_s17 = smov [#allocation10] }
 0x162   : >> { %v1100_v43 = vld [vmem:[%s2559_s17] sm:$0xff] }
 0x165   : >> { %v559_v57 = vld [vmem:[%s558_s18] sm:$0xff]  ;;  %s2564_s18 = smov [#allocation13] }
 0x166   : >> { %v561_v55 = vld [vmem:[%s560_s2] sm:$0xff]  ;;  %v582_v6 = vand.u32 2147483647, %v559_v57  ;;  %s2562_s2 = smov [#allocation12] }
 0x167   : >> { %v565_v56 = vmul.f32 2.0, %v561_v55  ;;  %v583_v11 = vand.u32 2147483647, %v561_v55  ;;  %v1101_v45 = vld [vmem:[%s2562_s2] sm:$0xff] }
 0x168   : >> { %v563_v58 = vld [vmem:[%s562_s19] sm:$0xff]  ;;  %s669_s19 = smov [#allocation27] }
 0x169   : >> { %2136 = vrcp.f32 %v565_v56  ;;  %v564_v59 = vsub.f32 %v563_v58, %v559_v57  ;;  %v584_v7 = vand.u32 2147483647, %v563_v58  ;;  %v1102_v46 = vld [vmem:[%s2564_s18] sm:$0xff] }
 0x16b   : >> { %v585_v10 = vmin.f32 %v582_v6, %v584_v7 }
 0x16d   : >> { %v586_v12 = vmul.f32 1.1920929e-08, %v585_v10 }
 0x16f   : >> { %vm587_vm2 = vcmp.le.f32.partialorder %v583_v11, %v586_v12 }
 0x173   : >> { %v2137_v60 = vpop.eup %2136 }
 0x174   : >> { %v567_v61 = vmul.f32 %v2137_v60, %v564_v59 }
 0x176   : >> { %v569_v62 = vmul.f32 %v567_v61, %v567_v61  ;;  %vm568_vm1 = vcmp.ge.f32.partialorder %v567_v61, 0.0 }
 0x178   : >> { %v570_v63 = vadd.f32 1.0, %v569_v62 }
 0x17a   : >> { %2138 = vrsqrt.f32 %v570_v63  ;;  %vm573_vm15 = vcmp.eq.f32.partialorder %v570_v63, inf  ;;  %v576_v1 = vand.u32 2147483648, %v570_v63  ;;  %vm575_vm0 = vcmp.eq.f32.partialorder %v570_v63, 0.0 }
 0x184   : >> { %v2139_v0 = vpop.eup %2138 }
 0x185   : >> { %v572_v2 = vmul.f32 %v2139_v0, %v570_v63 }
 0x187   : >> { %v574_v3 = vsel %vm573_vm15, %v570_v63, %v572_v2 }
 0x188   : >> { %v577_v4 = vsel %vm575_vm0, %v576_v1, %v574_v3  ;;  %vm860_vm0 = vcmp.eq.s32.totalorder %v855_v15, %v852_v14 }
 0x189   : >> { %v578_v5 = vxor.u32 2147483648, %v577_v4 }
 0x18b   : >> { %v579_v8 = vsel %vm568_vm1, %v577_v4, %v578_v5 }
 0x18c   : >> { %v580_v9 = vadd.f32 %v579_v8, %v567_v61 }
 0x18e   : >> { %2140 = vrcp.f32 %v580_v9 }
 0x198   : >> { %v2141_v13 = vpop.eup %2140 }
 0x199   : >> { %v588_v16 = vsel %vm587_vm2, 0.0, %v2141_v13  ;;  %vm882_vm2 = vcmp.eq.s32.totalorder %v2491_v14, 0 }
 0x19a   : >> { %v589_v17 = vmul.f32 %v588_v16, %v588_v16  ;;  %v593_v18 = vmul.f32 %v588_v16, %v561_v55 }
 0x19c   : >> { %v590_v19 = vadd.f32 1.0, %v589_v17  ;;  %v594_v20 = vsub.f32 %v559_v57, %v593_v18  ;;  %v596_v21 = vadd.f32 %v593_v18, %v563_v58 }
 0x19e   : >> { %2142 = vrsqrt.f32 %v590_v19  ;;  %598 = vst [vmem:[%s597_s20] sm:$0xff] %v594_v20  ;;  %600 = vst [vmem:[%s599_s21] sm:$0xff] %v596_v21  ;;  %s1093_s20 = smov [#allocation27]  ;;  %s695_s21 = smov [#allocation26] }
 0x1a8   : >> { %v2143_v22 = vpop.eup %2142 }
 0x1a9   : >> { %602 = vst [vmem:[%s601_s22] sm:$0xff] %v2143_v22  ;;  %v592_v23 = vmul.f32 %v2143_v22, %v588_v16  ;;  %s1119_s22 = smov [#allocation26] }
 0x1ab   : >> { %604 = vst [vmem:[%s603_s3] sm:$0xff] %v592_v23  ;;  %s698_s3 = smov [#allocation27] }
 0x1b0   : >> { %v606_v26 = vld [vmem:[%s605_s0] ss:$0 sm:$0xff]  ;;  %s2581_s0 = smov [#allocation15] }
 0x1b1   : >> { %v621_v27 = vld [vmem:[%s620_s23] ss:$0 sm:$0xff]  ;;  %v615_v28 = vsel %vm614_vm3, %v606_v26, 0.0  ;;  %s2583_s23 = smov [#allocation17]  ;;  %vm886_vm3 = vcmp.eq.s32.totalorder %v2491_v14, 1 }
 0x1b2   : >> { %v630_v29 = vsel %vm629_vm5, %v621_v27, 0.0  ;;  %616 = vadd.xlane.f32.xlu0 %v615_v28  ;;  %v637_v30 = vld [vmem:[%s636_s24] ss:$0 sm:$0xff]  ;;  %s1122_s24 = smov [#allocation27]  ;;  %vm899_vm5 = vcmp.eq.s32.totalorder %v2491_v14, 15 }
 0x1b3   : >> { %631 = vadd.xlane.f32.xlu1 %v630_v29  ;;  %v652_v31 = vld [vmem:[%s651_s25] ss:$0 sm:$0xff]  ;;  %v646_v32 = vsel %vm645_vm6, %v637_v30, 0.0  ;;  %s2585_s25 = smov [#allocation18] }
 0x1b4   : >> { %v661_v33 = vsel %vm660_vm7, %v652_v31, 0.0 }
 0x1b6   : >> { %647 = vadd.xlane.f32.xlu0 %v646_v32 }
 0x1b7   : >> { %662 = vadd.xlane.f32.xlu1 %v661_v33 }
 0x23f   : >> { %v617_v34 = vpop.xlane.xlu0 %616 }
 0x240   : >> { %v632_v35 = vpop.xlane.xlu1 %631  ;;  %619 = vst [vmem:[%s618_s26] sm:$0xff] %v617_v34  ;;  %s2587_s26 = smov [#allocation8] }
 0x241   : >> { %1779 = vst [vmem:[%s633_s27 + $0x8] sm:$0xff] %v632_v35  ;;  %s2589_s27 = smov [#allocation10] }
 0x243   : >> { %v648_v36 = vpop.xlane.xlu0 %647 }
 0x244   : >> { %v663_v37 = vpop.xlane.xlu1 %662  ;;  %650 = vst [vmem:[%s649_s29] sm:$0xff] %v648_v36  ;;  %s2593_s29 = smov [#allocation13] }
 0x245   : >> { %1780 = vst [vmem:[%s664_s1 + $0x8] sm:$0xff] %v663_v37  ;;  %s2609_s1 = smov [#allocation8] }
 0x248   : >> { %v668_v44 = vld [vmem:[%s667_s28] sm:$0xff]  ;;  %v1781_v10 = vld [vmem:[%s695_s21 + $0x8] sm:$0xff]  ;;  %s2591_s28 = smov [#allocation12]  ;;  %s759_s21 = smov [#allocation16] }
 0x249   : >> { %v1092_v47 = vld [vmem:[%s1091_s15] sm:$0xff]  ;;  %v679_v48 = vmul.f32 %v675_v38, %v668_v44  ;;  %v682_v49 = vmul.f32 %v676_v39, %v668_v44  ;;  %v686_v50 = vmul.f32 %v677_v40, %v668_v44  ;;  %v689_v51 = vmul.f32 %v678_v41, %v668_v44  ;;  %v1839_v11 = vld [vmem:[%s1119_s22 + $0x8] sm:$0xff]  ;;  %s731_s15 = smov [#allocation25]  ;;  %s761_s22 = smov [#allocation17] }
 0x24a   : >> { %v1103_v52 = vmul.f32 %v1099_v42, %v1092_v47  ;;  %v1106_v53 = vmul.f32 %v1100_v43, %v1092_v47  ;;  %v1110_v54 = vmul.f32 %v1101_v45, %v1092_v47  ;;  %v1113_v55 = vmul.f32 %v1102_v46, %v1092_v47 }
 0x24c   : >> { %v670_v56 = vld [vmem:[%s669_s19] sm:$0xff]  ;;  %v1782_v12 = vld [vmem:[%s698_s3 + $0x8] sm:$0xff]  ;;  %s2629_s19 = smov [#allocation18]  ;;  %s763_s3 = smov [#allocation18] }
 0x24d   : >> { %v1094_v57 = vld [vmem:[%s1093_s20] sm:$0xff]  ;;  %v680_v58 = vmul.f32 %v677_v40, %v670_v56  ;;  %v683_v59 = vmul.f32 %v678_v41, %v670_v56  ;;  %v685_v60 = vmul.f32 %v675_v38, %v670_v56  ;;  %v688_v61 = vmul.f32 %v676_v39, %v670_v56  ;;  %v1840_v13 = vld [vmem:[%s1122_s24 + $0x8] sm:$0xff]  ;;  %s757_s20 = smov [#allocation15]  ;;  %s808_s24 = smov [#allocation16] }
 0x24e   : >> { %v1104_v62 = vmul.f32 %v1101_v45, %v1094_v57  ;;  %v1107_v63 = vmul.f32 %v1102_v46, %v1094_v57  ;;  %v1109_v0 = vmul.f32 %v1099_v42, %v1094_v57  ;;  %v1112_v1 = vmul.f32 %v1100_v43, %v1094_v57 }
 0x24f   : >> { %v681_v2 = vsub.f32 %v679_v48, %v680_v58  ;;  %v684_v3 = vsub.f32 %v682_v49, %v683_v59  ;;  %v687_v4 = vadd.f32 %v686_v50, %v685_v60  ;;  %v690_v5 = vadd.f32 %v689_v51, %v688_v61 }
 0x250   : >> { %v1105_v6 = vsub.f32 %v1103_v52, %v1104_v62  ;;  %v1108_v7 = vsub.f32 %v1106_v53, %v1107_v63  ;;  %v1111_v8 = vadd.f32 %v1110_v54, %v1109_v0  ;;  %v1114_v9 = vadd.f32 %v1113_v55, %v1112_v1  ;;  %v2636_v52 = vld [vmem:[%s731_s15] ss:$0 sm:$0xff]  ;;  %s2737_s15 = smov [#allocation16] }
 0x251   : >> { %691 = vst [vmem:[%s2549_s30] sm:$0xff] %v681_v2  ;;  %693 = vst [vmem:[%s2553_s13] sm:$0xff] %v687_v4  ;;  %s2595_s30 = smov [#allocation16]  ;;  %s2614_s13 = smov [#allocation10] }
 0x252   : >> { %694 = vst [vmem:[%s2555_s14] sm:$0xff] %v690_v5  ;;  %692 = vst [vmem:[%s2551_s12] sm:$0xff] %v684_v3  ;;  %s2611_s12 = smov [#allocation12]  ;;  %s729_s14 = smov [#allocation24] }
 0x253   : >> { %1115 = vst [vmem:[%s2557_s16] sm:$0xff] %v1105_v6  ;;  %1116 = vst [vmem:[%s2559_s17] sm:$0xff] %v1108_v7  ;;  %s2619_s16 = smov [#allocation15]  ;;  %s2622_s17 = smov [#allocation13]  ;;  %v2634_v51 = vld [vmem:[%s729_s14] ss:$0 sm:$0xff] }
 0x254   : >> { %1117 = vst [vmem:[%s2562_s2] sm:$0xff] %v1111_v8  ;;  %1118 = vst [vmem:[%s2564_s18] sm:$0xff] %v1114_v9  ;;  %s2624_s2 = smov [#allocation16]  ;;  %s2627_s18 = smov [#allocation17] }
 0x255   : >> { %s2733_s14 = smov [#allocation18] }
 0x258   : >> { %v1783_v16 = vld [vmem:[%s2581_s0 + $0x8] sm:$0xff] }
 0x259   : >> { %v1785_v17 = vld [vmem:[%s2583_s23 + $0x8] sm:$0xff]  ;;  %v713_v19 = vmul.f32 %v1783_v16, %v1781_v10  ;;  %v719_v22 = vmul.f32 %v1783_v16, %v1782_v12 }
 0x25a   : >> { %v1786_v18 = vld [vmem:[%s2585_s25 + $0x8] sm:$0xff]  ;;  %v714_v20 = vmul.f32 %v1785_v17, %v1782_v12  ;;  %v720_v26 = vmul.f32 %v1785_v17, %v1781_v10 }
 0x25b   : >> { %v717_v21 = vmul.f32 %v1786_v18, %v1782_v12  ;;  %v1841_v23 = vld [vmem:[%s2587_s26 + $0x8] sm:$0xff]  ;;  %v723_v27 = vmul.f32 %v1786_v18, %v1781_v10 }
 0x25c   : >> { %v1842_v24 = vld [vmem:[%s2589_s27 + $0x8] sm:$0xff]  ;;  %v1137_v29 = vmul.f32 %v1841_v23, %v1839_v11  ;;  %v715_v32 = vsub.f32 %v713_v19, %v714_v20  ;;  %v1143_v35 = vmul.f32 %v1841_v23, %v1840_v13  ;;  %v721_v36 = vadd.f32 %v720_v26, %v719_v22 }
 0x25d   : >> { %v1843_v25 = vld [vmem:[%s2591_s28 + $0x8] sm:$0xff]  ;;  %v1140_v33 = vmul.f32 %v1842_v24, %v1839_v11  ;;  %v1146_v39 = vmul.f32 %v1842_v24, %v1840_v13 }
 0x25e   : >> { %v1844_v28 = vld [vmem:[%s2593_s29 + $0x8] sm:$0xff]  ;;  %v1138_v30 = vmul.f32 %v1843_v25, %v1840_v13  ;;  %v1144_v38 = vmul.f32 %v1843_v25, %v1839_v11  ;;  %1787 = vst [vmem:[%s2581_s0 + $0x8] sm:$0xff] %v715_v32  ;;  %1789 = vst [vmem:[%s2583_s23 + $0x8] sm:$0xff] %v721_v36  ;;  %s786_s0 = smov [#allocation22]  ;;  %s849_s23 = smov [#allocation23] }
 0x25f   : >> { %v1784_v31 = vld [vmem:[%s2595_s30 + $0x8] sm:$0xff]  ;;  %v1141_v34 = vmul.f32 %v1844_v28, %v1840_v13  ;;  %v1147_v41 = vmul.f32 %v1844_v28, %v1839_v11 }
 0x260   : >> { %v1139_v37 = vsub.f32 %v1137_v29, %v1138_v30  ;;  %v716_v42 = vmul.f32 %v1784_v31, %v1781_v10  ;;  %v722_v43 = vmul.f32 %v1784_v31, %v1782_v12  ;;  %v1145_v44 = vadd.f32 %v1144_v38, %v1143_v35 }
 0x261   : >> { %v1142_v40 = vsub.f32 %v1140_v33, %v1141_v34  ;;  %v1148_v45 = vadd.f32 %v1147_v41, %v1146_v39 }
 0x262   : >> { %1845 = vst [vmem:[%s2587_s26 + $0x8] sm:$0xff] %v1139_v37  ;;  %v718_v46 = vsub.f32 %v716_v42, %v717_v21  ;;  %v724_v47 = vadd.f32 %v723_v27, %v722_v43  ;;  %1847 = vst [vmem:[%s2591_s28 + $0x8] sm:$0xff] %v1145_v44  ;;  %s828_s26 = smov [#allocation17]  ;;  %s2722_s28 = smov [#allocation16] }
 0x263   : >> { %1846 = vst [vmem:[%s2589_s27 + $0x8] sm:$0xff] %v1142_v40  ;;  %1848 = vst [vmem:[%s2593_s29 + $0x8] sm:$0xff] %v1148_v45  ;;  %s848_s27 = smov [#allocation18]  ;;  %s2724_s29 = smov [#allocation15] }
 0x264   : >> { %1788 = vst [vmem:[%s2595_s30 + $0x8] sm:$0xff] %v718_v46  ;;  %1790 = vst [vmem:[%s2585_s25 + $0x8] sm:$0xff] %v724_v47  ;;  %v824_v46 = vadd.s32 8, %v814_v15  ;;  %v804_v47 = vadd.s32 8, %v792_v15  ;;  %s2710_s25 = smov [#allocation15]  ;;  %s2399_s30 = smov 1  }
 0x265   : >> { %v737_v53 = vld [vmem:[%s2619_s16] sm:$0xff] }
 0x266   : >> { %v741_v11 = vmul.f32 %v737_v53, %v2634_v51  ;;  %v744_v12 = vmul.f32 %v737_v53, %v2636_v52  ;;  %v739_v18 = vld [vmem:[%s2627_s18] sm:$0xff]  ;;  %vm825_vm11 = vcmp.eq.s32.totalorder %v824_v46, %v811_v14  ;;  %vm805_vm13 = vcmp.eq.s32.totalorder %v804_v47, %v789_v14 }
 0x267   : >> { %v747_v22 = vmul.f32 %v739_v18, %v2634_v51  ;;  %v750_v24 = vmul.f32 %v739_v18, %v2636_v52 }
 0x269   : >> { %v1155_v48 = vld [vmem:[%s2609_s1] ss:$0 sm:$0xff]  ;;  %v1850_v50 = vld [vmem:[%s2609_s1 + $0x7] ss:$0 sm:$0xff]  ;;  %v1851_v55 = vld [vmem:[%s2609_s1 + $0x7] sm:$0xfe] }
 0x26a   : >> { %v1849_v49 = vld [vmem:[%s2609_s1 - $0x1] sm:$0xfe]  ;;  %v1852_v56 = vld [vmem:[%s2609_s1 + $0xf] ss:$0 sm:$0xff]  ;;  %v1173_v58 = vsel %vm1011_vm8, %v1850_v50, %v1851_v55  ;;  %v1856_v61 = vld [vmem:[%s2611_s12 + $0x8] ss:$0 sm:$0xff] }
 0x26b   : >> { %v1162_v54 = vsel %vm1011_vm8, %v1155_v48, %v1849_v49  ;;  %v1199_v57 = vld [vmem:[%s2614_s13] ss:$0 sm:$0xff]  ;;  %v1855_v60 = vld [vmem:[%s2611_s12 + $0x9] sm:$0x7f]  ;;  %1853 = vst [vmem:[%s2609_s1 + $0x8] sm:$0xff] %v1173_v58  ;;  %v844_v48 = vadd.s32 8, %v834_v15 }
 0x26c   : >> { %1165 = vst [vmem:[%s2609_s1] sm:$0xff] %v1162_v54  ;;  %v1177_v59 = vld [vmem:[%s2611_s12] ss:$0 sm:$0xff]  ;;  %v1186_v62 = vsel %vm1035_vm9, %v1852_v56, %v1855_v60  ;;  %v1858_v63 = vld [vmem:[%s2611_s12 + $0x1] sm:$0x7f]  ;;  %v1861_v4 = vld [vmem:[%s2614_s13 + $0x7] sm:$0xfe] }
 0x26d   : >> { %1854 = vst [vmem:[%s2609_s1 + $0x1] sm:$0x1] %v1177_v59  ;;  %v1859_v0 = vld [vmem:[%s2614_s13 - $0x1] sm:$0xfe]  ;;  %v1860_v1 = vld [vmem:[%s2614_s13 + $0x7] ss:$0 sm:$0xff]  ;;  %v1194_v2 = vsel %vm1035_vm9, %v1856_v61, %v1858_v63  ;;  %vm845_vm15 = vcmp.eq.s32.totalorder %v844_v48, %v831_v14 }
 0x26e   : >> { %1857 = vst [vmem:[%s2611_s12 + $0x8] sm:$0xff] %v1186_v62  ;;  %v1206_v3 = vsel %vm1011_vm8, %v1199_v57, %v1859_v0  ;;  %v1862_v5 = vld [vmem:[%s2614_s13 + $0xf] ss:$0 sm:$0xff]  ;;  %v1221_v6 = vld [vmem:[%s2622_s17] ss:$0 sm:$0xff]  ;;  %1196 = vst [vmem:[%s2611_s12] sm:$0xff] %v1194_v2  ;;  %v1217_v7 = vsel %vm1011_vm8, %v1860_v1, %v1861_v4  ;;  %v867_v49 = vadd.s32 8, %v855_v15  ;;  %v349_v15 = vmov (%p474_p9), %v2493_v15 }
 0x26f   : >> { %1209 = vst [vmem:[%s2614_s13] sm:$0xff] %v1206_v3  ;;  %v1865_v8 = vld [vmem:[%s2622_s17 + $0x9] sm:$0x7f]  ;;  %v1866_v9 = vld [vmem:[%s2622_s17 + $0x8] ss:$0 sm:$0xff]  ;;  %v1868_v10 = vld [vmem:[%s2622_s17 + $0x1] sm:$0x7f] }
 0x270   : >> { %1863 = vst [vmem:[%s2614_s13 + $0x8] sm:$0xff] %v1217_v7  ;;  %1864 = vst [vmem:[%s2614_s13 + $0x1] sm:$0x1] %v1221_v6  ;;  %v1230_v13 = vsel %vm1035_vm9, %v1862_v5, %v1865_v8  ;;  %v1238_v16 = vsel %vm1035_vm9, %v1866_v9, %v1868_v10  ;;  %v738_v17 = vld [vmem:[%s2624_s2] sm:$0xff]  ;;  %vm868_vm1 = vcmp.eq.s32.totalorder %v867_v49, %v852_v14  ;;  %s2728_s1 = smov [#allocation15]  ;;  %s2731_s12 = smov [#allocation17]  ;;  %v346_v14 = vmov (%p474_p9), %v2491_v14 }
 0x271   : >> { %v740_v19 = vld [vmem:[%s2629_s19] sm:$0xff]  ;;  %1867 = vst [vmem:[%s2622_s17 + $0x8] sm:$0xff] %v1230_v13  ;;  %1240 = vst [vmem:[%s2622_s17] sm:$0xff] %v1238_v16  ;;  %v742_v20 = vmul.f32 %v738_v17, %v2636_v52  ;;  %v745_v21 = vmul.f32 %v738_v17, %v2634_v51  ;;  %s2400_s13 = smov 127   ;;  %s2742_s17 = smov [#allocation18]  ;;  %vm361_vm6 = vcmp.eq.s32.totalorder (%p474_p9), %v349_v15, %v346_v14  ;;  %v375_v14 = vmov (%p474_p9), %v2491_v14 }
 0x272   : >> { %v748_v23 = vmul.f32 %v740_v19, %v2636_v52  ;;  %v751_v25 = vmul.f32 %v740_v19, %v2634_v51  ;;  %v793_v50 = vld [vmem:[%s786_s0] ss:$0 sm:$0xff]  ;;  %s402_s0 = smov (%p474_p9), [#allocation17] }
 0x273   : >> { %v743_v26 = vsub.f32 %v741_v11, %v742_v20  ;;  %v746_v27 = vadd.f32 %v745_v21, %v744_v12 }
 0x274   : >> { %v749_v28 = vsub.f32 %v747_v22, %v748_v23  ;;  %v752_v29 = vadd.f32 %v751_v25, %v750_v24 }
 0x275   : >> { %753 = vst [vmem:[%s2619_s16] sm:$0xff] %v743_v26  ;;  %754 = vst [vmem:[%s2624_s2] sm:$0xff] %v746_v27  ;;  %s2740_s16 = smov [#allocation17]  ;;  %s2780_s2 = smov [#allocation15] }
 0x276   : >> { %755 = vst [vmem:[%s2627_s18] sm:$0xff] %v749_v28  ;;  %756 = vst [vmem:[%s2629_s19] sm:$0xff] %v752_v29  ;;  %s2784_s18 = smov [#allocation16]  ;;  %s2789_s19 = smov [#allocation17] }
 0x27c   : >> { %v1791_v30 = vld [vmem:[%s757_s20 + $0x8] sm:$0xff] }
 0x27d   : >> { %v1792_v31 = vld [vmem:[%s759_s21 + $0x8] sm:$0xff]  ;;  %v772_v34 = vmul.f32 %v1791_v30, %v2636_v52  ;;  %v769_v36 = vmul.f32 %v1791_v30, %v2634_v51 }
 0x27e   : >> { %v1793_v32 = vld [vmem:[%s761_s22 + $0x8] sm:$0xff]  ;;  %v770_v33 = vmul.f32 %v1792_v31, %v2636_v52  ;;  %v773_v35 = vmul.f32 %v1792_v31, %v2634_v51 }
 0x27f   : >> { %v1794_v37 = vld [vmem:[%s763_s3 + $0x8] sm:$0xff]  ;;  %v775_v38 = vmul.f32 %v1793_v32, %v2634_v51  ;;  %v778_v40 = vmul.f32 %v1793_v32, %v2636_v52 }
 0x280   : >> { %v776_v39 = vmul.f32 %v1794_v37, %v2636_v52  ;;  %v779_v41 = vmul.f32 %v1794_v37, %v2634_v51  ;;  %v774_v42 = vadd.f32 %v773_v35, %v772_v34  ;;  %v771_v43 = vsub.f32 %v769_v36, %v770_v33  ;;  %v856_v51 = vld [vmem:[%s849_s23] ss:$0 sm:$0xff] }
 0x282   : >> { %v777_v44 = vsub.f32 %v775_v38, %v776_v39  ;;  %v780_v45 = vadd.f32 %v779_v41, %v778_v40  ;;  %1796 = vst [vmem:[%s759_s21 + $0x8] sm:$0xff] %v774_v42  ;;  %1795 = vst [vmem:[%s757_s20 + $0x8] sm:$0xff] %v771_v43  ;;  %s1048_s20 = smov [#allocation18]  ;;  %s1241_s21 = sadd.s32 (%p474_p9), 1, %s2392_s10  }
 0x283   : > { %p470_p10 = scmp.ge.s32.totalorder (%p474_p9), %s1241_s21, 15  ;;  %s2937_s10 = smov (%p474_p9), %s1241_s21 }
 0x284   : >> { %1797 = vst [vmem:[%s761_s22 + $0x8] sm:$0xff] %v777_v44  ;;  %1798 = vst [vmem:[%s763_s3 + $0x8] sm:$0xff] %v780_v45  ;;  %s350_s22 = smov (%p474_p9), [#allocation15]  ;;  %s379_s3 = smov (%p474_p9), [#allocation16] }
 0x289   : >> { %v815_v52 = vld [vmem:[%s808_s24] sm:$0xff]  ;;  %v1801_v53 = vld [vmem:[%s808_s24 + $0x8] sm:$0xff] }
 0x28a   : >> { %v794_v54 = vld [vmem:[%s2710_s25] sm:$0xff]  ;;  %v819_v55 = vsel %vm818_vm10, 0.0, %v815_v52  ;;  %v826_v56 = vsel %vm825_vm11, 0.0, %v1801_v53  ;;  %v1799_v58 = vld [vmem:[%s2710_s25 + $0x8] sm:$0xff] }
 0x28b   : >> { %v798_v57 = vsel %vm797_vm12, %v793_v50, %v794_v54  ;;  %v835_v59 = vld [vmem:[%s828_s26] sm:$0xff]  ;;  %v1803_v60 = vld [vmem:[%s828_s26 + $0x8] sm:$0xff]  ;;  %820 = vst [vmem:[%s808_s24] sm:$0xff] %v819_v55  ;;  %1802 = vst [vmem:[%s808_s24 + $0x8] sm:$0xff] %v826_v56  ;;  %v806_v61 = vsel %vm805_vm13, %v793_v50, %v1799_v58 }
 0x28c   : >> { %799 = vst [vmem:[%s2710_s25] sm:$0xff] %v798_v57  ;;  %v839_v62 = vsel %vm838_vm14, 0.0, %v835_v59  ;;  %v846_v63 = vsel %vm845_vm15, 0.0, %v1803_v60  ;;  %v857_v0 = vld [vmem:[%s848_s27] sm:$0xff]  ;;  %v1805_v1 = vld [vmem:[%s848_s27 + $0x8] sm:$0xff]  ;;  %1800 = vst [vmem:[%s2710_s25 + $0x8] sm:$0xff] %v806_v61 }
 0x28d   : >> { %840 = vst [vmem:[%s828_s26] sm:$0xff] %v839_v62  ;;  %1804 = vst [vmem:[%s828_s26 + $0x8] sm:$0xff] %v846_v63  ;;  %v861_v2 = vsel %vm860_vm0, %v856_v51, %v857_v0  ;;  %v869_v3 = vsel %vm868_vm1, %v856_v51, %v1805_v1 }
 0x28e   : >> { %862 = vst [vmem:[%s848_s27] sm:$0xff] %v861_v2  ;;  %1806 = vst [vmem:[%s848_s27 + $0x8] sm:$0xff] %v869_v3 }
 0x292   : >> { %v873_v4 = vld [vmem:[%s2722_s28] sm:$0xff]  ;;  %v1807_v9 = vld [vmem:[%s2737_s15 + $0x8] sm:$0xff] }
 0x293   : >> { %874 = vrot.lane.b32.xlu1 %v873_v4, %s2399_s30  ;;  %v877_v5 = vld [vmem:[%s2724_s29] sm:$0xff]  ;;  %v1809_v6 = vld [vmem:[%s2728_s1 + $0x8] sm:$0xff] }
 0x294   : >> { %878 = vrot.lane.b32.xlu0 %v877_v5, %s2399_s30  ;;  %v943_v7 = vld [vmem:[%s2731_s12] sm:$0xff]  ;;  %v1815_v10 = vld [vmem:[%s2740_s16 + $0x8] sm:$0xff] }
 0x295   : >> { %v939_v8 = vld [vmem:[%s2733_s14] sm:$0xff]  ;;  %v1813_v11 = vld [vmem:[%s2742_s17 + $0x8] sm:$0xff] }
 0x297   : >> { %910 = vrot.lane.b32.xlu1 %v1809_v6, %s2399_s30 }
 0x298   : >> { %895 = vrot.lane.b32.xlu0 %v873_v4, %s2400_s13 }
 0x29b   : >> { %944 = vrot.lane.b32.xlu1 %v943_v7, %s2399_s30 }
 0x29c   : >> { %940 = vrot.lane.b32.xlu0 %v939_v8, %s2399_s30 }
 0x29f   : >> { %906 = vrot.lane.b32.xlu1 %v1807_v9, %s2399_s30 }
 0x2a0   : >> { %927 = vrot.lane.b32.xlu0 %v1807_v9, %s2400_s13 }
 0x2a3   : >> { %976 = vrot.lane.b32.xlu1 %v1815_v10, %s2399_s30 }
 0x2a4   : >> { %972 = vrot.lane.b32.xlu0 %v1813_v11, %s2399_s30 }
 0x2a7   : >> { %961 = vrot.lane.b32.xlu1 %v939_v8, %s2400_s13 }
 0x2ab   : >> { %993 = vrot.lane.b32.xlu1 %v1813_v11, %s2400_s13 }
 0x305   : >> { %v875_v12 = vpop.permute.xlu1 %874 }
 0x306   : >> { %v879_v13 = vpop.permute.xlu0 %878 }
 0x307   : >> { %v883_v16 = vsel %vm882_vm2, %v877_v5, %v879_v13 }
 0x308   : >> { %v887_v17 = vsel %vm886_vm3, %v875_v12, %v883_v16 }
 0x309   : >> { %v893_v18 = vsel %vm1601_vm4, %v887_v17, 0.0  ;;  %v911_v19 = vpop.permute.xlu1 %910 }
 0x30a   : >> { %v896_v20 = vpop.permute.xlu0 %895  ;;  %933 = vst [vmem:[%s2724_s29] sm:$0xff] %v893_v18  ;;  %v915_v27 = vsel %vm882_vm2, %v1809_v6, %v911_v19 }
 0x30b   : >> { %v900_v21 = vsel %vm899_vm5, %v877_v5, %v896_v20 }
 0x30c   : >> { %934 = vst [vmem:[%s2722_s28] sm:$0xff] %v900_v21 }
 0x30d   : >> { %v945_v22 = vpop.permute.xlu1 %944 }
 0x30e   : >> { %v949_v23 = vsel %vm882_vm2, %v943_v7, %v945_v22  ;;  %v941_v24 = vpop.permute.xlu0 %940 }
 0x30f   : >> { %v953_v25 = vsel %vm886_vm3, %v941_v24, %v949_v23 }
 0x310   : >> { %v959_v26 = vsel %vm1601_vm4, %v953_v25, 0.0 }
 0x311   : >> { %v907_v28 = vpop.permute.xlu1 %906  ;;  %999 = vst [vmem:[%s2731_s12] sm:$0xff] %v959_v26 }
 0x312   : >> { %v919_v29 = vsel %vm886_vm3, %v907_v28, %v915_v27  ;;  %v928_v30 = vpop.permute.xlu0 %927 }
 0x313   : >> { %v925_v31 = vsel %vm1601_vm4, %v919_v29, 0.0  ;;  %v932_v32 = vsel %vm899_vm5, %v1809_v6, %v928_v30 }
 0x314   : >> { %1811 = vst [vmem:[%s2728_s1 + $0x8] sm:$0xff] %v925_v31  ;;  %1812 = vst [vmem:[%s2737_s15 + $0x8] sm:$0xff] %v932_v32 }
 0x315   : >> { %v977_v33 = vpop.permute.xlu1 %976 }
 0x316   : >> { %v981_v34 = vsel %vm882_vm2, %v1815_v10, %v977_v33  ;;  %v973_v35 = vpop.permute.xlu0 %972 }
 0x317   : >> { %v985_v36 = vsel %vm886_vm3, %v973_v35, %v981_v34 }
 0x318   : >> { %v991_v37 = vsel %vm1601_vm4, %v985_v36, 0.0 }
 0x319   : >> { %v962_v38 = vpop.permute.xlu1 %961  ;;  %1817 = vst [vmem:[%s2740_s16 + $0x8] sm:$0xff] %v991_v37 }
 0x31a   : >> { %v966_v39 = vsel %vm899_vm5, %v943_v7, %v962_v38  ;;  %v368_v7 = vadd.s32 (%p474_p9), 8, %v349_v15  ;;  %v378_v15 = vmov (%p474_p9), %v2493_v15 }
 0x31b   : >> { %v1005_v40 = vld [vmem:[%s2780_s2] ss:$0 sm:$0xff]  ;;  %v1820_v42 = vld [vmem:[%s2780_s2 + $0x7] ss:$0 sm:$0xff]  ;;  %1000 = vst [vmem:[%s2733_s14] sm:$0xff] %v966_v39  ;;  %v1821_v44 = vld [vmem:[%s2780_s2 + $0x7] sm:$0xfe]  ;;  %v424_v15 = vmov (%p474_p9), %v2493_v15 }
 0x31c   : >> { %v1819_v41 = vld [vmem:[%s2780_s2 - $0x1] sm:$0xfe]  ;;  %v1023_v47 = vsel %vm1011_vm8, %v1820_v42, %v1821_v44  ;;  %v1830_v49 = vld [vmem:[%s2784_s18 + $0x7] ss:$0 sm:$0xff]  ;;  %v1831_v50 = vld [vmem:[%s2784_s18 + $0x7] sm:$0xfe]  ;;  %vm369_vm7 = vcmp.eq.s32.totalorder (%p474_p9), %v368_v7, %v346_v14  ;;  %v398_v14 = vmov (%p474_p9), %v2491_v14  ;;  %v401_v15 = vmov (%p474_p9), %v2493_v15 }
 0x31d   : >> { %v1012_v43 = vsel %vm1011_vm8, %v1005_v40, %v1819_v41  ;;  %v1049_v45 = vld [vmem:[%s2784_s18] ss:$0 sm:$0xff]  ;;  %v1832_v51 = vld [vmem:[%s2784_s18 + $0xf] ss:$0 sm:$0xff]  ;;  %v994_v52 = vpop.permute.xlu1 %993  ;;  %v1067_v53 = vsel %vm1011_vm8, %v1830_v49, %v1831_v50  ;;  %v421_v14 = vmov (%p474_p9), %v2491_v14  ;;  %v445_v36 = vadd.s32 (%p474_p9), 8, %v424_v15 }
 0x31e   : >> { %v1829_v46 = vld [vmem:[%s2784_s18 - $0x1] sm:$0xfe]  ;;  %1015 = vst [vmem:[%s2780_s2] sm:$0xff] %v1012_v43  ;;  %v998_v54 = vsel %vm899_vm5, %v1815_v10, %v994_v52  ;;  %v1822_v55 = vld [vmem:[%s2780_s2 + $0xf] ss:$0 sm:$0xff]  ;;  %1833 = vst [vmem:[%s2784_s18 + $0x8] sm:$0xff] %v1067_v53 }
 0x31f   : >> { %v1056_v48 = vsel %vm1011_vm8, %v1049_v45, %v1829_v46  ;;  %1818 = vst [vmem:[%s2742_s17 + $0x8] sm:$0xff] %v998_v54  ;;  %1823 = vst [vmem:[%s2780_s2 + $0x8] sm:$0xff] %v1023_v47  ;;  %vm436_vm8 = vcmp.eq.s32.totalorder (%p474_p9), %v424_v15, %v421_v14 }
 0x320   : >> { %1059 = vst [vmem:[%s2784_s18] sm:$0xff] %v1056_v48  ;;  %v1027_v56 = vld [vmem:[%s2789_s19] ss:$0 sm:$0xff]  ;;  %v1825_v57 = vld [vmem:[%s2789_s19 + $0x9] sm:$0x7f]  ;;  %v1826_v58 = vld [vmem:[%s2789_s19 + $0x8] ss:$0 sm:$0xff] }
 0x321   : >> { %1824 = vst [vmem:[%s2780_s2 + $0x1] sm:$0x1] %v1027_v56  ;;  %v1036_v59 = vsel %vm1035_vm9, %v1822_v55, %v1825_v57  ;;  %v1828_v60 = vld [vmem:[%s2789_s19 + $0x1] sm:$0x7f] }
 0x322   : >> { %1827 = vst [vmem:[%s2789_s19 + $0x8] sm:$0xff] %v1036_v59  ;;  %v1044_v61 = vsel %vm1035_vm9, %v1826_v58, %v1828_v60 }
 0x323   : >> { %1046 = vst [vmem:[%s2789_s19] sm:$0xff] %v1044_v61 }
 0x325   : > { %476 = sbr.rel (!%p474_p9) target bundleno = 333 (0x14d), region = 388 }
 0x326   : >> { %v1071_v62 = vld [vmem:[%s1048_s20] ss:$0 sm:$0xff]  ;;  %v1835_v63 = vld [vmem:[%s1048_s20 + $0x9] sm:$0x7f]  ;;  %v1836_v0 = vld [vmem:[%s1048_s20 + $0x8] ss:$0 sm:$0xff] }
 0x327   : >> { %1834 = vst [vmem:[%s2784_s18 + $0x1] sm:$0x1] %v1071_v62  ;;  %v1080_v1 = vsel %vm1035_vm9, %v1832_v51, %v1835_v63  ;;  %v1838_v2 = vld [vmem:[%s1048_s20 + $0x1] sm:$0x7f] }
 0x328   : >> { %1837 = vst [vmem:[%s1048_s20 + $0x8] sm:$0xff] %v1080_v1  ;;  %v1088_v3 = vsel %vm1035_vm9, %v1836_v0, %v1838_v2  ;;  %v356_v4 = vld [vmem:[%s350_s22] sm:$0xff] (%p474_p9)  ;;  %v1869_v5 = vld [vmem:[%s350_s22 + $0x8] sm:$0xff] (%p474_p9)  ;;  %vm446_vm9 = vcmp.eq.s32.totalorder (%p474_p9), %v445_v36, %v421_v14 }
 0x329   : >> { %1090 = vst [vmem:[%s1048_s20] sm:$0xff] %v1088_v3  ;;  %v357_v8 = vsel (%p474_p9), %vm1601_vm4, %v356_v4, 0.0  ;;  %v365_v9 = vsel (%p474_p9), %vm1601_vm4, %v1869_v5, 0.0 }
 0x32a   : > { %v408_v12 = vld [vmem:[%s402_s0] sm:$0xff] (%p474_p9)  ;;  %v358_v13 = vmul.f32 (%p474_p9), %v357_v8, %v357_v8  ;;  %v366_v16 = vmul.f32 (%p474_p9), %v365_v9, %v365_v9  ;;  %v1871_v19 = vld [vmem:[%s402_s0 + $0x8] sm:$0xff] (%p474_p9) }
 0x32b   : > { %v409_v20 = vsel (%p474_p9), %vm1601_vm4, %v408_v12, 0.0  ;;  %v415_v24 = vsel (%p474_p9), %vm1601_vm4, %v1871_v19, 0.0 }
 0x32c   : > { %v372_v21 = vadd.f32 %v366_v16, %v358_v13  ;;  %v362_v25 = vsel %vm361_vm6, 0.0, %v358_v13  ;;  %v410_v27 = vmul.f32 %v409_v20, %v409_v20  ;;  %v370_v29 = vsel %vm369_vm7, 0.0, %v366_v16 }
 0x32d   : > { %v371_v31 = vadd.f32 %v370_v29, %v362_v25  ;;  %v416_v33 = vmul.f32 %v415_v24, %v415_v24 }
 0x32e   : > { %v385_v6 = vld [vmem:[%s379_s3] sm:$0xff]  ;;  %v1870_v11 = vld [vmem:[%s379_s3 + $0x8] sm:$0xff] }
 0x32f   : > { %v386_v10 = vsel %vm1601_vm4, %v385_v6, 0.0  ;;  %v392_v18 = vsel %vm1601_vm4, %v1870_v11, 0.0 }
 0x330   : > { %v387_v17 = vmul.f32 %v386_v10, %v386_v10  ;;  %v393_v22 = vmul.f32 %v392_v18, %v392_v18  ;;  %v431_v23 = vld [vmem:[%s425_s11] sm:$0xff]  ;;  %v1872_v28 = vld [vmem:[%s425_s11 + $0x8] sm:$0xff] }
 0x331   : > { %v432_v30 = vsel %vm1601_vm4, %v431_v23, 0.0  ;;  %v442_v34 = vsel %vm1601_vm4, %v1872_v28, 0.0 }
 0x332   : > { %v389_v26 = vadd.f32 %v387_v17, %v372_v21  ;;  %v388_v35 = vadd.f32 %v387_v17, %v371_v31  ;;  %v433_v38 = vmul.f32 %v432_v30, %v432_v30  ;;  %v443_v41 = vmul.f32 %v442_v34, %v442_v34 }
 0x334   : > { %v395_v32 = vadd.f32 %v393_v22, %v389_v26  ;;  %v394_v39 = vadd.f32 %v393_v22, %v388_v35  ;;  %v437_v44 = vsel %vm436_vm8, 0.0, %v433_v38  ;;  %v447_v47 = vsel %vm446_vm9, 0.0, %v443_v41 }
 0x336   : > { %v412_v37 = vadd.f32 %v410_v27, %v395_v32  ;;  %v411_v42 = vadd.f32 %v410_v27, %v394_v39 }
 0x338   : > { %v418_v40 = vadd.f32 %v416_v33, %v412_v37  ;;  %v417_v45 = vadd.f32 %v416_v33, %v411_v42 }
 0x33a   : > { %v439_v43 = vadd.f32 %v433_v38, %v418_v40  ;;  %v438_v48 = vadd.f32 %v437_v44, %v417_v45 }
 0x33c   : > { %v449_v46 = vadd.f32 %v443_v41, %v439_v43  ;;  %v448_v49 = vadd.f32 %v447_v47, %v438_v48 }
 0x33e   : > { %450 = vadd.xlane.f32.xlu0 %v449_v46 }
 0x342   : > { %458 = vadd.xlane.f32.xlu0 %v448_v49 }
 0x3cb   : > { %v451_v50 = vpop.xlane.xlu0 %450 }
 0x3cc   : > { %v452_v51 = vrot.slane %v451_v50, 4 }
 0x3ce   : > { %v453_v52 = vadd.f32 %v452_v51, %v451_v50 }
 0x3cf   : > { %v459_v53 = vpop.xlane.xlu0 %458 }
 0x3d0   : > { %v454_v54 = vrot.slane %v453_v52, 2  ;;  %v460_v55 = vrot.slane %v459_v53, 4 }
 0x3d2   : > { %v461_v56 = vadd.f32 %v460_v55, %v459_v53  ;;  %v455_v57 = vadd.f32 %v454_v54, %v453_v52 }
 0x3d4   : > { %v462_v58 = vrot.slane %v461_v56, 2  ;;  %v456_v60 = vrot.slane %v455_v57, 1 }
 0x3d6   : > { %v463_v59 = vadd.f32 %v462_v58, %v461_v56  ;;  %v457_v63 = vadd.f32 %v456_v60, %v455_v57 }
 0x3d8   : > { %v464_v61 = vrot.slane %v463_v59, 1 }
 0x3da   : > { %v465_v62 = vadd.f32 %v464_v61, %v463_v59 }
 0x3dc   : > { %1885 = vpush %v465_v62 }
 0x3dd   : > { %1887 = vpush %v457_v63 }
 0x40d   : > { %s1886_s23 = spop %1885 }
 0x40e   : > { %s1888_s24 = spop %1887 }
 0x40f   : > { %s468_s25 = smul.f32 1e-10, %s1888_s24 }
 0x411   : > { %p469_p11 = scmp.le.f32.partialorder %s1886_s23, %s468_s25 }
 0x413   : > { %p471_p12 = por %p470_p10, %p469_p11 }
 0x415   :  { %1243 = sbr.rel (!%p471_p12) target bundleno = 332 (0x14c), region = 399 }
 0x41c PF:  { %s1244_s26 = smov [#allocation15]  ;;  %v1248_v14 = vmov %v2491_v14  ;;  %v1251_v15 = vmov %v2493_v15  ;;  %s2401_s27 = smov [#allocation10]  }
 0x41d   :  { %v1274_v14 = vmov %v2491_v14  ;;  %v1277_v15 = vmov %v2493_v15  ;;  %s1446_s28 = sshll.u32 %s2401_s27, 4  ;;  %v1252_v0 = vld [vmem:[%s1244_s26] sm:$0xff]  ;;  %vm1255_vm10 = vcmp.eq.s32.totalorder %v1251_v15, %v1248_v14  ;;  %v1873_v1 = vld [vmem:[%s1244_s26 + $0x8] sm:$0xff]  ;;  %v1260_v2 = vadd.s32 8, %v1251_v15  ;;  %s1270_s10 = smov [#allocation18]  ;;  %s1447_s28 = int_to_ptr.vmem [resolvable:$true] %s1446_s28 }
 0x41e   :  { %vm1281_vm11 = vcmp.eq.s32.totalorder %v1277_v15, %v1274_v14  ;;  %v1286_v3 = vadd.s32 8, %v1277_v15  ;;  %v1256_v4 = vsel %vm1255_vm10, %v1252_v0, 0.0  ;;  %s2144_s29 = scalar_lea.vmem %s1447_s28, 256  ;;  %p2149_p0 = scmp.lt.s32.totalorder %s1447_s28, %s1447_s28 }
 0x41f   :  { %p2145_p13 = scmp.ne.s32.totalorder %s1447_s28, %s2144_s29  ;;  %p2150_p1 = scmp.lt.s32.totalorder %s2144_s29, %s2144_s29 }
 0x421   :  { %p2151_p2 = por %p2150_p1, %p2149_p0 }
 0x423   :  { %p2152_p3 = pnand %p2151_p2, %p2145_p13 }
 0x425   :  { %2155 = shalt.err (!%p2152_p3)
}
 0x426   :  { %s2156_s12 = scalar_lea.hbm %s2934_s7, 256 }
 0x427   :  { %p2157_p4 = scmp.ne.s32.totalorder %s2934_s7, %s2156_s12  ;;  %p2160_p5 = scmp.lt.u32.totalorder %s2156_s12, %s2934_s7 }
 0x429   :  { %p2162_p6 = pnand %p2160_p5, %p2157_p4 }
 0x42b   :  { %2165 = shalt.err (!%p2162_p6)
}
 0x42c   :  { %1449 = dma.vmem_to_hbm [thread:$0]  %s1447_s28, 256, %s2934_s7, [#allocation11]   ;;  %vm1261_vm4 = vcmp.eq.s32.totalorder %v1260_v2, %v1248_v14  ;;  %v1278_v5 = vld [vmem:[%s1270_s10] sm:$0xff]  ;;  %v1874_v6 = vld [vmem:[%s1270_s10 + $0x8] sm:$0xff]  ;;  %vm1287_vm12 = vcmp.eq.s32.totalorder %v1286_v3, %v1274_v14 }
 0x42d   :  { %v1262_v7 = vsel %vm1261_vm4, %v1873_v1, %v1256_v4  ;;  %v1282_v8 = vsel %vm1281_vm11, %v1278_v5, 0.0  ;;  %s2402_s18 = smov [#allocation8]   ;;  %s2403_s20 = smov [#allocation12]  }
 0x42e   :  { %v1263_v9 = vrot.slane %v1262_v7, 4  ;;  %v1288_v10 = vsel %vm1287_vm12, %v1874_v6, %v1282_v8  ;;  %s1439_s19 = sshll.u32 %s2402_s18, 4  ;;  %s1453_s21 = sshll.u32 %s2403_s20, 4  ;;  %s1440_s19 = int_to_ptr.vmem [resolvable:$true] %s1439_s19  ;;  %s1454_s21 = int_to_ptr.vmem [resolvable:$true] %s1453_s21 }
 0x42f   :  { %v1289_v11 = vrot.slane %v1288_v10, 4  ;;  %s2166_s22 = scalar_lea.vmem %s1440_s19, 256  ;;  %p2171_p8 = scmp.lt.s32.totalorder %s1440_s19, %s1440_s19 }
 0x430   :  { %v1264_v12 = vadd.f32 %v1263_v9, %v1262_v7  ;;  %p2167_p7 = scmp.ne.s32.totalorder %s1440_s19, %s2166_s22  ;;  %p2172_p9 = scmp.lt.s32.totalorder %s2166_s22, %s2166_s22 }
 0x432   :  { %p2173_p10 = por %p2172_p9, %p2171_p8 }
 0x434   :  { %p2174_p11 = pnand %p2173_p10, %p2167_p7 }
 0x436   :  { %2177 = shalt.err (!%p2174_p11)
}
 0x437   :  { %s2178_s0 = scalar_lea.hbm %s2933_s6, 256 }
 0x438   :  { %p2179_p12 = scmp.ne.s32.totalorder %s2933_s6, %s2178_s0  ;;  %p2182_p13 = scmp.lt.u32.totalorder %s2178_s0, %s2933_s6 }
 0x43a   :  { %p2184_p0 = pnand %p2182_p13, %p2179_p12 }
 0x43c   :  { %2187 = shalt.err (!%p2184_p0)
}
 0x43d   :  { %1442 = dma.vmem_to_hbm [thread:$0]  %s1440_s19, 256, %s2933_s6, [#allocation9]   ;;  %v1290_v14 = vadd.f32 %v1289_v11, %v1288_v10  ;;  %v1265_v15 = vrot.slane %v1264_v12, 2 }
 0x43e   :  { %s2188_s28 = scalar_lea.vmem %s1454_s21, 256  ;;  %p2193_p2 = scmp.lt.s32.totalorder %s1454_s21, %s1454_s21 }
 0x43f   :  { %p2189_p1 = scmp.ne.s32.totalorder %s1454_s21, %s2188_s28  ;;  %p2194_p3 = scmp.lt.s32.totalorder %s2188_s28, %s2188_s28 }
 0x441   :  { %p2195_p4 = por %p2194_p3, %p2193_p2 }
 0x443   :  { %p2196_p5 = pnand %p2195_p4, %p2189_p1 }
 0x445   :  { %2199 = shalt.err (!%p2196_p5)
}
 0x446   :  { %s2200_s30 = scalar_lea.hbm %s2935_s8, 256 }
 0x447   :  { %p2201_p6 = scmp.ne.s32.totalorder %s2935_s8, %s2200_s30  ;;  %p2204_p7 = scmp.lt.u32.totalorder %s2200_s30, %s2935_s8 }
 0x449   :  { %p2206_p8 = pnand %p2204_p7, %p2201_p6 }
 0x44b   :  { %2209 = shalt.err (!%p2206_p8)
}
 0x44c   :  { %1456 = dma.vmem_to_hbm [thread:$0]  %s1454_s21, 256, %s2935_s8, [#allocation11]   ;;  %v1291_v13 = vrot.slane %v1290_v14, 2  ;;  %v1266_v16 = vadd.f32 %v1265_v15, %v1264_v12 }
 0x44d   :  { %s2404_s16 = smov [#allocation13]  }
 0x44e   :  { %s1460_s17 = sshll.u32 %s2404_s16, 4  ;;  %v1292_v17 = vadd.f32 %v1291_v13, %v1290_v14  ;;  %s1461_s17 = int_to_ptr.vmem [resolvable:$true] %s1460_s17 }
 0x44f   :  { %s2210_s2 = scalar_lea.vmem %s1461_s17, 256  ;;  %p2215_p10 = scmp.lt.s32.totalorder %s1461_s17, %s1461_s17 }
 0x450   :  { %p2211_p9 = scmp.ne.s32.totalorder %s1461_s17, %s2210_s2  ;;  %p2216_p11 = scmp.lt.s32.totalorder %s2210_s2, %s2210_s2 }
 0x452   :  { %p2217_p12 = por %p2216_p11, %p2215_p10 }
 0x454   :  { %p2218_p13 = pnand %p2217_p12, %p2211_p9 }
 0x456   :  { %2221 = shalt.err (!%p2218_p13)
}
 0x457   :  { %s2222_s20 = scalar_lea.hbm %s2936_s9, 256 }
 0x458   :  { %p2223_p0 = scmp.ne.s32.totalorder %s2936_s9, %s2222_s20  ;;  %p2226_p1 = scmp.lt.u32.totalorder %s2222_s20, %s2936_s9 }
 0x45a   :  { %p2228_p2 = pnand %p2226_p1, %p2223_p0 }
 0x45c   :  { %2231 = shalt.err (!%p2228_p2)
}
 0x45d   :  { %1463 = dma.vmem_to_hbm [thread:$0]  %s1461_s17, 256, %s2936_s9, [#allocation14]   ;;  %v1267_v18 = vrot.slane %v1266_v16, 1  ;;  %v1293_v19 = vrot.slane %v1292_v17, 1 }
 0x45e   :  { %s1245_s11 = smov [#allocation4]  ;;  %s1271_s23 = smov [#allocation6] }
 0x45f   :  { %v1268_v20 = vadd.f32 %v1267_v18, %v1266_v16  ;;  %v1294_v21 = vadd.f32 %v1293_v19, %v1292_v17 }
 0x461   :  { %1269 = vst [vmem:[%s1245_s11] sm:$0x1] %v1268_v20  ;;  %1295 = vst [vmem:[%s1271_s23] sm:$0x1] %v1294_v21 }
 0x468   :  { %v1299_v22 = vld [vmem:[#allocation4] sm:$0x1]  ;;  %v1305_v23 = vld [vmem:[#allocation6] sm:$0x1] }
 0x469   :  { %1301 = vst [vmem:[#allocation5] sm:$0x1] %v1299_v22  ;;  %1307 = vst [vmem:[#allocation7] sm:$0x1] %v1305_v23 }
 0x470   :  { %v1370_v24 = vld [vmem:[#allocation5] sm:$0x1]  ;;  %v1434_v25 = vld [vmem:[#allocation7] sm:$0x1] }
 0x471   :  { %1371 = vst [vmem:[%s2931_s4] sm:$0x1] %v1370_v24  ;;  %1435 = vst [vmem:[%s2932_s5] sm:$0x1] %v1434_v25 }
 0x472   :  { %2352 = dma.done.wait [#allocation9], 256  }
 0x473   :  { %2353 = vsyncadd [#allocation9], 4294967040 }
 0x474   :  { %2354 = dma.done.wait [#allocation11], 512  }
 0x475   :  { %2355 = vsyncadd [#allocation11], 4294966784 }
 0x476   :  { %2356 = dma.done.wait [#allocation14], 256  }
 0x477   :  { %2357 = vsyncadd [#allocation14], 4294967040 }
 0x478   :  { %1472 = vsyncpa [#allocation9], 1 }
 0x479   :  { %1473 = vsyncpa [#allocation11], 1 }
 0x47a   :  { %1474 = vsyncpa [#allocation14], 1 }

// kernel: fid_forward.6
= control target key start
LH: loop header
LB: loop body
LE: loop exit
PB: predicated region body
PF: predicated region fallthrough
CT: control target
= control target key end

     0   :  { %vm33_vm0 = vcmask 261120   ;;  %s304_s1 = inlined_call_operand.vmem [shape: f32[32,32], index: 1, kind: input, shape index: {}, may-alias: {0,1}]   ;;  %s305_s0 = inlined_call_operand.vmem [shape: f32[32,32], index: 0, kind: input, shape index: {}, may-alias: {0,1}]   ;;  %s306_s2 = inlined_call_operand.vmem [shape: f32[1,32], index: 2, kind: input, shape index: {}]   ;;  %s307_s3 = inlined_call_operand.vmem [shape: f32[32,32], index: 3, kind: output, shape index: {}]  }
   0x1   :  { %v42_v0 = vld [vmem:[%s304_s1] sm:$0xff]  ;;  %v43_v1 = vld [vmem:[%s304_s1 + $0x8] sm:$0xff]  ;;  %vm239_vm1 = vmpackc.low %vm33_vm0, %vm33_vm0 }
   0x2   :  { %v195_v3 = vpack.c.bf16 %v43_v1, %v42_v0  ;;  %v44_v4 = vld [vmem:[%s304_s1 + $0x10] sm:$0xff]  ;;  %v45_v5 = vld [vmem:[%s304_s1 + $0x18] sm:$0xff]  ;;  %v18_v6 = vld [vmem:[%s305_s0] sm:$0xff] }
   0x3   :  { %v201_v7 = vpack.c.bf16 %v45_v5, %v44_v4  ;;  %v164_v8 = vld [vmem:[%s306_s2] ss:$0 sm:$0xff]  ;;  %v20_v9 = vld [vmem:[%s305_s0 + $0x10] sm:$0xff]  ;;  %v19_v10 = vld [vmem:[%s305_s0 + $0x8] sm:$0xff] }
   0x4   :  { %197 = vmatprep.subr.msk.bf16.mxu0 %vm239_vm1, %v195_v3  ;;  %207 = vmatprep.subr.msk.bf16.mxu1 %vm239_vm1, %v195_v3  ;;  %v29_v11 = vmul.f32 %v164_v8, %v18_v6  ;;  %v31_v12 = vmul.f32 %v164_v8, %v20_v9  ;;  %v30_v13 = vmul.f32 %v164_v8, %v19_v10  ;;  %v21_v14 = vld [vmem:[%s305_s0 + $0x18] sm:$0xff] }
   0x5   :  { %200 = vmatpush3.bf16.xpose.msk.msra.mxu0 %vm239_vm1, %v195_v3  ;;  %209 = vmatpush3.bf16.xpose.msk.msra.mxu1 %vm239_vm1, %v195_v3  ;;  %v32_v15 = vmul.f32 %v164_v8, %v21_v14 }
   0x6   :  { %203 = vmatprep.subr.msk.bf16.mxu0 %vm239_vm1, %v201_v7  ;;  %208 = vmatprep.subr.msk.bf16.mxu1 %vm239_vm1, %v201_v7  ;;  %34 = vst.msk [vmem:[#allocation2] sm:$0xff] %vm33_vm0, %v29_v11  ;;  %36 = vst.msk [vmem:[#allocation2 + $0x10] sm:$0xff] %vm33_vm0, %v31_v12 }
   0x7   :  { %35 = vst.msk [vmem:[#allocation2 + $0x8] sm:$0xff] %vm33_vm0, %v30_v13  ;;  %37 = vst.msk [vmem:[#allocation2 + $0x18] sm:$0xff] %vm33_vm0, %v32_v15 }
   0xd   :  { %206 = vmatpush3.bf16.xpose.msk.msra.mxu0 %vm239_vm1, %v201_v7  ;;  %210 = vmatpush3.bf16.xpose.msk.msra.mxu1 %vm239_vm1, %v201_v7  ;;  %v38_v16 = vld [vmem:[#allocation2] sm:$0xff]  ;;  %v40_v17 = vld [vmem:[#allocation2 + $0x10] sm:$0xff] }
   0xe   :  { %189 = vmatprep.mubr.msk.f32.mxu0 %vm33_vm0, %v38_v16  ;;  %192 = vmatprep.mubr.msk.f32.mxu1 %vm33_vm0, %v40_v17  ;;  %v39_v18 = vld [vmem:[#allocation2 + $0x8] sm:$0xff]  ;;  %v41_v19 = vld [vmem:[#allocation2 + $0x18] sm:$0xff] }
  0x14   :  { %190 = vmatmul.mubr.msk.f32.vlgmr.msra.gmra.mrb[0].mxu0 %vm33_vm0, %v39_v18  ;;  %193 = vmatmul.mubr.msk.f32.vlgmr.msra.gmra.mrb[0].mxu1 %vm33_vm0, %v41_v19 }
  0xe7   :  { %v191_v20 = vpop.f32.mrb[0].mxu0  ;;  %v194_v21 = vpop.f32.mrb[0].mxu1 }
  0xe8   :  { %157 = vst.msk [vmem:[%s307_s3 + $0x8] sm:$0xff] %vm33_vm0, %v191_v20  ;;  %159 = vst.msk [vmem:[%s307_s3 + $0x18] sm:$0xff] %vm33_vm0, %v194_v21  ;;  %v137_v22 = vpop.f32.mrb[1].mxu0  ;;  %v147_v23 = vpop.f32.mrb[1].mxu1 }
  0xe9   :  { %156 = vst.msk [vmem:[%s307_s3] sm:$0xff] %vm33_vm0, %v137_v22  ;;  %158 = vst.msk [vmem:[%s307_s3 + $0x10] sm:$0xff] %vm33_vm0, %v147_v23 }

// kernel: fid_forward.7
= control target key start
LH: loop header
LB: loop body
LE: loop exit
PB: predicated region body
PF: predicated region fallthrough
CT: control target
= control target key end

     0   :  { %vm18_vm0 = vcmask 261120   ;;  %v315_v11 = vmov 0.0   ;;  %s424_s0 = inlined_call_operand.vmem [shape: f32[32,32], index: 0, kind: input, shape index: {}, may-alias: {0,2}]   ;;  %s425_s1 = inlined_call_operand.vmem [shape: f32[32,32], index: 1, kind: input, shape index: {}]   ;;  %s426_s2 = inlined_call_operand.vmem [shape: f32[32,32], index: 2, kind: input, shape index: {}, may-alias: {0,2}]   ;;  %s427_s3 = inlined_call_operand.vmem [shape: f32[32,32], index: 3, kind: output, shape index: {}]  }
   0x1   :  { %v27_v0 = vld [vmem:[%s424_s0] sm:$0xff]  ;;  %v28_v1 = vld [vmem:[%s424_s0 + $0x8] sm:$0xff]  ;;  %v29_v2 = vld [vmem:[%s424_s0 + $0x10] sm:$0xff]  ;;  %20 = vst.msk [vmem:[%s427_s3 + $0x8] sm:$0xff] %vm18_vm0, %v315_v11 }
   0x2   :  { %v298_v3 = vpack.c.bf16 %v28_v1, %v27_v0  ;;  %v30_v4 = vld [vmem:[%s424_s0 + $0x18] sm:$0xff]  ;;  %v23_v5 = vld [vmem:[%s425_s1] sm:$0xff]  ;;  %v24_v7 = vld [vmem:[%s425_s1 + $0x8] sm:$0xff]  ;;  %19 = vst.msk [vmem:[%s427_s3] sm:$0xff] %vm18_vm0, %v315_v11 }
   0x3   :  { %v302_v6 = vpack.c.bf16 %v30_v4, %v29_v2  ;;  %278 = vmatprep.mubr.msk.f32.mxu0 %vm18_vm0, %v23_v5  ;;  %v25_v8 = vld [vmem:[%s425_s1 + $0x10] sm:$0xff]  ;;  %v26_v9 = vld [vmem:[%s425_s1 + $0x18] sm:$0xff]  ;;  %v133_v10 = vld [vmem:[%s426_s2] sm:$0xff]  ;;  %21 = vst.msk [vmem:[%s427_s3 + $0x10] sm:$0xff] %vm18_vm0, %v315_v11 }
   0x4   :  { %299 = vmatprep.subr.bf16.mxu0 %v298_v3  ;;  %292 = vmatprep.mubr.msk.f32.mxu1 %vm18_vm0, %v133_v10  ;;  %22 = vst.msk [vmem:[%s427_s3 + $0x18] sm:$0xff] %vm18_vm0, %v315_v11  ;;  %v134_v18 = vld [vmem:[%s426_s2 + $0x8] sm:$0xff]  ;;  %v135_v19 = vld [vmem:[%s426_s2 + $0x10] sm:$0xff]  ;;  %v136_v20 = vld [vmem:[%s426_s2 + $0x18] sm:$0xff] }
   0x5   :  { %301 = vmatpush3.bf16.msra.mxu0 %v298_v3 }
   0x6   :  { %303 = vmatprep.subr.bf16.mxu0 %v302_v6 }
   0x8   :  { %v130_v21 = vld [vmem:[%s427_s3 + $0x8] sm:$0xff] }
   0x9   :  { %305 = vmatpush3.bf16.msra.mxu0 %v302_v6  ;;  %v129_v22 = vld [vmem:[%s427_s3] sm:$0xff] }
   0xa   :  { %v131_v28 = vld [vmem:[%s427_s3 + $0x10] sm:$0xff] }
   0xb   :  { %v132_v27 = vld [vmem:[%s427_s3 + $0x18] sm:$0xff] }
   0xc   :  { %279 = vmatmul.mubr.msk.f32.vlgmr.msra.gmra.mrb[0].mxu0 %vm18_vm0, %v24_v7 }
   0xd   :  { %281 = vmatprep.mubr.msk.f32.mxu0 %vm18_vm0, %v25_v8 }
  0x10   :  { %282 = vmatmul.mubr.msk.f32.gmra.mrb[2].mxu0 %vm18_vm0, %v26_v9 }
  0xdf   :  { %v280_v12 = vpop.f32.mrb[0].mxu0 }
  0xe0   :  { %v110_v13 = vpop.f32.mrb[1].mxu0 }
  0xe1   :  { %v306_v14 = vpack.c.bf16 %v280_v12, %v110_v13 }
  0xe3   :  { %v283_v15 = vpop.f32.mrb[2].mxu0  ;;  %307 = vmatprep.subr.bf16.mxu1 %v306_v14 }
  0xe4   :  { %v120_v16 = vpop.f32.mrb[3].mxu0  ;;  %309 = vmatpush3.bf16.msra.mxu1 %v306_v14 }
  0xe5   :  { %v310_v17 = vpack.c.bf16 %v283_v15, %v120_v16 }
  0xe7   :  { %311 = vmatprep.subr.bf16.mxu1 %v310_v17 }
  0xe8   :  { %313 = vmatpush3.bf16.msra.mxu1 %v310_v17 }
  0xeb   :  { %293 = vmatmul.mubr.msk.f32.vlgmr.msra.gmra.mrb[0].mxu1 %vm18_vm0, %v134_v18 }
  0xec   :  { %295 = vmatprep.mubr.msk.f32.mxu1 %vm18_vm0, %v135_v19 }
  0xef   :  { %296 = vmatmul.mubr.msk.f32.gmra.mrb[2].mxu1 %vm18_vm0, %v136_v20 }
 0x1be   :  { %v294_v23 = vpop.f32.mrb[0].mxu1 }
 0x1bf   :  { %v235_v24 = vadd.f32 %v294_v23, %v130_v21  ;;  %v215_v25 = vpop.f32.mrb[1].mxu1 }
 0x1c0   :  { %v234_v26 = vadd.f32 %v215_v25, %v129_v22 }
 0x1c1   :  { %239 = vst.msk [vmem:[%s427_s3 + $0x8] sm:$0xff] %vm18_vm0, %v235_v24 }
 0x1c2   :  { %238 = vst.msk [vmem:[%s427_s3] sm:$0xff] %vm18_vm0, %v234_v26  ;;  %v297_v29 = vpop.f32.mrb[2].mxu1 }
 0x1c3   :  { %v237_v30 = vadd.f32 %v297_v29, %v132_v27  ;;  %v225_v31 = vpop.f32.mrb[3].mxu1 }
 0x1c4   :  { %v236_v32 = vadd.f32 %v225_v31, %v131_v28 }
 0x1c5   :  { %241 = vst.msk [vmem:[%s427_s3 + $0x18] sm:$0xff] %vm18_vm0, %v237_v30 }
 0x1c6   :  { %240 = vst.msk [vmem:[%s427_s3 + $0x10] sm:$0xff] %vm18_vm0, %v236_v32 }

</bundles_post_ra>
